<compile_context>
chip_gen: v7x
topology: tpu7x:2x2x1
jax: 0.10.0
libtpu: 0.0.40
codegen_flags: <defaults>
</compile_context>

<pallas_src>
import functools
import math

import jax
import jax.numpy as jnp
from jax.experimental import pallas as pl
from jax.experimental.pallas import tpu as pltpu


def _round_up(x, m):
    return ((x + m - 1) // m) * m


def siren_kernel(x_ref, w1_ref, b1_ref, wh_ref, bh_ref, wo_ref, out_ref, *,
                 hidden_layers, in_features):
    """Fused SIREN MLP on one row tile, lane-dense layout.

    x_ref : (in_features, TILE_N)          w1_ref: (H, in)   (omega folded in)
    b1_ref: (H, 1)                         wh_ref: (L, H, H) (omega folded in)
    bh_ref: (L, H, 1)                      wo_ref: (out, H)
    out_ref: (out_features, TILE_N)
    """
    x = x_ref[...].astype(jnp.float32)            # (in, TILE_N)
    w1 = w1_ref[...]                              # (H, in)
    b1 = b1_ref[...]                              # (H, 1)

    # First SineLayer.  K == in_features is tiny (e.g. 2), so do the
    # contraction as broadcast FMAs on the VPU instead of paying MXU
    # fill/drain for a K=2 matmul.
    pre = w1[:, 0:1] * x[0:1, :]                  # (H, TILE_N)
    for k in range(1, in_features):
        pre = pre + w1[:, k:k + 1] * x[k:k + 1, :]
    h = jnp.sin(pre + b1)

    # Hidden SineLayers (static unroll; omega already folded into W/b).
    for l in range(hidden_layers):
        h = jnp.sin(
            jnp.dot(wh_ref[l], h, preferred_element_type=jnp.float32)
            + bh_ref[l])

    # Outermost linear (bias-free).  Output stays lane-dense: (out, TILE_N).
    out_ref[...] = jnp.dot(
        wo_ref[...], h, preferred_element_type=jnp.float32
    ).astype(out_ref.dtype)


def siren_forward(coords, params, *, hidden_layers, first_omega_0=30.0,
                  hidden_omega_0=30.0, tile_n=2048):
    """Pallas implementation of Siren.forward.

    `params` are in PyTorch nn.Linear orientation:
        w_first  (H, in),  b_first (H,)
        w_hidden (L, H, H), b_hidden (L, H)
        w_out    (out, H)
    Returns {'model_in': coords, 'model_out': output} like the PyTorch module.
    """
    w_first, b_first, w_hidden, b_hidden, w_out = params
    n, in_features = coords.shape
    hidden_features = w_first.shape[0]
    out_features = w_out.shape[0]

    # Fold omega_0 into the parameters (one-time, tiny arrays):
    #   sin(w0 * (W x + b)) == sin((w0 W) x + (w0 b))
    w1 = (first_omega_0 * w_first).astype(jnp.float32)
    b1 = (first_omega_0 * b_first).reshape(hidden_features, 1).astype(jnp.float32)
    if hidden_layers > 0:
        wh = (hidden_omega_0 * w_hidden).astype(jnp.float32)
        bh = (hidden_omega_0 * b_hidden).reshape(
            hidden_layers, hidden_features, 1).astype(jnp.float32)
        num_hidden_blocks = hidden_layers
    else:  # keep BlockSpecs well-formed when there are no hidden layers
        wh = jnp.zeros((1, hidden_features, hidden_features), jnp.float32)
        bh = jnp.zeros((1, hidden_features, 1), jnp.float32)
        num_hidden_blocks = 1
    wo = w_out.astype(jnp.float32)

    # Tile selection: large tiles amortize the ~0.35us per-grid-step overhead;
    # keep >= 2 grid steps so v7x megacore can shard the parallel axis.
    # Ragged N is handled by padding (no caller-side constraint).
    n_pad128 = _round_up(n, 128)
    tile = min(tile_n, max(128, _round_up(pl.cdiv(n_pad128, 2), 128)))
    n_pad = _round_up(n, tile)
    grid = n_pad // tile

    # Lane-dense layout: put the row axis N on the lane (last) axis.
    x_t = coords.astype(jnp.float32).T                    # (in, N)
    if n_pad != n:
        x_t = jnp.pad(x_t, ((0, 0), (0, n_pad - n)))

    kernel = functools.partial(
        siren_kernel, hidden_layers=hidden_layers, in_features=in_features)

    out_t = pl.pallas_call(
        kernel,
        out_shape=jax.ShapeDtypeStruct((out_features, n_pad), jnp.float32),
        grid_spec=pltpu.PrefetchScalarGridSpec(
            num_scalar_prefetch=0,
            grid=(grid,),
            in_specs=[
                pl.BlockSpec((in_features, tile), lambda i: (0, i)),
                # Weights/biases are grid-invariant (constant index_map), so the
                # pipeline does not re-DMA them across grid steps.
                pl.BlockSpec((hidden_features, in_features), lambda i: (0, 0)),
                pl.BlockSpec((hidden_features, 1), lambda i: (0, 0)),
                pl.BlockSpec((num_hidden_blocks, hidden_features, hidden_features),
                             lambda i: (0, 0, 0)),
                pl.BlockSpec((num_hidden_blocks, hidden_features, 1),
                             lambda i: (0, 0, 0)),
                pl.BlockSpec((out_features, hidden_features), lambda i: (0, 0)),
            ],
            out_specs=pl.BlockSpec((out_features, tile), lambda i: (0, i)),
        ),
        compiler_params=pltpu.CompilerParams(
            dimension_semantics=("parallel",)),
    )(x_t, w1, b1, wh, bh, wo)

    out = out_t[:, :n].T.astype(coords.dtype)              # back to (N, out)
    return {"model_in": coords, "model_out": out}


def init_siren_params(key, in_features, hidden_features, hidden_layers,
                      out_features, first_omega_0=30.0, hidden_omega_0=30.0):
    """Deterministic init matching the PyTorch module's uniform ranges.

    Weights are in PyTorch nn.Linear orientation (out, in).
    """
    keys = jax.random.split(key, 2 + 2 * hidden_layers + 1)
    ki = iter(keys)

    # First SineLayer: W ~ U(-1/in, 1/in);  bias = nn.Linear default
    # U(-1/sqrt(in), 1/sqrt(in)).
    w_first = jax.random.uniform(
        next(ki), (hidden_features, in_features), jnp.float32,
        minval=-1.0 / in_features, maxval=1.0 / in_features)
    b_bound = 1.0 / math.sqrt(in_features)
    b_first = jax.random.uniform(
        next(ki), (hidden_features,), jnp.float32,
        minval=-b_bound, maxval=b_bound)

    # Hidden SineLayers.
    w_bound = math.sqrt(6.0 / hidden_features) / hidden_omega_0
    hb_bound = 1.0 / math.sqrt(hidden_features)
    wh, bh = [], []
    for _ in range(hidden_layers):
        wh.append(jax.random.uniform(
            next(ki), (hidden_features, hidden_features), jnp.float32,
            minval=-w_bound, maxval=w_bound))
        bh.append(jax.random.uniform(
            next(ki), (hidden_features,), jnp.float32,
            minval=-hb_bound, maxval=hb_bound))
    w_hidden = jnp.stack(wh, axis=0)                      # (L, H, H)
    b_hidden = jnp.stack(bh, axis=0)                      # (L, H)

    # Outermost linear (bias=False).
    w_out = jax.random.uniform(
        next(ki), (out_features, hidden_features), jnp.float32,
        minval=-w_bound, maxval=w_bound)

    return (w_first, b_first, w_hidden, b_hidden, w_out)


def siren_reference(coords, params, *, hidden_layers, first_omega_0=30.0,
                    hidden_omega_0=30.0):
    """Plain-JAX reference for correctness checking (PyTorch orientation)."""
    w_first, b_first, w_hidden, b_hidden, w_out = params
    h = jnp.sin(first_omega_0 * (coords @ w_first.T + b_first))
    for l in range(hidden_layers):
        h = jnp.sin(hidden_omega_0 * (h @ w_hidden[l].T + b_hidden[l]))
    return h @ w_out.T


if __name__ == "__main__":
    IN_FEATURES = 2        # e.g. 2-D coordinates
    HIDDEN_FEATURES = 32
    HIDDEN_LAYERS = 2
    OUT_FEATURES = 3       # e.g. RGB
    N = 300                # deliberately NOT a multiple of 128 (ragged path)

    key = jax.random.PRNGKey(0)
    k_params, k_coords = jax.random.split(key)

    params = init_siren_params(
        k_params, IN_FEATURES, HIDDEN_FEATURES, HIDDEN_LAYERS, OUT_FEATURES)
    coords = jax.random.uniform(
        k_coords, (N, IN_FEATURES), jnp.float32, minval=-1.0, maxval=1.0)

    result = siren_forward(coords, params, hidden_layers=HIDDEN_LAYERS)
    out = jax.block_until_ready(result["model_out"])

    ref = siren_reference(coords, params, hidden_layers=HIDDEN_LAYERS)
    assert out.shape == (N, OUT_FEATURES)
    assert jnp.allclose(out, ref, atol=2e-4, rtol=2e-4), "mismatch vs reference"

    # TODO(synk): forward_with_activations / get_basis (introspection helpers)
    # are not translated; only the forward pass is fused.
    print("KERNEL_OK")
</pallas_src>

<mosaic_0001>
module attributes {stable_mosaic.version = 11 : i64} {
  func.func @siren_kernel(%arg0: i32, %arg1: memref<2x256xf32, #tpu.memory_space<vmem>>, %arg2: memref<32x2xf32, #tpu.memory_space<vmem>>, %arg3: memref<32x1xf32, #tpu.memory_space<vmem>>, %arg4: memref<2x32x32xf32, #tpu.memory_space<vmem>>, %arg5: memref<2x32x1xf32, #tpu.memory_space<vmem>>, %arg6: memref<3x32xf32, #tpu.memory_space<vmem>>, %arg7: memref<3x256xf32, #tpu.memory_space<vmem>>) attributes {dimension_semantics = [#tpu.dimension_semantics<parallel>], iteration_bounds = array<i64: 2>, scalar_prefetch = 0 : i64, scratch_operands = 0 : i64, tpu.core_type = #tpu.core_type<tc>, window_params = [{transform_indices = @transform_0, window_bounds = array<i64: 2, 256>}, {pipeline_mode = #tpu.pipeline_mode<synchronous>, transform_indices = @transform_1, window_bounds = array<i64: 32, 2>}, {pipeline_mode = #tpu.pipeline_mode<synchronous>, transform_indices = @transform_2, window_bounds = array<i64: 32, 1>}, {pipeline_mode = #tpu.pipeline_mode<synchronous>, transform_indices = @transform_3, window_bounds = array<i64: 2, 32, 32>}, {pipeline_mode = #tpu.pipeline_mode<synchronous>, transform_indices = @transform_4, window_bounds = array<i64: 2, 32, 1>}, {pipeline_mode = #tpu.pipeline_mode<synchronous>, transform_indices = @transform_5, window_bounds = array<i64: 3, 32>}, {transform_indices = @transform_6, window_bounds = array<i64: 3, 256>}]} {
    %c0 = arith.constant 0 : index
    %c0_0 = arith.constant 0 : index
    %0 = vector.load %arg1[%c0, %c0_0] : memref<2x256xf32, #tpu.memory_space<vmem>>, vector<2x256xf32>
    %c0_1 = arith.constant 0 : index
    %c0_2 = arith.constant 0 : index
    %1 = vector.load %arg2[%c0_1, %c0_2] : memref<32x2xf32, #tpu.memory_space<vmem>>, vector<32x2xf32>
    %c0_3 = arith.constant 0 : index
    %c0_4 = arith.constant 0 : index
    %2 = vector.load %arg3[%c0_3, %c0_4] : memref<32x1xf32, #tpu.memory_space<vmem>>, vector<32x1xf32>
    %3 = vector.extract_strided_slice %1 {offsets = [0, 0], sizes = [32, 1], strides = [1, 1]} : vector<32x2xf32> to vector<32x1xf32>
    %4 = vector.extract_strided_slice %0 {offsets = [0, 0], sizes = [1, 256], strides = [1, 1]} : vector<2x256xf32> to vector<1x256xf32>
    %5 = vector.broadcast %3 : vector<32x1xf32> to vector<32x256xf32>
    %6 = vector.broadcast %4 : vector<1x256xf32> to vector<32x256xf32>
    %7 = arith.mulf %5, %6 : vector<32x256xf32>
    %8 = vector.extract_strided_slice %1 {offsets = [0, 1], sizes = [32, 1], strides = [1, 1]} : vector<32x2xf32> to vector<32x1xf32>
    %9 = vector.extract_strided_slice %0 {offsets = [1, 0], sizes = [1, 256], strides = [1, 1]} : vector<2x256xf32> to vector<1x256xf32>
    %10 = vector.broadcast %8 : vector<32x1xf32> to vector<32x256xf32>
    %11 = vector.broadcast %9 : vector<1x256xf32> to vector<32x256xf32>
    %12 = arith.mulf %10, %11 : vector<32x256xf32>
    %13 = arith.addf %7, %12 : vector<32x256xf32>
    %14 = vector.broadcast %2 : vector<32x1xf32> to vector<32x256xf32>
    %15 = arith.addf %13, %14 : vector<32x256xf32>
    %16 = math.sin %15 : vector<32x256xf32>
    %c0_5 = arith.constant 0 : index
    %c0_6 = arith.constant 0 : index
    %c0_7 = arith.constant 0 : index
    %17 = vector.load %arg4[%c0_5, %c0_6, %c0_7] : memref<2x32x32xf32, #tpu.memory_space<vmem>>, vector<1x32x32xf32>
    %18 = vector.shape_cast %17 : vector<1x32x32xf32> to vector<32x32xf32>
    %cst = arith.constant dense<0.000000e+00> : vector<32x256xf32>
    %19 = tpu.matmul %18, %16, %cst {dimension_numbers = #tpu.dot_dimension_numbers<[1], [0], [0], [1], [0, 0, 1, 1], [], []>} : vector<32x32xf32>, vector<32x256xf32>, vector<32x256xf32> -> vector<32x256xf32>
    %c0_8 = arith.constant 0 : index
    %c0_9 = arith.constant 0 : index
    %c0_10 = arith.constant 0 : index
    %20 = vector.load %arg5[%c0_8, %c0_9, %c0_10] : memref<2x32x1xf32, #tpu.memory_space<vmem>>, vector<1x32x1xf32>
    %21 = vector.shape_cast %20 : vector<1x32x1xf32> to vector<32x1xf32>
    %22 = vector.broadcast %21 : vector<32x1xf32> to vector<32x256xf32>
    %23 = arith.addf %19, %22 : vector<32x256xf32>
    %24 = math.sin %23 : vector<32x256xf32>
    %c1 = arith.constant 1 : index
    %c0_11 = arith.constant 0 : index
    %c0_12 = arith.constant 0 : index
    %25 = vector.load %arg4[%c1, %c0_11, %c0_12] : memref<2x32x32xf32, #tpu.memory_space<vmem>>, vector<1x32x32xf32>
    %26 = vector.shape_cast %25 : vector<1x32x32xf32> to vector<32x32xf32>
    %cst_13 = arith.constant dense<0.000000e+00> : vector<32x256xf32>
    %27 = tpu.matmul %26, %24, %cst_13 {dimension_numbers = #tpu.dot_dimension_numbers<[1], [0], [0], [1], [0, 0, 1, 1], [], []>} : vector<32x32xf32>, vector<32x256xf32>, vector<32x256xf32> -> vector<32x256xf32>
    %c1_14 = arith.constant 1 : index
    %c0_15 = arith.constant 0 : index
    %c0_16 = arith.constant 0 : index
    %28 = vector.load %arg5[%c1_14, %c0_15, %c0_16] : memref<2x32x1xf32, #tpu.memory_space<vmem>>, vector<1x32x1xf32>
    %29 = vector.shape_cast %28 : vector<1x32x1xf32> to vector<32x1xf32>
    %30 = vector.broadcast %29 : vector<32x1xf32> to vector<32x256xf32>
    %31 = arith.addf %27, %30 : vector<32x256xf32>
    %32 = math.sin %31 : vector<32x256xf32>
    %c0_17 = arith.constant 0 : index
    %c0_18 = arith.constant 0 : index
    %33 = vector.load %arg6[%c0_17, %c0_18] : memref<3x32xf32, #tpu.memory_space<vmem>>, vector<3x32xf32>
    %cst_19 = arith.constant dense<0.000000e+00> : vector<3x256xf32>
    %34 = tpu.matmul %33, %32, %cst_19 {dimension_numbers = #tpu.dot_dimension_numbers<[1], [0], [0], [1], [0, 0, 1, 1], [], []>} : vector<3x32xf32>, vector<32x256xf32>, vector<3x256xf32> -> vector<3x256xf32>
    %c0_20 = arith.constant 0 : index
    %c0_21 = arith.constant 0 : index
    %35 = vector.load %arg7[%c0_20, %c0_21] : memref<3x256xf32, #tpu.memory_space<vmem>>, vector<3x256xf32>
    tpu.vector_store %arg7[%c0_20, %c0_21], %34 {strides = array<i32>} : memref<3x256xf32, #tpu.memory_space<vmem>>, vector<3x256xf32>,
    return
  }
  func.func @transform_0(%arg0: i32) -> (i32, i32) {
    %c0_i32 = arith.constant 0 : i32
    %c0_i32_0 = arith.constant 0 : i32
    return %c0_i32, %arg0 : i32, i32
  }
  func.func @transform_1(%arg0: i32) -> (i32, i32) {
    %c0_i32 = arith.constant 0 : i32
    %c0_i32_0 = arith.constant 0 : i32
    %c0_i32_1 = arith.constant 0 : i32
    return %c0_i32, %c0_i32_0 : i32, i32
  }
  func.func @transform_2(%arg0: i32) -> (i32, i32) {
    %c0_i32 = arith.constant 0 : i32
    %c0_i32_0 = arith.constant 0 : i32
    %c0_i32_1 = arith.constant 0 : i32
    return %c0_i32, %c0_i32_0 : i32, i32
  }
  func.func @transform_3(%arg0: i32) -> (i32, i32, i32) {
    %c0_i32 = arith.constant 0 : i32
    %c0_i32_0 = arith.constant 0 : i32
    %c0_i32_1 = arith.constant 0 : i32
    %c0_i32_2 = arith.constant 0 : i32
    return %c0_i32, %c0_i32_0, %c0_i32_1 : i32, i32, i32
  }
  func.func @transform_4(%arg0: i32) -> (i32, i32, i32) {
    %c0_i32 = arith.constant 0 : i32
    %c0_i32_0 = arith.constant 0 : i32
    %c0_i32_1 = arith.constant 0 : i32
    %c0_i32_2 = arith.constant 0 : i32
    return %c0_i32, %c0_i32_0, %c0_i32_1 : i32, i32, i32
  }
  func.func @transform_5(%arg0: i32) -> (i32, i32) {
    %c0_i32 = arith.constant 0 : i32
    %c0_i32_0 = arith.constant 0 : i32
    %c0_i32_1 = arith.constant 0 : i32
    return %c0_i32, %c0_i32_0 : i32, i32
  }
  func.func @transform_6(%arg0: i32) -> (i32, i32) {
    %c0_i32 = arith.constant 0 : i32
    %c0_i32_0 = arith.constant 0 : i32
    return %c0_i32, %arg0 : i32, i32
  }
}

</mosaic_0001>

<bundles_post_ra>
// kernel: tpu_custom_call.1
= control target key start
LH: loop header
LB: loop body
LE: loop exit
PB: predicated region body
PF: predicated region fallthrough
CT: control target
= control target key end

     0   :  { %11 = vsyncpa [#allocation3], 0  ;;  %s6330_s0 = inlined_call_operand.vmem [shape: f32[2,512], index: 0, kind: input, shape index: {}]   ;;  %s6331_s1 = inlined_call_operand.vmem [shape: f32[32,2], index: 1, kind: input, shape index: {}]   ;;  %s6332_s2 = inlined_call_operand.vmem [shape: f32[32,1], index: 2, kind: input, shape index: {}]   ;;  %s6333_s3 = inlined_call_operand.vmem [shape: f32[2,32,32], index: 3, kind: input, shape index: {}]   ;;  %s6334_s4 = inlined_call_operand.vmem [shape: f32[2,32,1], index: 4, kind: input, shape index: {}]   ;;  %s6335_s5 = inlined_call_operand.vmem [shape: f32[3,32], index: 5, kind: input, shape index: {}]   ;;  %s6336_s6 = inlined_call_operand.hbm [shape: f32[3,512], index: 6, kind: output, shape index: {}]  }
   0x1   :  { %13 = vsyncpa [#allocation3 + $0x1], 0  ;;  %s3803_s21 = smov 0   ;;  %s3805_s22 = smov 0  }
   0x2   :  { %s3807_s23 = smov 0   ;;  %s3809_s24 = smov 0  }
   0x3 LB: > { %s3824_s25 = sadd.s32 4294967295, %s3756_s24   ;;  %s3298_s26 = sadd.s32 4294967294, %s3756_s24   ;;  %s3756_s24 = sphi %s3809_s24, %s6571_s24   ;;  %s3752_s23 = sphi %s3807_s23, %s6570_s23   ;;  %s3748_s22 = sphi %s3805_s22, %s6569_s22   ;;  %s3744_s21 = sphi %s3803_s21, %s6568_s21  }
   0x4   : > { %s3828_s27 = sadd.s32 1, %s3756_s24   ;;  %s157_s28 = sadd.s32 1, %s3752_s23 }
   0x5   : > { %s154_s29 = ssub.s32 %s3756_s24, %s3828_s27  ;;  %p167_p0 = scmp.ne.s32.totalorder %s3752_s23, %s3748_s22 }
   0x6   : > { %p155_p1 = scmp.eq.s32.totalorder %s154_s29, 0  ;;  %p168_p2 = scmp.eq.s32.totalorder %s3824_s25, 1 }
   0x7   : > { %p173_p3 = scmp.ne.s32.totalorder %s3748_s22, %s3744_s21  ;;  %p174_p4 = scmp.eq.s32.totalorder %s3298_s26, 1 }
   0x8   : > { %s3839_s30 = scalar_select %p155_p1, %s3752_s23, %s157_s28  }
   0x9   : > { %p3841_p5 = por %p168_p2, %p167_p0  ;;  %p3845_p6 = por %p174_p4, %p173_p3 }
   0xa   : > { %p3301_p7 = scmp.ge.s32.totalorder %s3756_s24, 1  ;;  %p216_p8 = scmp.lt.s32.totalorder %s3756_s24, 3 }
   0xc   : > { %p217_p9 = pnand %p3301_p7, %p216_p8 }
   0xe   : > { %220 = sbr.rel (%p217_p9) target bundleno = 1484 (0x5cc), region = 44 }
  0x15   : > { %v256_v0 = vld [vmem:[%s6331_s1 + $0x10] sm:$0xff]  ;;  %v254_v1 = vld [vmem:[%s6331_s1] sm:$0xff]  ;;  %v3758_v2 = vmov 1   ;;  %v255_v3 = vld [vmem:[%s6331_s1 + $0x8] sm:$0xff]  ;;  %v3759_v4 = vmov 0   ;;  %s3303_s11 = sshll.u32 %s3824_s25, 1  ;;  %v283_v20 = vlaneseq }
  0x16   : > { %3594 = vset.pattern.permute.xlu0 %v3758_v2  ;;  %3592 = vset.pattern.permute.xlu1 %v3758_v2  ;;  %v257_v5 = vld [vmem:[%s6331_s1 + $0x18] sm:$0xff]  ;;  %v259_v6 = vld [vmem:[%s6332_s2 + $0x8] sm:$0xff]  ;;  %v258_v7 = vld [vmem:[%s6332_s2] sm:$0xff]  ;;  %p247_p10 = scmp.lt.s32.totalorder %s3303_s11, 3  ;;  %s243_s19 = sand.u32 1, %s3748_s22  }
  0x17   : > { %318 = vperm.xlu0 %3594, %v256_v0   ;;  %310 = vperm.xlu1 %3592, %v254_v1   ;;  %v1223_v8 = vld [vmem:[%s6334_s4] sm:$0xff]  ;;  %v260_v9 = vld [vmem:[%s6332_s2 + $0x10] sm:$0xff]  ;;  %v261_v11 = vld [vmem:[%s6332_s2 + $0x18] sm:$0xff]  ;;  %v284_v23 = vshrl.u32 %v283_v20, 7  ;;  %s3302_s20 = sshll.u32 %s243_s19, 3  ;;  %s3423_s26 = sshll.u32 %s3824_s25, 7 }
  0x18   : > { %v1225_v10 = vld [vmem:[%s6334_s4 + $0x10] sm:$0xff]  ;;  %v3377_v12 = vld [vmem:[%s6334_s4 + $0x20] sm:$0xff]  ;;  %v1224_v13 = vld [vmem:[%s6334_s4 + $0x8] sm:$0xff]  ;;  %s6573_s11 = smov (!%p247_p10, %s3303_s11), 3  ;;  %s245_s28 = scalar_lea.vmem [#allocation2], %s3302_s20 }
  0x19   : > { %v3379_v14 = vld [vmem:[%s6334_s4 + $0x30] sm:$0xff]  ;;  %v1226_v15 = vld [vmem:[%s6334_s4 + $0x18] sm:$0xff]  ;;  %v3378_v16 = vld [vmem:[%s6334_s4 + $0x28] sm:$0xff]  ;;  %s3304_s12 = sshll.u32 %s6573_s11, 1  ;;  %v285_v24 = vsub.s32 0, %v284_v23  ;;  %v327_v27 = vsub.s32 1, %v284_v23  ;;  %s6288_s11 = scalar_lea.hbm %s6336_s6, %s3423_s26 }
  0x1a   : > { %v3380_v17 = vld [vmem:[%s6334_s4 + $0x38] sm:$0xff]  ;;  %s250_s15 = scalar_lea.vmem %s6330_s0, %s3304_s12  ;;  %v289_v34 = vsub.s32 2, %v284_v23  ;;  %v331_v38 = vsub.s32 3, %v284_v23  ;;  %s3239_s29 = sshll.u32 %s245_s28, 4  ;;  %s6290_s29 = int_to_ptr.vmem [resolvable:$true] %s3239_s29 }
  0x1b   : > { %3595 = vset.pattern.permute.xlu0 %v3759_v4  ;;  %314 = vperm.xlu1 %3592, %v255_v3   ;;  %v253_v28 = vld [vmem:[%s250_s15] sm:$0xf]  ;;  %s3225_s12 = scalar_lea.sflag [#allocation3], %s243_s19  ;;  %s3694_s13 = scalar_lea.vmem %s6290_s29, 128 }
  0x1c   : > { %264 = vperm.xlu0 %3595, %v254_v1   ;;  %v286_v29 = vrot.slane %v253_v28, %v285_v24  ;;  %v328_v31 = vrot.slane %v253_v28, %v327_v27  ;;  %v290_v40 = vrot.slane %v253_v28, %v289_v34  ;;  %v332_v43 = vrot.slane %v253_v28, %v331_v38  ;;  %p3695_p11 = scmp.ne.s32.totalorder %s6290_s29, %s3694_s13  ;;  %s3767_s25 = smov [#allocation2]  }
  0x1d   : > { %v6372_v38 = vmov 2131351028   ;;  %s3698_s14 = sshll.u32 %s3767_s25, 4  ;;  %s3699_s14 = int_to_ptr.vmem [resolvable:$false] %s3698_s14 }
  0x1e   : > { %v296_v33 = vrot.slane %v286_v29, %v285_v24  ;;  %v338_v35 = vrot.slane %v328_v31, %v327_v27  ;;  %v300_v46 = vrot.slane %v290_v40, %v285_v24  ;;  %v342_v48 = vrot.slane %v332_v43, %v327_v27  ;;  %p3696_p12 = pnand %p3695_p11, %p3841_p5  ;;  %s3700_s15 = scalar_lea.vmem %s3699_s14, 256 }
  0x1f   : > { %3593 = vset.pattern.permute.xlu1 %v3759_v4  ;;  %p3701_p0 = scmp.lt.s32.totalorder %s6290_s29, %s3699_s14  ;;  %p3702_p1 = scmp.lt.s32.totalorder %s3700_s15, %s3694_s13 }
  0x20   : > { %269 = vperm.xlu0 %3595, %v255_v3   ;;  %279 = vperm.xlu1 %3593, %v257_v5   ;;  %p3697_p13 = pneg %p3696_p12 }
  0x21   : > { %p3703_p2 = por %p3702_p1, %p3701_p0 }
  0x23   : > { %p3704_p3 = pnand %p3703_p2, %p3697_p13 }
  0x24   : > { %274 = vperm.xlu0 %3595, %v256_v0   ;;  %3596 = vset.pattern.permute.xlu1 %v3758_v2 }
  0x25   : > { %322 = vperm.xlu1 %3596, %v257_v5  }
  0x28   : > { %366 = vperm.xlu0 %3595, %v259_v6  }
  0x29   : > { %3597 = vset.pattern.permute.xlu1 %v3759_v4 }
  0x2a   : > { %361 = vperm.xlu1 %3597, %v258_v7  }
  0x2c   : > { %1229 = vperm.xlu0 %3595, %v1223_v8  }
  0x2e   : > { %371 = vperm.xlu1 %3597, %v260_v9  }
  0x30   : > { %1239 = vperm.xlu0 %3595, %v1225_v10  }
  0x32   : > { %376 = vperm.xlu1 %3597, %v261_v11  }
  0x34   : > { %2193 = vperm.xlu0 %3595, %v3377_v12  }
  0x36   : > { %1234 = vperm.xlu1 %3597, %v1224_v13  }
  0x38   : > { %2203 = vperm.xlu0 %3595, %v3379_v14  }
  0x3a   : > { %1244 = vperm.xlu1 %3597, %v1226_v15  }
  0x3e   : > { %2198 = vperm.xlu1 %3597, %v3378_v16  }
  0x42   : > { %2208 = vperm.xlu1 %3597, %v3380_v17  }
  0x96   : > { %v311_v18 = vpop.permute.xlu1 %310  ;;  %v319_v19 = vpop.permute.xlu0 %318 }
  0x97   : > { %v347_v39 = vmul.f32 %v338_v35, %v319_v19  ;;  %v343_v59 = vmul.f32 %v338_v35, %v311_v18  ;;  %v344_v62 = vmul.f32 %v342_v48, %v311_v18  ;;  %v348_v0 = vmul.f32 %v342_v48, %v319_v19 }
  0x9a   : > { %v315_v21 = vpop.permute.xlu1 %314 }
  0x9b   : > { %v265_v22 = vpop.permute.xlu0 %264  ;;  %v345_v47 = vmul.f32 %v338_v35, %v315_v21  ;;  %v346_v53 = vmul.f32 %v342_v48, %v315_v21 }
  0x9c   : > { %v301_v55 = vmul.f32 %v296_v33, %v265_v22  ;;  %v302_v57 = vmul.f32 %v300_v46, %v265_v22 }
  0x9e   : > { %v351_v1 = vadd.f32 %v343_v59, %v301_v55  ;;  %v352_v2 = vadd.f32 %v344_v62, %v302_v57 }
  0x9f   : > { %v280_v25 = vpop.permute.xlu1 %279  ;;  %v270_v26 = vpop.permute.xlu0 %269 }
  0xa0   : > { %v303_v44 = vmul.f32 %v296_v33, %v270_v26  ;;  %v304_v49 = vmul.f32 %v300_v46, %v270_v26  ;;  %v307_v15 = vmul.f32 %v296_v33, %v280_v25  ;;  %v308_v18 = vmul.f32 %v300_v46, %v280_v25 }
  0xa1   : > { %v6348_v25 = vmov 683565275  }
  0xa2   : > { %v353_v51 = vadd.f32 %v345_v47, %v303_v44  ;;  %v354_v56 = vadd.f32 %v346_v53, %v304_v49  ;;  %v6344_v44 = vmov 920167782  }
  0xa3   : > { %v275_v32 = vpop.permute.xlu0 %274 }
  0xa4   : > { %v323_v30 = vpop.permute.xlu1 %322  ;;  %v305_v36 = vmul.f32 %v296_v33, %v275_v32  ;;  %v306_v60 = vmul.f32 %v300_v46, %v275_v32 }
  0xa5   : > { %v349_v11 = vmul.f32 %v338_v35, %v323_v30  ;;  %v350_v12 = vmul.f32 %v342_v48, %v323_v30  ;;  %v6366_v35 = vmov 2475754826   ;;  %v6342_v48 = vmov 1326507024  }
  0xa6   : > { %v355_v42 = vadd.f32 %v347_v39, %v305_v36  ;;  %v356_v6 = vadd.f32 %v348_v0, %v306_v60 }
  0xa7   : > { %v367_v50 = vpop.permute.xlu0 %366  ;;  %v357_v26 = vadd.f32 %v349_v11, %v307_v15  ;;  %v3922_v27 = vadd.f32 %v350_v12, %v308_v18 }
  0xa8   : > { %v3906_v54 = vadd.f32 %v367_v50, %v353_v51  ;;  %v3908_v61 = vadd.f32 %v367_v50, %v354_v56 }
  0xa9   : > { %v362_v37 = vpop.permute.xlu1 %361 }
  0xaa   : > { %6421 = vst [vmem:[#allocation6_spill] sm:$0xff] %v3906_v54  ;;  %v598_v63 = vand.u32 2139095040, %v3906_v54  ;;  %v702_v4 = vand.u32 2139095040, %v3908_v61  ;;  %v3912_v5 = vadd.f32 %v362_v37, %v351_v1  ;;  %v3914_v8 = vadd.f32 %v362_v37, %v352_v2 }
  0xac   : > { %v599_v7 = vshrl.u32 %v598_v63, 23  ;;  %6422 = vst [vmem:[#allocation7_spill] sm:$0xff] %v3914_v8  ;;  %v703_v13 = vshrl.u32 %v702_v4, 23  ;;  %v390_v14 = vand.u32 2139095040, %v3912_v5  ;;  %v494_v17 = vand.u32 2139095040, %v3914_v8 }
  0xad   : > { %v372_v41 = vpop.permute.xlu1 %371 }
  0xae   : > { %v3903_v45 = vadd.f32 %v372_v41, %v355_v42  ;;  %v3916_v9 = vadd.f32 %v372_v41, %v356_v6  ;;  %v3313_v16 = vadd.s32 4294967169, %v599_v7  ;;  %v3317_v23 = vadd.s32 4294967169, %v703_v13 }
  0xaf   : > { %v391_v24 = vshrl.u32 %v390_v14, 23  ;;  %v495_v29 = vshrl.u32 %v494_v17, 23  ;;  %v6346_v41 = vmov 2102212464  }
  0xb0   : > { %6420 = vst [vmem:[#allocation5_spill] sm:$0xff] %v3903_v45  ;;  %v806_v52 = vand.u32 2139095040, %v3903_v45  ;;  %6423 = vst [vmem:[#allocation8_spill] sm:$0xff] %v3916_v9  ;;  %v6337_v19 = vand.u32 2147483647, %v3903_v45  ;;  %v910_v21 = vand.u32 2139095040, %v3916_v9 }
  0xb1   : > { %v605_v28 = vadd.s32 1, %v3313_v16  ;;  %v6339_v57 = vand.u32 2147483647, %v3916_v9  ;;  %v709_v1 = vadd.s32 1, %v3317_v23  ;;  %v377_v4 = vpop.permute.xlu1 %376  ;;  %v3309_v11 = vadd.s32 4294967169, %v495_v29 }
  0xb2   : > { %v807_v58 = vshrl.u32 %v806_v52, 23  ;;  %v911_v31 = vshrl.u32 %v910_v21, 23  ;;  %v810_v32 = vand.u32 8388607, %v6337_v19  ;;  %v3949_v17 = vadd.f32 %v377_v4, %v357_v26 }
  0xb3   : > { %vm606_vm6 = vcmp.gt.s32.totalorder %v605_v28, 0  ;;  %v914_v15 = vand.u32 8388607, %v6339_v57  ;;  %v3305_v23 = vadd.s32 4294967169, %v391_v24  ;;  %vm710_vm7 = vcmp.gt.s32.totalorder %v709_v1, 0 }
  0xb4   : > { %v3321_v3 = vadd.s32 4294967169, %v807_v58  ;;  %v3325_v53 = vadd.s32 4294967169, %v911_v31  ;;  %v811_v58 = vor.u32 8388608, %v810_v32  ;;  %6424 = vst [vmem:[#allocation9_spill] sm:$0xff] %v3949_v17  ;;  %v6340_v31 = vand.u32 2147483647, %v3914_v8 }
  0xb5   : > { %v607_v32 = vsel %vm606_vm6, %v605_v28, 0  ;;  %v6434_v8 = vmov 1326507024  }
  0xb6   : > { %v813_v10 = vadd.s32 1, %v3321_v3  ;;  %v917_v0 = vadd.s32 1, %v3325_v53  ;;  %v3944_v13 = vshll.u32 %v811_v58, 8 }
  0xb8   : > { %vm814_vm0 = vcmp.gt.s32.totalorder %v813_v10, 0  ;;  %vm918_vm5 = vcmp.gt.s32.totalorder %v917_v0, 0 }
  0xb9   : > { %v815_v20 = vsel %vm814_vm0, %v813_v10, 0  ;;  %v919_v16 = vsel %vm918_vm5, %v917_v0, 0 }
  0xba   : > { %v817_v22 = vand.u32 31, %v815_v20  ;;  %v816_v33 = vshrl.u32 %v815_v20, 5 }
  0xbc   : > { %v818_v30 = vsub.s32 32, %v817_v22  ;;  %v820_v34 = vshll.u32 %v6348_v25, %v817_v22  ;;  %v823_v36 = vshll.u32 %v6366_v35, %v817_v22  ;;  %v826_v40 = vshll.u32 %v6372_v38, %v817_v22 }
  0xbd   : > { %v829_v43 = vshll.u32 %v6346_v41, %v817_v22  ;;  %v832_v47 = vshll.u32 %v6344_v44, %v817_v22  ;;  %vm835_vm1 = vcmp.lt.s32.totalorder %v816_v33, 1  ;;  %vm837_vm2 = vcmp.lt.s32.totalorder %v816_v33, 3 }
  0xbe   : > { %v821_v37 = vshrl.u32 %v6366_v35, %v818_v30  ;;  %v824_v39 = vshrl.u32 %v6372_v38, %v818_v30  ;;  %v827_v42 = vshrl.u32 %v6346_v41, %v818_v30  ;;  %v830_v46 = vshrl.u32 %v6344_v44, %v818_v30 }
  0xbf   : > { %v833_v49 = vshrl.u32 %v6342_v48, %v818_v30  ;;  %vm838_vm3 = vcmp.lt.s32.totalorder %v816_v33, 4  ;;  %vm836_vm4 = vcmp.lt.s32.totalorder %v816_v33, 2  ;;  %v819_v6 = vshrl.u32 %v6348_v25, %v818_v30 }
  0xc0   : > { %v822_v50 = vor.u32 %v821_v37, %v820_v34  ;;  %v825_v51 = vor.u32 %v824_v39, %v823_v36  ;;  %v828_v52 = vor.u32 %v827_v42, %v826_v40  ;;  %v831_v55 = vor.u32 %v830_v46, %v829_v43 }
  0xc1   : > { %v834_v56 = vor.u32 %v833_v49, %v832_v47  ;;  %v921_v22 = vand.u32 31, %v919_v16  ;;  %v3962_v34 = vadd.s32 1, %v3309_v11  ;;  %v915_v37 = vor.u32 8388608, %v914_v15 }
  0xc2   : > { %v843_v59 = vsel %vm835_vm1, %v822_v50, %v825_v51  ;;  %v844_v60 = vsel %vm838_vm3, %v831_v55, 920167782  ;;  %v847_v62 = vsel %vm835_vm1, %v825_v51, %v828_v52  ;;  %v840_v7 = vsel %vm838_vm3, %v828_v52, 2102212464 }
  0xc3   : > { %v848_v63 = vsel %vm838_vm3, %v834_v56, 1326507024  ;;  %v845_v2 = vsel %vm837_vm2, %v828_v52, %v844_v60  ;;  %v839_v14 = vsel %vm835_vm1, %v819_v6, %v822_v50  ;;  %v841_v18 = vsel %vm837_vm2, %v825_v51, %v840_v7 }
  0xc4   : > { %v849_v3 = vsel %vm837_vm2, %v831_v55, %v848_v63  ;;  %v846_v10 = vsel %vm836_vm4, %v843_v59, %v845_v2  ;;  %v922_v26 = vsub.s32 32, %v921_v22  ;;  %v842_v36 = vsel %vm836_vm4, %v839_v14, %v841_v18 }
  0xc5   : > { %v850_v12 = vsel %vm836_vm4, %v847_v62, %v849_v3  ;;  %v3953_v20 = vmul.u32.u64.low %v3944_v13, %v846_v10  ;;  %v3954_v21 = vmul.u32.u64.high %v3944_v13, %v846_v10, %v3953_v20  ;;  %v3965_v39 = vshrl.u32 %v919_v16, 5 }
  0xc6   : > { %v3958_v29 = vmul.u32.u64.low %v3944_v13, %v850_v12  ;;  %v3959_v30 = vmul.u32.u64.high %v3944_v13, %v850_v12, %v3958_v29  ;;  %v1014_v40 = vand.u32 2139095040, %v3949_v17  ;;  %v924_v24 = vshll.u32 %v6348_v25, %v921_v22 }
  0xc7   : > { %v925_v42 = vshrl.u32 %v6366_v35, %v922_v26  ;;  %v927_v43 = vshll.u32 %v6366_v35, %v921_v22  ;;  %v928_v46 = vshrl.u32 %v6372_v38, %v922_v26  ;;  %v930_v28 = vshll.u32 %v6372_v38, %v921_v22 }
  0xc8   : > { %v931_v47 = vshrl.u32 %v6346_v41, %v922_v26  ;;  %v933_v33 = vshll.u32 %v6346_v41, %v921_v22  ;;  %v934_v49 = vshrl.u32 %v6344_v44, %v922_v26  ;;  %v936_v52 = vshll.u32 %v6344_v44, %v921_v22 }
  0xc9   : > { %v926_v50 = vor.u32 %v925_v42, %v924_v24  ;;  %v929_v51 = vor.u32 %v928_v46, %v927_v43  ;;  %v937_v53 = vshrl.u32 %v6342_v48, %v922_v26  ;;  %v3978_v58 = vshll.u32 %v915_v37, 8 }
  0xca   : > { %v932_v55 = vor.u32 %v931_v47, %v930_v28  ;;  %v935_v56 = vor.u32 %v934_v49, %v933_v33  ;;  %v1015_v59 = vshrl.u32 %v1014_v40, 23  ;;  %v861_v60 = vadd.s32 1, %v3954_v21 }
  0xcb   : > { %v938_v62 = vor.u32 %v937_v53, %v936_v52  ;;  %vm939_vm8 = vcmp.lt.s32.totalorder %v3965_v39, 1  ;;  %vm942_vm9 = vcmp.lt.s32.totalorder %v3965_v39, 4  ;;  %vm860_vm10 = vc.u32 %v3959_v30, %v3953_v20 }
  0xcc   : > { %vm941_vm11 = vcmp.lt.s32.totalorder %v3965_v39, 3  ;;  %v947_v63 = vsel %vm939_vm8, %v926_v50, %v929_v51  ;;  %v948_v0 = vsel %vm942_vm9, %v935_v56, 920167782  ;;  %vm940_vm12 = vcmp.lt.s32.totalorder %v3965_v39, 2 }
  0xcd   : > { %v949_v2 = vsel %vm941_vm11, %v932_v55, %v948_v0  ;;  %v951_v3 = vsel %vm939_vm8, %v929_v51, %v932_v55  ;;  %v952_v6 = vsel %vm942_vm9, %v938_v62, 1326507024  ;;  %v711_v7 = vsel %vm710_vm7, %v709_v1, 0 }
  0xce   : > { %v950_v10 = vsel %vm940_vm12, %v947_v63, %v949_v2  ;;  %v953_v11 = vsel %vm941_vm11, %v935_v56, %v952_v6  ;;  %v4003_v12 = vadd.f32 %v377_v4, %v3922_v27  ;;  %v862_v14 = vsel %vm860_vm10, %v861_v60, %v3954_v21 }
  0xcf   : > { %v954_v15 = vsel %vm940_vm12, %v951_v3, %v953_v11  ;;  %v4009_v16 = vmul.u32.u64.low %v3978_v58, %v950_v10  ;;  %v4010_v18 = vmul.u32.u64.high %v3978_v58, %v950_v10, %v4009_v16  ;;  %v858_v1 = vmul.u32 %v3944_v13, %v842_v36 }
  0xd0   : > { %6425 = vst [vmem:[#allocation10_spill] sm:$0xff] %v4003_v12  ;;  %v4015_v22 = vmul.u32.u64.low %v3978_v58, %v954_v15  ;;  %v4016_v29 = vmul.u32.u64.high %v3978_v58, %v954_v15, %v4015_v22  ;;  %v3329_v37 = vadd.s32 4294967169, %v1015_v59  ;;  %v4018_v40 = vand.u32 31, %v607_v32 }
  0xd1   : > { %v397_v27 = vadd.s32 1, %v3305_v23  ;;  %v944_v4 = vsel %vm942_vm9, %v932_v55, 2102212464  ;;  %v4023_v24 = vadd.s32 %v862_v14, %v858_v1  ;;  %v923_v42 = vshrl.u32 %v6348_v25, %v922_v26 }
  0xd2   : > { %6426 = vst [vmem:[#allocation11_spill] sm:$0xff] %v4018_v40  ;;  %v1021_v43 = vadd.s32 1, %v3329_v37  ;;  %v4028_v13 = vand.u32 8388607, %v6340_v31  ;;  %v4030_v36 = vshrl.u32 %v607_v32, 5  ;;  %v4032_v46 = vshrl.u32 %v711_v7, 5 }
  0xd3   : > { %v4034_v28 = vand.u32 31, %v711_v7  ;;  %vm502_vm13 = vcmp.gt.s32.totalorder %v3962_v34, 0  ;;  %v943_v23 = vsel %vm939_vm8, %v923_v42, %v926_v50  ;;  %v945_v47 = vsel %vm941_vm11, %v929_v51, %v944_v4 }
  0xd4   : > { %vm1022_vm14 = vcmp.gt.s32.totalorder %v1021_v43, 0  ;;  %v1118_v26 = vand.u32 2139095040, %v4003_v12  ;;  %v4043_v33 = vsub.s32 32, %v4018_v40  ;;  %v4047_v32 = vshll.u32 %v6346_v41, %v4018_v40 }
  0xd5   : > { %vm398_vm15 = vcmp.gt.s32.totalorder %v397_v27, 0  ;;  %v1023_v49 = vsel %vm1022_vm14, %v1021_v43, 0  ;;  %v4050_v52 = vsel %vm502_vm13, %v3962_v34, 0  ;;  %v864_v50 = vadd.s32 536870912, %v4023_v24 }
  0xd6   : > { %6427 = vst [vmem:[#allocation12_spill] sm:$0xff] %v4043_v33  ;;  %v965_v53 = vadd.s32 1, %v4010_v18  ;;  %v1025_v51 = vand.u32 31, %v1023_v49  ;;  %v4056_v55 = vshll.u32 %v6344_v44, %v4018_v40  ;;  %v4059_v56 = vsub.s32 32, %v4034_v28 }
  0xd7   : > { %v946_v59 = vsel %vm940_vm12, %v943_v23, %v945_v47  ;;  %vm964_vm0 = vc.u32 %v4016_v29, %v4009_v16  ;;  %v4067_v34 = vshll.u32 %v6346_v41, %v4034_v28  ;;  %v4071_v60 = vshll.u32 %v6344_v44, %v4034_v28 }
  0xd8   : > { %v4073_v62 = vsub.s32 32, %v1025_v51  ;;  %v1119_v63 = vshrl.u32 %v1118_v26, 23  ;;  %v4077_v0 = vshrl.u32 %v6344_v44, %v4043_v33  ;;  %v4081_v39 = vshrl.u32 %v6342_v48, %v4043_v33 }
  0xd9   : > { %v4084_v2 = vand.u32 31, %v4050_v52  ;;  %v6338_v3 = vand.u32 2147483647, %v3949_v17  ;;  %v4087_v6 = vshrl.u32 %v864_v50, 30  ;;  %v962_v7 = vmul.u32 %v3978_v58, %v946_v59 }
  0xda   : > { %v966_v10 = vsel %vm964_vm0, %v965_v53, %v4010_v18  ;;  %v1029_v11 = vshrl.u32 %v6366_v35, %v4073_v62  ;;  %v1032_v14 = vshrl.u32 %v6372_v38, %v4073_v62  ;;  %v1035_v15 = vshrl.u32 %v6346_v41, %v4073_v62 }
  0xdb   : > { %6428 = vst [vmem:[#allocation13_spill] sm:$0xff] %v4087_v6  ;;  %v1037_v1 = vshll.u32 %v6346_v41, %v1025_v51  ;;  %v1038_v22 = vshrl.u32 %v6344_v44, %v4073_v62  ;;  %v4100_v37 = vshrl.u32 %v1023_v49, 5  ;;  %v1028_v58 = vshll.u32 %v6348_v25, %v1025_v51 }
  0xdc   : > { %v1031_v18 = vshll.u32 %v6366_v35, %v1025_v51  ;;  %v3333_v4 = vadd.s32 4294967169, %v1119_v63  ;;  %v4104_v42 = vadd.s32 %v966_v10, %v962_v7  ;;  %v1018_v43 = vand.u32 8388607, %v6338_v3 }
  0xdd   : > { %v1034_v23 = vshll.u32 %v6372_v38, %v1025_v51  ;;  %v1039_v47 = vor.u32 %v1038_v22, %v1037_v1  ;;  %v1030_v26 = vor.u32 %v1029_v11, %v1028_v58  ;;  %v1040_v53 = vshll.u32 %v6344_v44, %v1025_v51 }
  0xde   : > { %v1033_v50 = vor.u32 %v1032_v14, %v1031_v18  ;;  %v1041_v49 = vshrl.u32 %v6342_v48, %v4073_v62  ;;  %v399_v59 = vsel %vm398_vm15, %v397_v27, 0  ;;  %v4114_v19 = vsub.s32 32, %v4084_v2 }
  0xdf   : > { %v866_v63 = vshll.u32 %v4087_v6, 30  ;;  %v1036_v7 = vor.u32 %v1035_v15, %v1034_v23  ;;  %v726_v10 = vshrl.u32 %v6344_v44, %v4059_v56  ;;  %vm1046_vm1 = vcmp.lt.s32.totalorder %v4100_v37, 4 }
  0xe0   : > { %v1042_v3 = vor.u32 %v1041_v49, %v1040_v53  ;;  %v1125_v11 = vadd.s32 1, %v3333_v4  ;;  %v4122_v51 = vshrl.u32 %v6342_v48, %v4059_v56  ;;  %vm1043_vm2 = vcmp.lt.s32.totalorder %v4100_v37, 1 }
  0xe1   : > { %v1052_v27 = vsel %vm1046_vm1, %v1039_v47, 920167782  ;;  %v6341_v14 = vand.u32 2147483647, %v4003_v12  ;;  %v968_v15 = vadd.s32 536870912, %v4104_v42  ;;  %v1019_v1 = vor.u32 8388608, %v1018_v43 }
  0xe2   : > { %vm1045_vm3 = vcmp.lt.s32.totalorder %v4100_v37, 3  ;;  %v1051_v22 = vsel %vm1043_vm2, %v1030_v26, %v1033_v50  ;;  %v518_v58 = vshrl.u32 %v6344_v44, %v4114_v19  ;;  %v4135_v18 = vsub.s32 %v4023_v24, %v866_v63 }
  0xe3   : > { %v1053_v4 = vsel %vm1045_vm3, %v1036_v7, %v1052_v27  ;;  %v1056_v23 = vsel %vm1046_vm1, %v1042_v3, 1326507024  ;;  %vm1044_vm4 = vcmp.lt.s32.totalorder %v4100_v37, 2  ;;  %v1055_v43 = vsel %vm1043_vm2, %v1033_v50, %v1036_v7 }
  0xe4   : > { %v1057_v53 = vsel %vm1045_vm3, %v1039_v47, %v1056_v23  ;;  %vm1126_vm5 = vcmp.gt.s32.totalorder %v1125_v11, 0  ;;  %v4146_v49 = vshrl.u32 %v399_v59, 5  ;;  %v517_v24 = vshll.u32 %v6346_v41, %v4084_v2 }
  0xe5   : > { %v1054_v63 = vsel %vm1044_vm4, %v1051_v22, %v1053_v4  ;;  %v1122_v3 = vand.u32 8388607, %v6341_v14  ;;  %v4154_v27 = vand.u32 31, %v399_v59  ;;  %v4157_v57 = vshrl.u32 %v4050_v52, 5 }
  0xe6   : > { %v4159_v31 = vshrl.u32 %v968_v15, 30  ;;  %v4161_v47 = vshll.u32 %v1019_v1, 8  ;;  %v4163_v23 = vor.u32 %v518_v58, %v517_v24  ;;  %v4167_v21 = vshrl.u32 %v6342_v48, %v4114_v19 }
  0xe7   : > { %v1058_v22 = vsel %vm1044_vm4, %v1055_v43, %v1057_v53  ;;  %v1127_v4 = vsel %vm1126_vm5, %v1125_v11, 0  ;;  %v869_v59 = vsub.s32 0, %v4135_v18  ;;  %v4179_v1 = vor.u32 %v4077_v0, %v4047_v32 }
  0xe8   : > { %6429 = vst [vmem:[#allocation14_spill] sm:$0xff] %v4159_v31  ;;  %v4173_v14 = vmul.u32.u64.low %v4161_v47, %v1054_v63  ;;  %v4174_v52 = vmul.u32.u64.high %v4161_v47, %v1054_v63, %v4173_v14  ;;  %v1129_v15 = vand.u32 31, %v1127_v4  ;;  %v4185_v24 = vshll.u32 %v6344_v44, %v4084_v2 }
  0xe9   : > { %v1123_v11 = vor.u32 8388608, %v1122_v3  ;;  %v970_v43 = vshll.u32 %v4159_v31, 30  ;;  %v1048_v53 = vsel %vm1046_vm1, %v1036_v7, 2102212464  ;;  %v4195_v32 = vor.u32 %v726_v10, %v4067_v34 }
  0xea   : > { %6430 = vst [vmem:[#allocation15_spill] sm:$0xff] %v4173_v14  ;;  %v4191_v63 = vmul.u32.u64.low %v4161_v47, %v1058_v22  ;;  %v4192_v48 = vmul.u32.u64.high %v4161_v47, %v1058_v22, %v4191_v63  ;;  %vm526_vm6 = vcmp.lt.s32.totalorder %v4157_v57, 4  ;;  %v1027_v0 = vshrl.u32 %v6348_v25, %v4073_v62 }
  0xeb   : > { %v1130_v58 = vsub.s32 32, %v1129_v15  ;;  %v4205_v7 = vsel %vm526_vm6, %v4163_v23, 920167782  ;;  %v4208_v22 = vmin.u32 %v869_v59, %v4135_v18  ;;  %v508_v34 = vshll.u32 %v6348_v25, %v4084_v2 }
  0xec   : > { %v1047_v10 = vsel %vm1043_vm2, %v1027_v0, %v1030_v26  ;;  %v1049_v62 = vsel %vm1045_vm3, %v1033_v50, %v1048_v53  ;;  %v4216_v63 = vshll.u32 %v1123_v11, 8  ;;  %v509_v3 = vshrl.u32 %v6366_v35, %v4114_v19 }
  0xed   : > { %v4221_v44 = vsub.s32 %v4104_v42, %v970_v43  ;;  %v1133_v59 = vshrl.u32 %v6366_v35, %v1130_v58  ;;  %v511_v41 = vshll.u32 %v6366_v35, %v4084_v2  ;;  %v512_v25 = vshrl.u32 %v6372_v38, %v4114_v19 }
  0xee   : > { %v6431_v26 = vmov 683565275   ;;  %v1135_v50 = vshll.u32 %v6366_v35, %v1129_v15  ;;  %v1136_v11 = vshrl.u32 %v6372_v38, %v1130_v58  ;;  %v6432_v53 = vmov 2102212464  }
  0xef   : > { %v1132_v0 = vshll.u32 %v6431_v26, %v1129_v15  ;;  %v1139_v6 = vshrl.u32 %v6432_v53, %v1130_v58  ;;  %v1050_v42 = vsel %vm1044_vm4, %v1047_v10, %v1049_v62  ;;  %v1069_v43 = vadd.s32 1, %v4174_v52 }
  0xf0   : > { %v1128_v31 = vshrl.u32 %v1127_v4, 5  ;;  %v1138_v12 = vshll.u32 %v6372_v38, %v1129_v15  ;;  %v1137_v45 = vor.u32 %v1136_v11, %v1135_v50  ;;  %v1141_v9 = vshll.u32 %v6432_v53, %v1129_v15 }
  0xf1   : > { %v1134_v17 = vor.u32 %v1133_v59, %v1132_v0  ;;  %v6433_v33 = vmov 920167782   ;;  %vm1068_vm7 = vc.u32 %v4192_v48, %v4173_v14  ;;  %v1145_v37 = vshrl.u32 %v6434_v8, %v1130_v58 }
  0xf2   : > { %v1142_v40 = vshrl.u32 %v6433_v33, %v1130_v58  ;;  %v1140_v35 = vor.u32 %v1139_v6, %v1138_v12  ;;  %v1144_v54 = vshll.u32 %v6433_v33, %v1129_v15  ;;  %v973_v10 = vsub.s32 0, %v4221_v44 }
  0xf3   : > { %v1066_v4 = vmul.u32 %v4161_v47, %v1050_v42  ;;  %v510_v38 = vor.u32 %v509_v3, %v508_v34  ;;  %vm1147_vm8 = vcmp.lt.s32.totalorder %v1128_v31, 1  ;;  %vm1150_vm9 = vcmp.lt.s32.totalorder %v1128_v31, 4 }
  0xf4   : > { %v1143_v62 = vor.u32 %v1142_v40, %v1141_v9  ;;  %v1146_v59 = vor.u32 %v1145_v37, %v1144_v54  ;;  %v515_v0 = vshrl.u32 %v6432_v53, %v4114_v19  ;;  %v1070_v50 = vsel %vm1068_vm7, %v1069_v43, %v4174_v52 }
  0xf5   : > { %vm1149_vm10 = vcmp.lt.s32.totalorder %v1128_v31, 3  ;;  %v1155_v12 = vsel %vm1147_vm8, %v1134_v17, %v1137_v45  ;;  %vm1148_vm11 = vcmp.lt.s32.totalorder %v1128_v31, 2  ;;  %v1152_v15 = vsel %vm1150_vm9, %v1140_v35, 2102212464 }
  0xf6   : > { %v1156_v6 = vsel %vm1150_vm9, %v1143_v62, 920167782  ;;  %v1159_v14 = vsel %vm1147_vm8, %v1137_v45, %v1140_v35  ;;  %v1131_v9 = vshrl.u32 %v6431_v26, %v1130_v58  ;;  %v1160_v40 = vsel %vm1150_vm9, %v1146_v59, 1326507024 }
  0xf7   : > { %v1157_v11 = vsel %vm1149_vm10, %v1140_v35, %v1156_v6  ;;  %v6435_v47 = vmov 2131351028   ;;  %v4253_v34 = vadd.s32 %v1070_v50, %v1066_v4  ;;  %v1161_v52 = vsel %vm1149_vm10, %v1143_v62, %v1160_v40 }
  0xf8   : > { %v1158_v54 = vsel %vm1148_vm11, %v1155_v12, %v1157_v11  ;;  %v514_v3 = vshll.u32 %v6435_v47, %v4084_v2  ;;  %v1151_v37 = vsel %vm1147_vm8, %v1131_v9, %v1134_v17  ;;  %v1153_v6 = vsel %vm1149_vm10, %v1137_v45, %v1152_v15 }
  0xf9   : > { %v4256_v42 = vmul.u32.u64.low %v4216_v63, %v1158_v54  ;;  %v4257_v43 = vmul.u32.u64.high %v4216_v63, %v1158_v54, %v4256_v42  ;;  %v1162_v35 = vsel %vm1148_vm11, %v1159_v14, %v1161_v52  ;;  %v513_v58 = vor.u32 %v512_v25, %v511_v41 }
  0xfa   : > { %vm630_vm12 = vcmp.lt.s32.totalorder %v4030_v36, 4  ;;  %v3326_v59 = vmin.u32 %v973_v10, %v4221_v44  ;;  %v4265_v2 = vmul.u32.u64.low %v4216_v63, %v1162_v35  ;;  %v4266_v4 = vmul.u32.u64.high %v4216_v63, %v1162_v35, %v4265_v2 }
  0xfb   : > { %v516_v62 = vor.u32 %v515_v0, %v514_v3  ;;  %v730_v50 = vor.u32 %v4122_v51, %v4071_v60  ;;  %v6436_v12 = vor.u32 %v4167_v21, %v4185_v24  ;;  %v499_v25 = vor.u32 8388608, %v4028_v13 }
  0xfc   : > { %vm523_vm13 = vcmp.lt.s32.totalorder %v4157_v57, 1  ;;  %v1072_v41 = vadd.s32 536870912, %v4253_v34  ;;  %v1154_v17 = vsel %vm1148_vm11, %v1151_v37, %v1153_v6  ;;  %v1173_v14 = vadd.s32 1, %v4257_v43 }
  0xfd   : > { %v536_v45 = vsel %vm526_vm6, %v6436_v12, 1326507024  ;;  %vm525_vm14 = vcmp.lt.s32.totalorder %v4157_v57, 3  ;;  %vm734_vm15 = vcmp.lt.s32.totalorder %v4032_v46, 4  ;;  %v507_v21 = vshrl.u32 %v6431_v26, %v4114_v19 }
  0xfe   : > { %v531_v60 = vsel %vm523_vm13, %v510_v38, %v513_v58  ;;  %v533_v13 = vsel %vm525_vm14, %v516_v62, %v4205_v7  ;;  %v535_v31 = vsel %vm523_vm13, %v513_v58, %v516_v62  ;;  %v871_v51 = vclz %v4208_v22 }
  0xff   : > { %v975_v24 = vclz %v3326_v59  ;;  %vm1172_vm0 = vc.u32 %v4266_v4, %v4256_v42  ;;  %v528_v10 = vsel %vm526_vm6, %v516_v62, 2102212464  ;;  %v1170_v19 = vmul.u32 %v4216_v63, %v1154_v17 }
 0x100   : > { %v1174_v0 = vsel %vm1172_vm0, %v1173_v14, %v4257_v43  ;;  %vm524_vm1 = vcmp.lt.s32.totalorder %v4157_v57, 2  ;;  %v537_v7 = vsel %vm525_vm14, %v4163_v23, %v536_v45  ;;  %v4302_v15 = vshrl.u32 %v1072_v41, 30 }
 0x101   : > { %v534_v22 = vsel %vm524_vm1, %v531_v60, %v533_v13  ;;  %v538_v11 = vsel %vm524_vm1, %v535_v31, %v537_v7  ;;  %v539_v9 = vshll.u32 %v499_v25, 8  ;;  %v4309_v54 = vsub.s32 32, %v4154_v27 }
 0x102   : > { %v4311_v63 = vadd.s32 %v1174_v0, %v1170_v19  ;;  %v527_v40 = vsel %vm523_vm13, %v507_v21, %v510_v38  ;;  %v529_v23 = vsel %vm525_vm14, %v513_v58, %v528_v10  ;;  %v4319_v3 = vshll.u32 %v6432_v53, %v4154_v27 }
 0x103   : > { %v3323_v52 = vadd.s32 4294967294, %v871_v51  ;;  %v4321_v43 = vmul.u32.u64.low %v539_v9, %v538_v11  ;;  %v4322_v37 = vmul.u32.u64.high %v539_v9, %v538_v11, %v4321_v43  ;;  %v4327_v6 = vsel %vm630_vm12, %v4179_v1, 920167782 }
 0x104   : > { %v3327_v35 = vadd.s32 4294967294, %v975_v24  ;;  %v4329_v59 = vmul.u32.u64.low %v539_v9, %v534_v22  ;;  %v4330_v2 = vmul.u32.u64.high %v539_v9, %v534_v22, %v4329_v59  ;;  %v1074_v38 = vshll.u32 %v4302_v15, 30 }
 0x105   : > { %v530_v58 = vsel %vm524_vm1, %v527_v40, %v529_v23  ;;  %v6437_v62 = vand.u32 2147483647, %v3908_v61  ;;  %v6438_v45 = vmov 2475754826   ;;  %v1176_v41 = vadd.s32 536870912, %v4311_v63 }
 0x106   : > { %v717_v25 = vshrl.u32 %v6438_v45, %v4059_v56  ;;  %v716_v17 = vshll.u32 %v6431_v26, %v4034_v28  ;;  %v719_v14 = vshll.u32 %v6438_v45, %v4034_v28  ;;  %v720_v21 = vshrl.u32 %v6435_v47, %v4059_v56 }
 0x107   : > { %v706_v12 = vand.u32 8388607, %v6437_v62  ;;  %v744_v57 = vsel %vm734_vm15, %v730_v50, 1326507024  ;;  %v4351_v60 = vshll.u32 %v6433_v33, %v4154_v27  ;;  %vm3324_vm2 = vcmp.lt.s32.totalorder %v3323_v52, 0 }
 0x108   : > { %vm548_vm3 = vc.u32 %v4322_v37, %v4329_v59  ;;  %vm3328_vm4 = vcmp.lt.s32.totalorder %v3327_v35, 0  ;;  %v549_v13 = vadd.s32 1, %v4330_v2  ;;  %v718_v31 = vor.u32 %v717_v25, %v716_v17 }
 0x109   : > { %v721_v51 = vor.u32 %v720_v21, %v719_v14  ;;  %v4357_v24 = vsub.s32 %v4253_v34, %v1074_v38  ;;  %v546_v10 = vmul.u32 %v539_v9, %v530_v58  ;;  %v722_v50 = vshll.u32 %v6435_v47, %v4034_v28 }
 0x10a   : > { %v723_v19 = vshrl.u32 %v6432_v53, %v4059_v56  ;;  %v740_v0 = vsel %vm734_vm15, %v4195_v32, 920167782  ;;  %v4366_v7 = vshrl.u32 %v1176_v41, 30  ;;  %v550_v22 = vsel %vm548_vm3, %v549_v13, %v4330_v2 }
 0x10b   : > { %v707_v11 = vor.u32 8388608, %v706_v12  ;;  %v551_v40 = vadd.s32 %v550_v22, %v546_v10  ;;  %vm731_vm5 = vcmp.lt.s32.totalorder %v4032_v46, 1  ;;  %vm733_vm6 = vcmp.lt.s32.totalorder %v4032_v46, 3 }
 0x10c   : > { %v724_v23 = vor.u32 %v723_v19, %v722_v50  ;;  %v874_v28 = vsel %vm3324_vm2, 0, %v3323_v52  ;;  %v4373_v34 = vsel %vm3328_vm4, 0, %v3327_v35  ;;  %v739_v9 = vsel %vm731_vm5, %v718_v31, %v721_v51 }
 0x10d   : > { %v745_v43 = vsel %vm733_vm6, %v4195_v32, %v744_v57  ;;  %v1077_v2 = vsub.s32 0, %v4357_v24  ;;  %v552_v38 = vadd.s32 536870912, %v551_v40  ;;  %v715_v58 = vshrl.u32 %v6431_v26, %v4059_v56 }
 0x10e   : > { %v741_v62 = vsel %vm733_vm6, %v724_v23, %v740_v0  ;;  %vm732_vm7 = vcmp.lt.s32.totalorder %v4032_v46, 2  ;;  %v736_v52 = vsel %vm734_vm15, %v724_v23, 2102212464  ;;  %v743_v35 = vsel %vm731_vm5, %v721_v51, %v724_v23 }
 0x10f   : > { %v747_v12 = vshll.u32 %v707_v11, 8  ;;  %v1178_v32 = vshll.u32 %v4366_v7, 30  ;;  %v4391_v25 = vshrl.u32 %v552_v38, 30  ;;  %v742_v41 = vsel %vm732_vm7, %v739_v9, %v741_v62 }
 0x110   : > { %v746_v56 = vsel %vm732_vm7, %v743_v35, %v745_v43  ;;  %v879_v17 = vsub.s32 4294967266, %v874_v28  ;;  %v983_v14 = vsub.s32 4294967266, %v4373_v34  ;;  %v3330_v13 = vmin.u32 %v1077_v2, %v4357_v24 }
 0x111   : > { %v4398_v21 = vmul.u32.u64.low %v747_v12, %v746_v56  ;;  %v4399_v57 = vmul.u32.u64.high %v747_v12, %v746_v56, %v4398_v21  ;;  %v554_v10 = vshll.u32 %v4391_v25, 30  ;;  %v735_v50 = vsel %vm731_vm5, %v715_v58, %v718_v31 }
 0x112   : > { %v737_v19 = vsel %vm733_vm6, %v721_v51, %v736_v52  ;;  %v414_v0 = vshrl.u32 %v6433_v33, %v4309_v54  ;;  %v417_v22 = vshrl.u32 %v6434_v8, %v4309_v54  ;;  %vm422_vm8 = vcmp.lt.s32.totalorder %v4146_v49, 4 }
 0x113   : > { %v4411_v11 = vmul.u32.u64.low %v747_v12, %v742_v41  ;;  %v4412_v23 = vmul.u32.u64.high %v747_v12, %v742_v41, %v4411_v11  ;;  %v875_v9 = vsub.s32 32, %v874_v28  ;;  %v4417_v43 = vsub.s32 %v4311_v63, %v1178_v32 }
 0x114   : > { %v4419_v31 = vsub.s32 %v551_v40, %v554_v10  ;;  %v880_v2 = vadd.s32 127, %v879_v17  ;;  %v979_v51 = vsub.s32 32, %v4373_v34  ;;  %v984_v38 = vadd.s32 127, %v983_v14 }
 0x115   : > { %v738_v58 = vsel %vm732_vm7, %v735_v50, %v737_v19  ;;  %v859_v62 = vadd.s32 %v3953_v20, %v3959_v30  ;;  %v1079_v52 = vclz %v3330_v13  ;;  %vm756_vm9 = vc.u32 %v4399_v57, %v4411_v11 }
 0x116   : > { %v557_v35 = vsub.s32 0, %v4419_v31  ;;  %v4430_v63 = vor.u32 %v414_v0, %v4319_v3  ;;  %v418_v40 = vor.u32 %v417_v22, %v4351_v60  ;;  %v963_v32 = vadd.s32 %v4009_v16, %v4016_v29 }
 0x117   : > { %v757_v46 = vadd.s32 1, %v4412_v23  ;;  %v877_v41 = vshrl.u32 %v859_v62, %v875_v9  ;;  %v1181_v56 = vsub.s32 0, %v4417_v43  ;;  %v754_v30 = vmul.u32 %v747_v12, %v738_v58 }
 0x118   : > { %v3310_v20 = vmin.u32 %v557_v35, %v4419_v31  ;;  %v881_v17 = vshll.u32 %v880_v2, 23  ;;  %v981_v14 = vshrl.u32 %v963_v32, %v979_v51  ;;  %v985_v21 = vshll.u32 %v984_v38, 23 }
 0x119   : > { %v758_v13 = vsel %vm756_vm9, %v757_v46, %v4412_v23  ;;  %v876_v3 = vshll.u32 %v4135_v18, %v874_v28  ;;  %v3331_v10 = vadd.s32 4294967294, %v1079_v52  ;;  %v6439_v16 = vor.u32 %v4081_v39, %v4056_v55 }
 0x11a   : > { %v559_v60 = vclz %v3310_v20  ;;  %v759_v50 = vadd.s32 %v758_v13, %v754_v30  ;;  %v428_v12 = vsel %vm422_vm8, %v4430_v63, 920167782  ;;  %v432_v19 = vsel %vm422_vm8, %v418_v40, 1326507024 }
 0x11b   : > { %v4445_v29 = vsel %vm630_vm12, %v6439_v16, 1326507024  ;;  %v980_v18 = vshll.u32 %v4221_v44, %v4373_v34  ;;  %v4454_v28 = vor.u32 %v877_v41, %v876_v3  ;;  %v3334_v0 = vmin.u32 %v1181_v56, %v4417_v43 }
 0x11c   : > { %v3311_v22 = vadd.s32 4294967294, %v559_v60  ;;  %v760_v55 = vadd.s32 536870912, %v759_v50  ;;  %v4457_v39 = vor.u32 4788187, %v881_v17  ;;  %v986_v9 = vor.u32 4788187, %v985_v21 }
 0x11d   : > { %v982_v23 = vor.u32 %v981_v14, %v980_v18  ;;  %v387_v2 = vand.u32 2147483647, %v3912_v5  ;;  %vm3332_vm10 = vcmp.lt.s32.totalorder %v3331_v10, 0  ;;  %v411_v38 = vshrl.u32 %v6432_v53, %v4309_v54 }
 0x11e   : > { %vm3312_vm11 = vcmp.lt.s32.totalorder %v3311_v22, 0  ;;  %v4460_v51 = vshrl.u32 %v760_v55, 30  ;;  %v547_v44 = vadd.s32 %v4329_v59, %v4322_v37  ;;  %v405_v58 = vshrl.u32 %v6438_v45, %v4309_v54  ;;  %v6440_v55 = vld [vmem:[#allocation7_spill] sm:$0xff] }
 0x11f   : > { %v562_v34 = vsel %vm3312_vm11, 0, %v3311_v22  ;;  %v408_v62 = vshrl.u32 %v6435_v47, %v4309_v54  ;;  %v1183_v52 = vclz %v3334_v0  ;;  %v410_v32 = vshll.u32 %v6435_v47, %v4154_v27 }
 0x120   : > { %v563_v35 = vsub.s32 32, %v562_v34  ;;  %v567_v40 = vsub.s32 4294967266, %v562_v34  ;;  %v762_v46 = vshll.u32 %v4460_v51, 30  ;;  %v394_v41 = vand.u32 8388607, %v387_v2 }
 0x121   : > { %v404_v37 = vshll.u32 %v6431_v26, %v4154_v27  ;;  %v407_v59 = vshll.u32 %v6438_v45, %v4154_v27  ;;  %v564_v56 = vshll.u32 %v4419_v31, %v562_v34  ;;  %v412_v17 = vor.u32 %v411_v38, %v410_v32 }
 0x122   : > { %v565_v20 = vshrl.u32 %v547_v44, %v563_v35  ;;  %v568_v30 = vadd.s32 127, %v567_v40  ;;  %v989_v14 = vcvt.s32.f32 %v982_v23  ;;  %v4480_v21 = vsub.s32 %v759_v50, %v762_v46 }
 0x123   : > { %v406_v13 = vor.u32 %v405_v58, %v404_v37  ;;  %v409_v3 = vor.u32 %v408_v62, %v407_v59  ;;  %v987_v60 = vand.u32 2147483647, %v986_v9  ;;  %v4483_v16 = vsel %vm3332_vm10, 0, %v3331_v10 }
 0x124   : > { %v566_v18 = vor.u32 %v565_v20, %v564_v56  ;;  %v569_v0 = vshll.u32 %v568_v30, 23  ;;  %v4485_v22 = vadd.s32 4294967294, %v1183_v52  ;;  %vm493_vm13 = vcmp.lt.s32.totalorder %v6440_v55, 0 }
 0x125   : > { %v577_v27 = vsub.s32 4, %v4391_v25  ;;  %v765_v31 = vsub.s32 0, %v4480_v21  ;;  %v403_v50 = vshrl.u32 %v6431_v26, %v4309_v54  ;;  %v6441_v23 = vand.u32 2147483647, %v6440_v55 }
 0x126   : > { %v570_v10 = vor.u32 4788187, %v569_v0  ;;  %v395_v38 = vor.u32 8388608, %v394_v41  ;;  %vm419_vm15 = vcmp.lt.s32.totalorder %v4146_v49, 1  ;;  %v424_v44 = vsel %vm422_vm8, %v412_v17, 2102212464 }
 0x127   : > { %vm4494_vm14 = vcmp.le.f32.partialorder %v6441_v23, 0.7853982  ;;  %v573_v34 = vcvt.s32.f32 %v566_v18  ;;  %v3318_v58 = vmin.u32 %v765_v31, %v4480_v21  ;;  %vm421_vm0 = vcmp.lt.s32.totalorder %v4146_v49, 3  ;;  %v6444_v18 = vld [vmem:[#allocation15_spill] sm:$0xff] }
 0x128   : > { %v427_v62 = vsel %vm419_vm15, %v406_v13, %v409_v3  ;;  %v571_v54 = vand.u32 2147483647, %v570_v10  ;;  %v429_v52 = vsel %vm421_vm0, %v412_v17, %v428_v12  ;;  %v431_v35 = vsel %vm419_vm15, %v409_v3, %v412_v17 }
 0x129   : > { %v433_v40 = vsel %vm421_vm0, %v4430_v63, %v432_v19  ;;  %v767_v32 = vclz %v3318_v58  ;;  %vm420_vm1 = vcmp.lt.s32.totalorder %v4146_v49, 2  ;;  %v423_v46 = vsel %vm419_vm15, %v403_v50, %v406_v13  ;;  %v6445_v49 = vld [vmem:[#allocation6_spill] sm:$0xff] }
 0x12a   : > { %v425_v41 = vsel %vm421_vm0, %v409_v3, %v424_v44  ;;  %v574_v37 = vmul.f32 %v573_v34, %v571_v54  ;;  %v430_v59 = vsel %vm420_vm1, %v427_v62, %v429_v52  ;;  %v434_v56 = vsel %vm420_vm1, %v431_v35, %v433_v40  ;;  %v6446_v35 = vld [vmem:[#allocation11_spill] sm:$0xff] }
 0x12b   : > { %v435_v20 = vshll.u32 %v395_v38, 8  ;;  %v4505_v30 = vmul.f32 %v989_v14, %v987_v60  ;;  %v4509_v0 = vadd.s32 %v6444_v18, %v4192_v48  ;;  %v1083_v12 = vsub.s32 32, %v4483_v16 }
 0x12c   : > { %v3319_v17 = vadd.s32 4294967294, %v767_v32  ;;  %v575_v31 = vxor.u32 2147483648, %v574_v37  ;;  %v595_v13 = vand.u32 2147483647, %v6445_v49  ;;  %v426_v3 = vsel %vm420_vm1, %v423_v46, %v425_v41 }
 0x12d   : > { %v4512_v63 = vmul.u32.u64.low %v435_v20, %v434_v56  ;;  %v4513_v19 = vmul.u32.u64.high %v435_v20, %v434_v56, %v4512_v63  ;;  %v4516_v50 = vmul.u32.u64.low %v435_v20, %v430_v59  ;;  %v4517_v23 = vmul.u32.u64.high %v435_v20, %v430_v59, %v4516_v50 }
 0x12e   : > { %vm3320_vm2 = vcmp.lt.s32.totalorder %v3319_v17, 0  ;;  %vm3336_vm3 = vcmp.lt.s32.totalorder %v4485_v22, 0  ;;  %v576_v48 = vsel %vm493_vm13, %v575_v31, %v574_v37  ;;  %v4526_v14 = vsel %vm493_vm13, %v577_v27, %v4391_v25 }
 0x12f   : > { %v770_v60 = vsel %vm3320_vm2, 0, %v3319_v17  ;;  %v579_v10 = vsel %vm4494_vm14, %v6440_v55, %v576_v48  ;;  %v755_v38 = vadd.s32 %v4411_v11, %v4399_v57  ;;  %v442_v62 = vmul.u32 %v435_v20, %v426_v3  ;;  %v6447_v57 = vld [vmem:[#allocation12_spill] sm:$0xff] }
 0x130   : > { %v771_v44 = vsub.s32 32, %v770_v60  ;;  %v775_v34 = vsub.s32 4294967266, %v770_v60  ;;  %v772_v58 = vshll.u32 %v4480_v21, %v770_v60  ;;  %vm444_vm4 = vc.u32 %v4513_v19, %v4516_v50 }
 0x131   : > { %v602_v25 = vand.u32 8388607, %v595_v13  ;;  %3598 = vcosq.f32 %v579_v10  ;;  %v445_v52 = vadd.s32 1, %v4517_v23  ;;  %v612_v40 = vshll.u32 %v6431_v26, %v6446_v35 }
 0x132   : > { %v773_v27 = vshrl.u32 %v755_v38, %v771_v44  ;;  %v776_v54 = vadd.s32 127, %v775_v34  ;;  %v613_v11 = vshrl.u32 %v6438_v45, %v6447_v57  ;;  %v615_v21 = vshll.u32 %v6438_v45, %v6446_v35 }
 0x133   : > { %v616_v32 = vshrl.u32 %v6435_v47, %v6447_v57  ;;  %v446_v37 = vsel %vm444_vm4, %v445_v52, %v4517_v23  ;;  %v618_v59 = vshll.u32 %v6435_v47, %v6446_v35  ;;  %vm701_vm5 = vcmp.lt.s32.totalorder %v3908_v61, 0 }
 0x134   : > { %v774_v46 = vor.u32 %v773_v27, %v772_v58  ;;  %v777_v41 = vshll.u32 %v776_v54, 23  ;;  %v447_v56 = vadd.s32 %v446_v37, %v442_v62  ;;  %v614_v20 = vor.u32 %v613_v11, %v612_v40 }
 0x135   : > { %v617_v18 = vor.u32 %v616_v32, %v615_v21  ;;  %v619_v17 = vshrl.u32 %v6432_v53, %v6447_v57  ;;  %v4556_v31 = vsel %vm3336_vm3, 0, %v4485_v22  ;;  %3600 = vsinq.f32 %v579_v10 }
 0x136   : > { %v6448_v63 = vand.u32 2147483647, %v3908_v61  ;;  %v778_v23 = vor.u32 4788187, %v777_v41  ;;  %v603_v48 = vor.u32 8388608, %v602_v25  ;;  %v785_v60 = vsub.s32 4, %v4460_v51 }
 0x137   : > { %v448_v38 = vadd.s32 536870912, %v447_v56  ;;  %v620_v44 = vor.u32 %v619_v17, %v618_v59  ;;  %vm629_vm7 = vcmp.lt.s32.totalorder %v4030_v36, 3  ;;  %v781_v58 = vcvt.s32.f32 %v774_v46 }
 0x138   : > { %vm4560_vm6 = vcmp.le.f32.partialorder %v6448_v63, 0.7853982  ;;  %v779_v34 = vand.u32 2147483647, %v778_v23  ;;  %vm627_vm8 = vcmp.lt.s32.totalorder %v4030_v36, 1  ;;  %v641_v22 = vsel %vm629_vm7, %v4179_v1, %v4445_v29 }
 0x139   : > { %v4571_v10 = vshrl.u32 %v448_v38, 30  ;;  %vm628_vm9 = vcmp.lt.s32.totalorder %v4030_v36, 2  ;;  %v635_v62 = vsel %vm627_vm8, %v614_v20, %v617_v18  ;;  %v639_v25 = vsel %vm627_vm8, %v617_v18, %v620_v44 }
 0x13a   : > { %v782_v27 = vmul.f32 %v781_v58, %v779_v34  ;;  %v637_v54 = vsel %vm629_vm7, %v620_v44, %v4327_v6  ;;  %v642_v52 = vsel %vm628_vm9, %v639_v25, %v641_v22  ;;  %v643_v35 = vshll.u32 %v603_v48, 8 }
 0x13b   : > { %v1171_v1 = vadd.s32 %v4256_v42, %v4266_v4  ;;  %v1191_v29 = vsub.s32 4294967266, %v4556_v31  ;;  %v580_v40 = vsel %vm4494_vm14, 0, %v4526_v14  ;;  %v450_v11 = vshll.u32 %v4571_v10, 30  ;;  %v3599_v21 = vpop.eup %3598 }
 0x13c   : > { %v783_v32 = vxor.u32 2147483648, %v782_v27  ;;  %v632_v6 = vsel %vm630_vm12, %v620_v44, 2102212464  ;;  %v4592_v46 = vmul.u32.u64.low %v643_v35, %v642_v52  ;;  %v4593_v41 = vmul.u32.u64.high %v643_v35, %v642_v52, %v4592_v46 }
 0x13d   : > { %v1087_v37 = vsub.s32 4294967266, %v4483_v16  ;;  %v4596_v59 = vsub.s32 %v447_v56, %v450_v11  ;;  %v611_v42 = vshrl.u32 %v6431_v26, %v6447_v57  ;;  %v638_v4 = vsel %vm628_vm9, %v635_v62, %v637_v54 }
 0x13e   : > { %v1085_v9 = vshrl.u32 %v4509_v0, %v1083_v12  ;;  %v584_v14 = vadd.s32 3, %v580_v40  ;;  %v784_v17 = vsel %vm701_vm5, %v783_v32, %v782_v27  ;;  %v786_v63 = vsel %vm701_vm5, %v785_v60, %v4460_v51 }
 0x13f   : > { %v787_v56 = vsel %vm4560_vm6, %v3908_v61, %v784_v17  ;;  %v453_v57 = vsub.s32 0, %v4596_v59  ;;  %v631_v23 = vsel %vm627_vm8, %v611_v42, %v614_v20  ;;  %v633_v0 = vsel %vm629_vm7, %v617_v18, %v632_v6  ;;  %v3601_v12 = vpop.eup %3600 }
 0x140   : > { %v1192_v48 = vadd.s32 127, %v1191_v29  ;;  %3602 = vcosq.f32 %v787_v56  ;;  %v4618_v38 = vmul.u32.u64.low %v643_v35, %v638_v4  ;;  %v4619_v44 = vmul.u32.u64.high %v643_v35, %v638_v4, %v4618_v38 }
 0x141   : > { %v1088_v51 = vadd.s32 127, %v1087_v37  ;;  %v788_v60 = vsel %vm4560_vm6, 0, %v786_v63  ;;  %3604 = vsinq.f32 %v787_v56  ;;  %v3306_v34 = vmin.u32 %v453_v57, %v4596_v59 }
 0x142   : > { %v1084_v20 = vshll.u32 %v4357_v24, %v4483_v16  ;;  %v1187_v58 = vsub.s32 32, %v4556_v31  ;;  %v585_v18 = vand.u32 3, %v584_v14  ;;  %v634_v22 = vsel %vm628_vm9, %v631_v23, %v633_v0 }
 0x143   : > { %v588_v62 = vxor.u32 2147483648, %v3601_v12  ;;  %v591_v25 = vxor.u32 2147483648, %v3599_v21  ;;  %v455_v27 = vclz %v3306_v34  ;;  %vm652_vm12 = vc.u32 %v4593_v41, %v4618_v38 }
 0x144   : > { %v4632_v3 = vor.u32 %v1085_v9, %v1084_v20  ;;  %v1193_v54 = vshll.u32 %v1192_v48, 23  ;;  %v792_v52 = vadd.s32 3, %v788_v60  ;;  %v653_v29 = vadd.s32 1, %v4619_v44 }
 0x145   : > { %v1089_v40 = vshll.u32 %v1088_v51, 23  ;;  %v1188_v24 = vshll.u32 %v4417_v43, %v4556_v31  ;;  %vm583_vm10 = vweird.f32 %v6440_v55  ;;  %v3307_v36 = vadd.s32 4294967294, %v455_v27 }
 0x146   : > { %v650_v16 = vmul.u32 %v643_v35, %v634_v22  ;;  %v1189_v11 = vshrl.u32 %v1171_v1, %v1187_v58  ;;  %vm587_vm11 = vcmp.eq.s32.totalorder %v585_v18, 0  ;;  %vm590_vm13 = vcmp.eq.s32.totalorder %v585_v18, 2 }
 0x147   : > { %v654_v32 = vsel %vm652_vm12, %v653_v29, %v4619_v44  ;;  %v589_v6 = vsel %vm587_vm11, %v3599_v21, %v588_v62  ;;  %v592_v46 = vsel %vm590_vm13, %v591_v25, %v3601_v12  ;;  %vm791_vm14 = vweird.f32 %v3908_v61 }
 0x148   : > { %vm3308_vm15 = vcmp.lt.s32.totalorder %v3307_v36, 0  ;;  %v655_v37 = vadd.s32 %v654_v32, %v650_v16  ;;  %v1194_v42 = vor.u32 4788187, %v1193_v54  ;;  %vm586_vm0 = vcmp.lt.s32.totalorder %v585_v18, 2  ;;  %v6451_v32 = vld [vmem:[#allocation8_spill] sm:$0xff] }
 0x149   : > { %v793_v4 = vand.u32 3, %v792_v52  ;;  %v458_v9 = vsel %vm3308_vm15, 0, %v3307_v36  ;;  %v443_v43 = vadd.s32 %v4516_v50, %v4513_v19  ;;  %v1090_v17 = vor.u32 4788187, %v1089_v40 }
 0x14a   : > { %v459_v31 = vsub.s32 32, %v458_v9  ;;  %v463_v35 = vsub.s32 4294967266, %v458_v9  ;;  %v656_v1 = vadd.s32 536870912, %v655_v37  ;;  %v3603_v14 = vpop.eup %3602  ;;  %v1190_v63 = vor.u32 %v1189_v11, %v1188_v24 }
 0x14b   : > { %v593_v56 = vsel %vm586_vm0, %v589_v6, %v592_v46  ;;  %v460_v21 = vshll.u32 %v4596_v59, %v458_v9  ;;  %v3605_v57 = vpop.eup %3604  ;;  %v799_v23 = vxor.u32 2147483648, %v3603_v14  ;;  %v1195_v44 = vand.u32 2147483647, %v1194_v42 }
 0x14c   : > { %v461_v0 = vshrl.u32 %v443_v43, %v459_v31  ;;  %v464_v12 = vadd.s32 127, %v463_v35  ;;  %v4643_v48 = vshrl.u32 %v656_v1, 30  ;;  %vm795_vm1 = vcmp.eq.s32.totalorder %v793_v4, 0  ;;  %v6456_v1 = vld [vmem:[#allocation9_spill] sm:$0xff] }
 0x14d   : > { %v796_v51 = vxor.u32 2147483648, %v3605_v57  ;;  %vm798_vm2 = vcmp.eq.s32.totalorder %v793_v4, 2  ;;  %v1197_v20 = vcvt.s32.f32 %v1190_v63  ;;  %v594_v58 = vsel %vm583_vm10, nan, %v593_v56  ;;  %v6460_v63 = vld [vmem:[#allocation10_spill] sm:$0xff] }
 0x14e   : > { %v800_v19 = vsel %vm798_vm2, %v799_v23, %v3605_v57  ;;  %v462_v50 = vor.u32 %v461_v0, %v460_v21  ;;  %v465_v60 = vshll.u32 %v464_v12, 23  ;;  %v658_v34 = vshll.u32 %v4643_v48, 30 }
 0x14f   : > { %vm794_vm3 = vcmp.lt.s32.totalorder %v793_v4, 2  ;;  %v797_v59 = vsel %vm795_vm1, %v3603_v14, %v796_v51  ;;  %v883_v18 = vand.u32 2147483647, %v4457_v39  ;;  %v991_v27 = vxor.u32 2147483648, %v4505_v30 }
 0x150   : > { %v801_v22 = vsel %vm794_vm3, %v797_v59, %v800_v19  ;;  %v466_v62 = vor.u32 4788187, %v465_v60  ;;  %v659_v25 = vsub.s32 %v655_v37, %v658_v34  ;;  %v1091_v54 = vand.u32 2147483647, %v1090_v17 }
 0x151   : > { %v1198_v52 = vmul.f32 %v1197_v20, %v1195_v44  ;;  %v802_v29 = vsel %vm791_vm14, nan, %v801_v22  ;;  %v469_v36 = vcvt.s32.f32 %v462_v50  ;;  %v1093_v55 = vcvt.s32.f32 %v4632_v3  ;;  %v6466_v22 = vld [vmem:[#allocation14_spill] sm:$0xff] }
 0x152   : > { %v3424_v40 = vpack.c.bf16 %v802_v29, %v594_v58  ;;  %v467_v24 = vand.u32 2147483647, %v466_v62  ;;  %v661_v16 = vsub.s32 0, %v659_v25  ;;  %v885_v11 = vcvt.s32.f32 %v4454_v28  ;;  %v6455_v28 = vld [vmem:[#allocation5_spill] sm:$0xff] }
 0x153   : > { %vm909_vm4 = vcmp.lt.s32.totalorder %v6451_v32, 0  ;;  %v1094_v37 = vmul.f32 %v1093_v55, %v1091_v54  ;;  %v1199_v42 = vxor.u32 2147483648, %v1198_v52  ;;  %v6452_v9 = vand.u32 2147483647, %v6451_v32 }
 0x154   : > { %3425 = vmatprep.subr.bf16.mxu0 %v3424_v40  ;;  %v470_v39 = vmul.f32 %v469_v36, %v467_v24  ;;  %v3314_v6 = vmin.u32 %v661_v16, %v659_v25  ;;  %v992_v46 = vsel %vm909_vm4, %v991_v27, %v4505_v30  ;;  %v886_v61 = vmul.f32 %v885_v11, %v883_v18 }
 0x155   : > { %vm4660_vm5 = vcmp.le.f32.partialorder %v6452_v9, 0.7853982  ;;  %vm805_vm6 = vcmp.lt.s32.totalorder %v6455_v28, 0  ;;  %v6457_v30 = vand.u32 2147483647, %v6456_v1  ;;  %vm1013_vm8 = vcmp.lt.s32.totalorder %v6456_v1, 0 }
 0x156   : > { %v663_v4 = vclz %v3314_v6  ;;  %v995_v3 = vsel %vm4660_vm5, %v6451_v32, %v992_v46  ;;  %v471_v31 = vxor.u32 2147483648, %v470_v39  ;;  %v1095_v17 = vxor.u32 2147483648, %v1094_v37 }
 0x157   : > { %vm4670_vm7 = vcmp.le.f32.partialorder %v6457_v30, 0.7853982  ;;  %vm1117_vm9 = vcmp.lt.s32.totalorder %v6460_v63, 0  ;;  %v887_v56 = vxor.u32 2147483648, %v886_v61  ;;  %v6461_v21 = vand.u32 2147483647, %v6460_v63 }
 0x158   : > { %v3315_v35 = vadd.s32 4294967294, %v663_v4  ;;  %v1200_v23 = vsel %vm1117_vm9, %v1199_v42, %v1198_v52  ;;  %3606 = vcosq.f32 %v995_v3  ;;  %vm389_vm11 = vcmp.lt.s32.totalorder %v3912_v5, 0  ;;  %v6470_v4 = vld [vmem:[#allocation13_spill] sm:$0xff] }
 0x159   : > { %vm4678_vm12 = vcmp.le.f32.partialorder %v6461_v21, 0.7853982  ;;  %v473_v0 = vsub.s32 4, %v4571_v10  ;;  %v472_v44 = vsel %vm389_vm11, %v471_v31, %v470_v39  ;;  %v651_v51 = vadd.s32 %v4618_v38, %v4593_v41 }
 0x15a   : > { %vm3316_vm10 = vcmp.lt.s32.totalorder %v3315_v35, 0  ;;  %v1096_v60 = vsel %vm1013_vm8, %v1095_v17, %v1094_v37  ;;  %v1203_v34 = vsel %vm4678_vm12, %v6460_v63, %v1200_v23  ;;  %vm4697_vm13 = vcmp.le.f32.partialorder %v387_v2, 0.7853982 }
 0x15b   : > { %v666_v12 = vsel %vm3316_vm10, 0, %v3315_v35  ;;  %v993_v41 = vsub.s32 4, %v6466_v22  ;;  %v6375_v38 = vmov 0.0   ;;  %v888_v62 = vsel %vm805_vm6, %v887_v56, %v886_v61 }
 0x15c   : > { %v667_v19 = vsub.s32 32, %v666_v12  ;;  %v671_v50 = vsub.s32 4294967266, %v666_v12  ;;  %v668_v58 = vshll.u32 %v659_v25, %v666_v12  ;;  %1324 = vmatprep.mubr.f32.mxu0 %v6375_v38  ;;  %2287 = vmatprep.mubr.f32.mxu1 %v6375_v38  ;;  %3608 = vsinq.f32 %v995_v3 }
 0x15d   : > { %v475_v2 = vsel %vm4697_vm13, %v3912_v5, %v472_v44  ;;  %v1201_v27 = vsub.s32 4, %v4366_v7  ;;  %3610 = vcosq.f32 %v1203_v34  ;;  %v474_v25 = vsel %vm389_vm11, %v473_v0, %v4571_v10 }
 0x15e   : > { %v669_v59 = vshrl.u32 %v651_v51, %v667_v19  ;;  %v672_v18 = vadd.s32 127, %v671_v50  ;;  %v6467_v29 = vand.u32 2147483647, %v6455_v28  ;;  %v1099_v24 = vsel %vm4670_vm7, %v6456_v1, %v1096_v60 }
 0x15f   : > { %3612 = vsinq.f32 %v1203_v34  ;;  %v994_v10 = vsel %vm909_vm4, %v993_v41, %v6466_v22  ;;  %v476_v55 = vsel %vm4697_vm13, 0, %v474_v25  ;;  %v1202_v11 = vsel %vm1117_vm9, %v1201_v27, %v4366_v7 }
 0x160   : > { %v670_v54 = vor.u32 %v669_v59, %v668_v58  ;;  %v673_v52 = vshll.u32 %v672_v18, 23  ;;  %vm4715_vm14 = vcmp.le.f32.partialorder %v6467_v29, 0.7853982  ;;  %3614 = vcosq.f32 %v475_v2 }
 0x161   : > { %v891_v36 = vsel %vm4715_vm14, %v6455_v28, %v888_v62  ;;  %3616 = vsinq.f32 %v475_v2  ;;  %v1097_v39 = vsub.s32 4, %v4302_v15  ;;  %v681_v37 = vsub.s32 4, %v4643_v48 }
 0x162   : > { %v674_v16 = vor.u32 4788187, %v673_v52  ;;  %3618 = vcosq.f32 %v1099_v24  ;;  %v677_v46 = vcvt.s32.f32 %v670_v54  ;;  %v3607_v61 = vpop.eup %3606  ;;  %v996_v42 = vsel %vm4660_vm5, 0, %v994_v10 }
 0x163   : > { %3620 = vsinq.f32 %v1099_v24  ;;  %v889_v9 = vsub.s32 4, %v6470_v4  ;;  %v480_v3 = vadd.s32 3, %v476_v55  ;;  %v1204_v7 = vsel %vm4678_vm12, 0, %v1202_v11 }
 0x164   : > { %v675_v6 = vand.u32 2147483647, %v674_v16  ;;  %3622 = vcosq.f32 %v891_v36  ;;  %vm597_vm15 = vcmp.lt.s32.totalorder %v6445_v49, 0  ;;  %v1098_v35 = vsel %vm1013_vm8, %v1097_v39, %v4302_v15 }
 0x165   : > { %3624 = vsinq.f32 %v891_v36  ;;  %v682_v17 = vsel %vm597_vm15, %v681_v37, %v4643_v48  ;;  %v1000_v43 = vadd.s32 3, %v996_v42  ;;  %v1208_v21 = vadd.s32 3, %v1204_v7 }
 0x166   : > { %v678_v31 = vmul.f32 %v677_v46, %v675_v6  ;;  %v3609_v56 = vpop.eup %3608  ;;  %v890_v23 = vsel %vm805_vm6, %v889_v9, %v6470_v4  ;;  %v4748_v57 = vand.u32 3, %v480_v3  ;;  %vm4752_vm0 = vcmp.le.f32.partialorder %v595_v13, 0.7853982 }
 0x167   : > { %v3611_v0 = vpop.eup %3610  ;;  %v1100_v48 = vsel %vm4670_vm7, 0, %v1098_v35  ;;  %v684_v19 = vsel %vm4752_vm0, 0, %v682_v17  ;;  %v1001_v60 = vand.u32 3, %v1000_v43  ;;  %v1004_v34 = vxor.u32 2147483648, %v3609_v56 }
 0x168   : > { %v679_v30 = vxor.u32 2147483648, %v678_v31  ;;  %v892_v13 = vsel %vm4715_vm14, 0, %v890_v23  ;;  %v1007_v58 = vxor.u32 2147483648, %v3607_v61  ;;  %v1209_v14 = vand.u32 3, %v1208_v21 }
 0x169   : > { %v3613_v44 = vpop.eup %3612  ;;  %v1104_v59 = vadd.s32 3, %v1100_v48  ;;  %vm482_vm1 = vcmp.lt.s32.totalorder %v4748_v57, 2  ;;  %vm483_vm2 = vcmp.eq.s32.totalorder %v4748_v57, 0  ;;  %v688_v22 = vadd.s32 3, %v684_v19 }
 0x16a   : > { %v680_v15 = vsel %vm597_vm15, %v679_v30, %v678_v31  ;;  %v3615_v50 = vpop.eup %3614  ;;  %vm486_vm3 = vcmp.eq.s32.totalorder %v4748_v57, 2  ;;  %v1212_v62 = vxor.u32 2147483648, %v3613_v44  ;;  %v1215_v2 = vxor.u32 2147483648, %v3611_v0 }
 0x16b   : > { %v683_v51 = vsel %vm4752_vm0, %v6445_v49, %v680_v15  ;;  %v3617_v20 = vpop.eup %3616  ;;  %v896_v27 = vadd.s32 3, %v892_v13  ;;  %v487_v52 = vxor.u32 2147483648, %v3615_v50  ;;  %vm1003_vm4 = vcmp.eq.s32.totalorder %v1001_v60, 0  ;;  %v1230_v13 = vpop.permute.xlu0 %1229 }
 0x16c   : > { %3626 = vcosq.f32 %v683_v51  ;;  %v3619_v18 = vpop.eup %3618  ;;  %v484_v54 = vxor.u32 2147483648, %v3617_v20  ;;  %vm1006_vm5 = vcmp.eq.s32.totalorder %v1001_v60, 2  ;;  %vm1207_vm6 = vweird.f32 %v6460_v63 }
 0x16d   : > { %3628 = vsinq.f32 %v683_v51  ;;  %v3621_v41 = vpop.eup %3620  ;;  %vm479_vm7 = vweird.f32 %v3912_v5  ;;  %v1005_v40 = vsel %vm1003_vm4, %v3607_v61, %v1004_v34  ;;  %v1008_v24 = vsel %vm1006_vm5, %v1007_v58, %v3609_v56 }
 0x16e   : > { %v3623_v25 = vpop.eup %3622  ;;  %vm1211_vm8 = vcmp.eq.s32.totalorder %v1209_v14, 0  ;;  %v1105_v36 = vand.u32 3, %v1104_v59  ;;  %v689_v16 = vand.u32 3, %v688_v22  ;;  %vm999_vm9 = vweird.f32 %v6451_v32  ;;  %v1219_v32 = vld [vmem:[%s6333_s3] sm:$0xff] }
 0x16f   : > { %v3625_v29 = vpop.eup %3624  ;;  %vm1214_vm12 = vcmp.eq.s32.totalorder %v1209_v14, 2  ;;  %v1108_v10 = vxor.u32 2147483648, %v3621_v41  ;;  %v1111_v55 = vxor.u32 2147483648, %v3619_v18  ;;  %vm687_vm10 = vweird.f32 %v6445_v49  ;;  %v1220_v49 = vld [vmem:[%s6333_s3 + $0x8] sm:$0xff] }
 0x170   : > { %vm1002_vm11 = vcmp.lt.s32.totalorder %v1001_v60, 2  ;;  %v1213_v11 = vsel %vm1211_vm8, %v3611_v0, %v1212_v62  ;;  %v1216_v39 = vsel %vm1214_vm12, %v1215_v2, %v3613_v44  ;;  %v897_v6 = vand.u32 3, %v896_v27 }
 0x171   : > { %v485_v46 = vsel %vm483_vm2, %v3615_v50, %v484_v54  ;;  %v488_v37 = vsel %vm486_vm3, %v487_v52, %v3617_v20  ;;  %v900_v61 = vxor.u32 2147483648, %v3625_v29  ;;  %v903_v42 = vxor.u32 2147483648, %v3623_v25 }
 0x172   : > { %v1009_v4 = vsel %vm1002_vm11, %v1005_v40, %v1008_v24  ;;  %vm1210_vm13 = vcmp.lt.s32.totalorder %v1209_v14, 2  ;;  %vm1107_vm14 = vcmp.eq.s32.totalorder %v1105_v36, 0  ;;  %vm1110_vm15 = vcmp.eq.s32.totalorder %v1105_v36, 2 }
 0x173   : > { %vm694_vm0 = vcmp.eq.s32.totalorder %v689_v16, 2  ;;  %v1217_v3 = vsel %vm1210_vm13, %v1213_v11, %v1216_v39  ;;  %v1109_v31 = vsel %vm1107_vm14, %v3619_v18, %v1108_v10  ;;  %v1112_v7 = vsel %vm1110_vm15, %v1111_v55, %v3621_v41  ;;  %v1235_v18 = vpop.permute.xlu1 %1234 }
 0x174   : > { %v489_v30 = vsel %vm482_vm1, %v485_v46, %v488_v37  ;;  %vm899_vm2 = vcmp.eq.s32.totalorder %v897_v6, 0  ;;  %vm902_vm4 = vcmp.eq.s32.totalorder %v897_v6, 2  ;;  %vm1106_vm3 = vcmp.lt.s32.totalorder %v1105_v36, 2 }
 0x175   : > { %v901_v56 = vsel %vm899_vm2, %v3623_v25, %v900_v61  ;;  %v904_v21 = vsel %vm902_vm4, %v903_v42, %v3625_v29  ;;  %vm691_vm5 = vcmp.eq.s32.totalorder %v689_v16, 0  ;;  %v1218_v0 = vsel %vm1207_vm6, nan, %v1217_v3 }
 0x176   : > { %v3627_v9 = vpop.eup %3626  ;;  %v1113_v12 = vsel %vm1106_vm3, %v1109_v31, %v1112_v7  ;;  %v490_v15 = vsel %vm479_vm7, nan, %v489_v30  ;;  %vm690_vm8 = vcmp.lt.s32.totalorder %v689_v16, 2  ;;  %vm898_vm12 = vcmp.lt.s32.totalorder %v897_v6, 2 }
 0x177   : > { %v3629_v35 = vpop.eup %3628  ;;  %v695_v17 = vxor.u32 2147483648, %v3627_v9  ;;  %v1010_v44 = vsel %vm999_vm9, nan, %v1009_v4  ;;  %v905_v51 = vsel %vm898_vm12, %v901_v56, %v904_v21  ;;  %vm1103_vm1 = vweird.f32 %v6456_v1  ;;  %v1222_v1 = vld [vmem:[%s6333_s3 + $0x18] sm:$0xff] }
 0x178   : > { %v692_v43 = vxor.u32 2147483648, %v3629_v35  ;;  %v3428_v50 = vpack.c.bf16 %v1218_v0, %v1010_v44  ;;  %v1114_v63 = vsel %vm1103_vm1, nan, %v1113_v12  ;;  %vm895_vm6 = vweird.f32 %v6455_v28  ;;  %v1221_v28 = vld [vmem:[%s6333_s3 + $0x10] sm:$0xff] }
 0x179   : > { %v696_v23 = vsel %vm694_vm0, %v695_v17, %v3629_v35  ;;  %v906_v5 = vsel %vm895_vm6, nan, %v905_v51  ;;  %vm6413_vm7 = vcmask 261120  }
 0x17a   : > { %v693_v48 = vsel %vm691_vm5, %v3627_v9, %v692_v43  ;;  %v3430_v34 = vpack.c.bf16 %v1114_v63, %v906_v5 }
 0x17b   : > { %v697_v57 = vsel %vm690_vm8, %v693_v48, %v696_v23 }
 0x17c   : > { %v698_v19 = vsel %vm687_vm10, nan, %v697_v57 }
 0x17d   : > { %v3426_v60 = vpack.c.bf16 %v698_v19, %v490_v15 }
 0x17f   : > { %3427 = vmatpush1.bf16.msra.mxu0 %v3426_v60 }
 0x180   : > { %3429 = vmatprep.subr.bf16.mxu0 %v3428_v50 }
 0x183   : > { %3431 = vmatpush1.bf16.msra.mxu0 %v3430_v34 }
 0x186   : > { %3337 = vmatmul.mubr.msk.f32.vlgmr.msra.gmra.mrb[0].mxu0 %vm6413_vm7, %v1219_v32 }
 0x187   : > { %1330 = vmatprep.mubr.f32.mxu0 %v6375_v38 }
 0x18a   : > { %3338 = vmatmul.mubr.msk.f32.gmra.mrb[2].mxu0 %vm6413_vm7, %v1220_v49 }
 0x18b   : > { %1336 = vmatprep.mubr.f32.mxu0 %v6375_v38 }
 0x18e   : > { %3339 = vmatmul.mubr.msk.f32.gmra.mrb[4].mxu0 %vm6413_vm7, %v1221_v28 }
 0x18f   : > { %1342 = vmatprep.mubr.f32.mxu0 %v6375_v38 }
 0x192   : > { %3340 = vmatmul.mubr.msk.f32.gmra.mrb[6].mxu0 %vm6413_vm7, %v1222_v1 }
 0x193   : > { %3212 = vmatprep.mubr.f32.mxu0 %v6375_v38 }
 0x259   : > { %v1326_v20 = vpop.f32.mrb[0].mxu0 }
 0x25a   : > { %v4808_v58 = vadd.f32 %v1326_v20, %v1230_v13  ;;  %v1328_v14 = vpop.f32.mrb[1].mxu0 }
 0x25b   : > { %v4819_v24 = vadd.f32 %v1328_v14, %v1230_v13 }
 0x25c   : > { %6473 = vst [vmem:[#allocation7_spill] sm:$0xff] %v4808_v58  ;;  %v1352_v59 = vand.u32 2139095040, %v4808_v58  ;;  %v6379_v40 = vand.u32 2147483647, %v4808_v58 }
 0x25d   : > { %v1332_v22 = vpop.f32.mrb[2].mxu0  ;;  %6475 = vst [vmem:[#allocation6_spill] sm:$0xff] %v4819_v24  ;;  %v1456_v46 = vand.u32 2139095040, %v4819_v24 }
 0x25e   : > { %v1353_v41 = vshrl.u32 %v1352_v59, 23  ;;  %v4811_v62 = vadd.f32 %v1332_v22, %v1235_v18  ;;  %v1334_v2 = vpop.f32.mrb[3].mxu0  ;;  %v1356_v39 = vand.u32 8388607, %v6379_v40 }
 0x25f   : > { %v1457_v44 = vshrl.u32 %v1456_v46, 23  ;;  %v4853_v22 = vadd.f32 %v1334_v2, %v1235_v18 }
 0x260   : > { %6474 = vst [vmem:[#allocation15_spill] sm:$0xff] %v4811_v62  ;;  %v3341_v27 = vadd.s32 4294967169, %v1353_v41  ;;  %v1560_v25 = vand.u32 2139095040, %v4811_v62  ;;  %v1357_v56 = vor.u32 8388608, %v1356_v39  ;;  %v6377_v59 = vand.u32 2147483647, %v4811_v62 }
 0x261   : > { %v4814_v54 = vpop.f32.mrb[4].mxu0  ;;  %v1664_v18 = vand.u32 2139095040, %v4853_v22 }
 0x262   : > { %v1359_v52 = vadd.s32 1, %v3341_v27  ;;  %v4816_v29 = vpop.f32.mrb[5].mxu0  ;;  %v1561_v16 = vshrl.u32 %v1560_v25, 23  ;;  %v1397_v5 = vshll.u32 %v1357_v56, 8  ;;  %v1564_v39 = vand.u32 8388607, %v6377_v59 }
 0x264   : > { %vm1360_vm9 = vcmp.gt.s32.totalorder %v1359_v52, 0  ;;  %v3349_v4 = vadd.s32 4294967169, %v1561_v16  ;;  %v3345_v16 = vadd.s32 4294967169, %v1457_v44 }
 0x265   : > { %v1361_v36 = vsel %vm1360_vm9, %v1359_v52, 0  ;;  %v4821_v10 = vpop.f32.mrb[6].mxu0 }
 0x266   : > { %v1363_v55 = vand.u32 31, %v1361_v36  ;;  %v4823_v11 = vpop.f32.mrb[7].mxu0  ;;  %v1362_v37 = vshrl.u32 %v1361_v36, 5  ;;  %v1567_v50 = vadd.s32 1, %v3349_v4 }
 0x268   : > { %v1364_v6 = vsub.s32 32, %v1363_v55  ;;  %v1366_v61 = vshll.u32 %v6431_v26, %v1363_v55  ;;  %v1369_v42 = vshll.u32 %v6438_v45, %v1363_v55  ;;  %v1372_v31 = vshll.u32 %v6435_v47, %v1363_v55 }
 0x269   : > { %v1375_v35 = vshll.u32 %v6432_v53, %v1363_v55  ;;  %v1378_v17 = vshll.u32 %v6433_v33, %v1363_v55  ;;  %vm1381_vm10 = vcmp.lt.s32.totalorder %v1362_v37, 1  ;;  %vm1384_vm11 = vcmp.lt.s32.totalorder %v1362_v37, 4 }
 0x26a   : > { %v1367_v9 = vshrl.u32 %v6438_v45, %v1364_v6  ;;  %v1370_v3 = vshrl.u32 %v6435_v47, %v1364_v6  ;;  %v1373_v7 = vshrl.u32 %v6432_v53, %v1364_v6  ;;  %v1376_v30 = vshrl.u32 %v6433_v33, %v1364_v6 }
 0x26b   : > { %v1379_v43 = vshrl.u32 %v6434_v8, %v1364_v6  ;;  %vm1383_vm13 = vcmp.lt.s32.totalorder %v1362_v37, 3  ;;  %vm1382_vm14 = vcmp.lt.s32.totalorder %v1362_v37, 2  ;;  %v1365_v34 = vshrl.u32 %v6431_v26, %v1364_v6 }
 0x26c   : > { %v1368_v21 = vor.u32 %v1367_v9, %v1366_v61  ;;  %v1371_v23 = vor.u32 %v1370_v3, %v1369_v42  ;;  %v1374_v0 = vor.u32 %v1373_v7, %v1372_v31  ;;  %v1377_v12 = vor.u32 %v1376_v30, %v1375_v35 }
 0x26d   : > { %v1380_v15 = vor.u32 %v1379_v43, %v1378_v17  ;;  %vm1568_vm15 = vcmp.gt.s32.totalorder %v1567_v50, 0  ;;  %v1565_v43 = vor.u32 8388608, %v1564_v39 }
 0x26e   : > { %v1389_v48 = vsel %vm1381_vm10, %v1368_v21, %v1371_v23  ;;  %v1393_v57 = vsel %vm1381_vm10, %v1371_v23, %v1374_v0  ;;  %v1390_v51 = vsel %vm1384_vm11, %v1377_v12, 920167782  ;;  %v1386_v32 = vsel %vm1384_vm11, %v1374_v0, 2102212464 }
 0x26f   : > { %v1394_v19 = vsel %vm1384_vm11, %v1380_v15, 1326507024  ;;  %v1391_v63 = vsel %vm1383_vm13, %v1374_v0, %v1390_v51  ;;  %v1385_v41 = vsel %vm1381_vm10, %v1365_v34, %v1368_v21  ;;  %v1387_v27 = vsel %vm1383_vm13, %v1371_v23, %v1386_v32  ;;  %v1240_v23 = vpop.permute.xlu0 %1239 }
 0x270   : > { %v1395_v60 = vsel %vm1383_vm13, %v1377_v12, %v1394_v19  ;;  %v1392_v49 = vsel %vm1382_vm14, %v1389_v48, %v1391_v63  ;;  %v1569_v25 = vsel %vm1568_vm15, %v1567_v50, 0  ;;  %v1388_v55 = vsel %vm1382_vm14, %v1385_v41, %v1387_v27 }
 0x271   : > { %v1396_v28 = vsel %vm1382_vm14, %v1393_v57, %v1395_v60  ;;  %v4848_v20 = vmul.u32.u64.low %v1397_v5, %v1392_v49  ;;  %v4849_v14 = vmul.u32.u64.high %v1397_v5, %v1392_v49, %v4848_v20  ;;  %v1571_v52 = vand.u32 31, %v1569_v25 }
 0x272   : > { %v4845_v1 = vmul.u32.u64.low %v1397_v5, %v1396_v28  ;;  %v4846_v13 = vmul.u32.u64.high %v1397_v5, %v1396_v28, %v4845_v1  ;;  %v4864_v2 = vshrl.u32 %v1569_v25, 5  ;;  %v1404_v17 = vmul.u32 %v1397_v5, %v1388_v55 }
 0x273   : > { %v1407_v36 = vadd.s32 1, %v4849_v14  ;;  %v1572_v6 = vsub.s32 32, %v1571_v52  ;;  %v1574_v46 = vshll.u32 %v6431_v26, %v1571_v52  ;;  %v1577_v61 = vshll.u32 %v6438_v45, %v1571_v52 }
 0x274   : > { %vm1406_vm0 = vc.u32 %v4846_v13, %v4848_v20  ;;  %v1580_v42 = vshll.u32 %v6435_v47, %v1571_v52  ;;  %v1583_v3 = vshll.u32 %v6432_v53, %v1571_v52  ;;  %v1586_v35 = vshll.u32 %v6433_v33, %v1571_v52 }
 0x275   : > { %v1408_v4 = vsel %vm1406_vm0, %v1407_v36, %v4849_v14  ;;  %v1575_v9 = vshrl.u32 %v6438_v45, %v1572_v6  ;;  %v1578_v37 = vshrl.u32 %v6435_v47, %v1572_v6  ;;  %v1581_v31 = vshrl.u32 %v6432_v53, %v1572_v6 }
 0x276   : > { %v1584_v7 = vshrl.u32 %v6433_v33, %v1572_v6  ;;  %v1587_v30 = vshrl.u32 %v6434_v8, %v1572_v6  ;;  %vm1589_vm2 = vcmp.lt.s32.totalorder %v4864_v2, 1  ;;  %v1409_v48 = vadd.s32 %v1408_v4, %v1404_v17 }
 0x277   : > { %v1576_v56 = vor.u32 %v1575_v9, %v1574_v46  ;;  %v1579_v21 = vor.u32 %v1578_v37, %v1577_v61  ;;  %v1582_v0 = vor.u32 %v1581_v31, %v1580_v42  ;;  %vm1592_vm4 = vcmp.lt.s32.totalorder %v4864_v2, 4 }
 0x278   : > { %v1585_v12 = vor.u32 %v1584_v7, %v1583_v3  ;;  %v1588_v15 = vor.u32 %v1587_v30, %v1586_v35  ;;  %v4882_v44 = vadd.f32 %v4814_v54, %v1240_v23  ;;  %vm1591_vm3 = vcmp.lt.s32.totalorder %v4864_v2, 3 }
 0x279   : > { %v1597_v57 = vsel %vm1589_vm2, %v1576_v56, %v1579_v21  ;;  %v1601_v19 = vsel %vm1589_vm2, %v1579_v21, %v1582_v0  ;;  %v1463_v63 = vadd.s32 1, %v3345_v16  ;;  %vm1590_vm5 = vcmp.lt.s32.totalorder %v4864_v2, 2 }
 0x27a   : > { %6476 = vst [vmem:[#allocation11_spill] sm:$0xff] %v4882_v44  ;;  %v1598_v51 = vsel %vm1592_vm4, %v1585_v12, 920167782  ;;  %v1602_v50 = vsel %vm1592_vm4, %v1588_v15, 1326507024  ;;  %v1605_v32 = vshll.u32 %v1565_v43, 8  ;;  %v1573_v39 = vshrl.u32 %v6431_v26, %v1572_v6 }
 0x27b   : > { %v1599_v60 = vsel %vm1591_vm3, %v1582_v0, %v1598_v51  ;;  %v1603_v54 = vsel %vm1591_vm3, %v1585_v12, %v1602_v50  ;;  %v1410_v49 = vadd.s32 536870912, %v1409_v48  ;;  %v1665_v14 = vshrl.u32 %v1664_v18, 23 }
 0x27c   : > { %v1600_v5 = vsel %vm1590_vm5, %v1597_v57, %v1599_v60  ;;  %v1604_v34 = vsel %vm1590_vm5, %v1601_v19, %v1603_v54  ;;  %vm1464_vm8 = vcmp.gt.s32.totalorder %v1463_v63, 0  ;;  %v1768_v25 = vand.u32 2139095040, %v4882_v44 }
 0x27d   : > { %v4900_v28 = vmul.u32.u64.low %v1605_v32, %v1600_v5  ;;  %v4901_v1 = vmul.u32.u64.high %v1605_v32, %v1600_v5, %v4900_v28  ;;  %v4904_v41 = vmul.u32.u64.low %v1605_v32, %v1604_v34  ;;  %v4905_v27 = vmul.u32.u64.high %v1605_v32, %v1604_v34, %v4904_v41 }
 0x27e   : > { %v4908_v52 = vshrl.u32 %v1410_v49, 30  ;;  %v4910_v36 = vsel %vm1464_vm8, %v1463_v63, 0  ;;  %v1594_v16 = vsel %vm1592_vm4, %v1582_v0, 2102212464  ;;  %v1769_v55 = vshrl.u32 %v1768_v25, 23 }
 0x27f   : > { %v3353_v46 = vadd.s32 4294967169, %v1665_v14  ;;  %v4916_v61 = vadd.f32 %v4816_v29, %v1240_v23  ;;  %v4919_v42 = vand.u32 31, %v4910_v36  ;;  %v1593_v4 = vsel %vm1589_vm2, %v1573_v39, %v1576_v56  ;;  %v4969_v39 = vpop.permute.xlu1 %1244 }
 0x280   : > { %6477 = vst [vmem:[#allocation12_spill] sm:$0xff] %v4908_v52  ;;  %v3357_v18 = vadd.s32 4294967169, %v1769_v55  ;;  %v1595_v9 = vsel %vm1591_vm3, %v1579_v21, %v1594_v16  ;;  %v1412_v37 = vshll.u32 %v4908_v52, 30  ;;  %v1615_v3 = vadd.s32 1, %v4901_v1 }
 0x281   : > { %6478 = vst [vmem:[#allocation8_spill] sm:$0xff] %v4916_v61  ;;  %vm1614_vm12 = vc.u32 %v4905_v27, %v4900_v28  ;;  %v1671_v29 = vadd.s32 1, %v3353_v46  ;;  %v1872_v6 = vand.u32 2139095040, %v4916_v61  ;;  %v1596_v7 = vsel %vm1590_vm5, %v1593_v4, %v1595_v9 }
 0x282   : > { %v1775_v31 = vadd.s32 1, %v3357_v18  ;;  %v4933_v35 = vsub.s32 32, %v4919_v42  ;;  %v4935_v30 = vsub.s32 %v1409_v48, %v1412_v37  ;;  %v1616_v17 = vsel %vm1614_vm12, %v1615_v3, %v4901_v1 }
 0x283   : > { %v6381_v43 = vand.u32 2147483647, %v4882_v44  ;;  %v1612_v21 = vmul.u32 %v1605_v32, %v1596_v7  ;;  %vm1672_vm6 = vcmp.gt.s32.totalorder %v1671_v29, 0  ;;  %v1873_v23 = vshrl.u32 %v1872_v6, 23 }
 0x284   : > { %vm1776_vm1 = vcmp.gt.s32.totalorder %v1775_v31, 0  ;;  %6479 = vst [vmem:[#allocation5_spill] sm:$0xff] %v4935_v30  ;;  %v6378_v12 = vand.u32 2147483647, %v4819_v24  ;;  %v4942_v2 = vshll.u32 %v6432_v53, %v4919_v42  ;;  %v4946_v15 = vshrl.u32 %v6433_v33, %v4933_v35 }
 0x285   : > { %v1777_v56 = vsel %vm1776_vm1, %v1775_v31, 0  ;;  %v4950_v48 = vshrl.u32 %v6434_v8, %v4933_v35  ;;  %v4952_v57 = vadd.s32 %v1616_v17, %v1612_v21  ;;  %v1415_v51 = vsub.s32 0, %v4935_v30 }
 0x286   : > { %v1779_v0 = vand.u32 31, %v1777_v56  ;;  %v4955_v19 = vsel %vm1672_vm6, %v1671_v29, 0  ;;  %v1772_v50 = vand.u32 8388607, %v6381_v43  ;;  %v1778_v60 = vshrl.u32 %v1777_v56, 5 }
 0x287   : > { %v3361_v34 = vadd.s32 4294967169, %v1873_v23  ;;  %v1618_v41 = vadd.s32 536870912, %v4952_v57  ;;  %v4973_v37 = vmin.u32 %v1415_v51, %v4935_v30  ;;  %v6380_v31 = vand.u32 2147483647, %v4916_v61 }
 0x288   : > { %v1780_v63 = vsub.s32 32, %v1779_v0  ;;  %v1782_v54 = vshll.u32 %v6431_v26, %v1779_v0  ;;  %v1785_v5 = vshll.u32 %v6438_v45, %v1779_v0  ;;  %v1788_v1 = vshll.u32 %v6435_v47, %v1779_v0 }
 0x289   : > { %v1791_v25 = vshll.u32 %v6432_v53, %v1779_v0  ;;  %v1794_v55 = vshll.u32 %v6433_v33, %v1779_v0  ;;  %v4978_v29 = vadd.f32 %v4821_v10, %v4969_v39  ;;  %v1773_v6 = vor.u32 8388608, %v1772_v50 }
 0x28a   : > { %v1783_v32 = vshrl.u32 %v6438_v45, %v1780_v63  ;;  %v1786_v49 = vshrl.u32 %v6435_v47, %v1780_v63  ;;  %v1789_v14 = vshrl.u32 %v6432_v53, %v1780_v63  ;;  %v1792_v16 = vshrl.u32 %v6433_v33, %v1780_v63 }
 0x28b   : > { %v1795_v9 = vshrl.u32 %v6434_v8, %v1780_v63  ;;  %6480 = vst [vmem:[#allocation9_spill] sm:$0xff] %v4978_v29  ;;  %vm1797_vm9 = vcmp.lt.s32.totalorder %v1778_v60, 1  ;;  %v1879_v17 = vadd.s32 1, %v3361_v34  ;;  %v4980_v56 = vshrl.u32 %v1618_v41, 30 }
 0x28c   : > { %v1784_v46 = vor.u32 %v1783_v32, %v1782_v54  ;;  %v1787_v18 = vor.u32 %v1786_v49, %v1785_v5  ;;  %v1790_v4 = vor.u32 %v1789_v14, %v1788_v1  ;;  %v1793_v3 = vor.u32 %v1792_v16, %v1791_v25 }
 0x28d   : > { %v1796_v7 = vor.u32 %v1795_v9, %v1794_v55  ;;  %6481 = vst [vmem:[#allocation10_spill] sm:$0xff] %v4980_v56  ;;  %vm1799_vm10 = vcmp.lt.s32.totalorder %v1778_v60, 3  ;;  %vm1800_vm11 = vcmp.lt.s32.totalorder %v1778_v60, 4  ;;  %v1781_v5 = vshrl.u32 %v6431_v26, %v1780_v63 }
 0x28e   : > { %v1805_v21 = vsel %vm1797_vm9, %v1784_v46, %v1787_v18  ;;  %v1802_v23 = vsel %vm1800_vm11, %v1790_v4, 2102212464  ;;  %v1806_v0 = vsel %vm1800_vm11, %v1793_v3, 920167782  ;;  %v1809_v51 = vsel %vm1797_vm9, %v1787_v18, %v1790_v4 }
 0x28f   : > { %v1810_v54 = vsel %vm1800_vm11, %v1796_v7, 1326507024  ;;  %vm1798_vm13 = vcmp.lt.s32.totalorder %v1778_v60, 2  ;;  %v1807_v10 = vsel %vm1799_vm10, %v1790_v4, %v1806_v0  ;;  %v1976_v50 = vand.u32 2139095040, %v4978_v29 }
 0x290   : > { %v1808_v34 = vsel %vm1798_vm13, %v1805_v21, %v1807_v10  ;;  %v1811_v32 = vsel %vm1799_vm10, %v1793_v3, %v1810_v54  ;;  %v1813_v49 = vshll.u32 %v1773_v6, 8  ;;  %vm1880_vm14 = vcmp.gt.s32.totalorder %v1879_v17, 0 }
 0x291   : > { %v1801_v1 = vsel %vm1797_vm9, %v1781_v5, %v1784_v46  ;;  %v1803_v14 = vsel %vm1799_vm10, %v1787_v18, %v1802_v23  ;;  %v1812_v41 = vsel %vm1798_vm13, %v1809_v51, %v1811_v32  ;;  %v1876_v63 = vand.u32 8388607, %v6380_v31 }
 0x292   : > { %v4994_v25 = vmul.u32.u64.low %v1813_v49, %v1812_v41  ;;  %v4995_v16 = vmul.u32.u64.high %v1813_v49, %v1812_v41, %v4994_v25  ;;  %v4997_v55 = vmul.u32.u64.low %v1813_v49, %v1808_v34  ;;  %v4998_v4 = vmul.u32.u64.high %v1813_v49, %v1808_v34, %v4997_v55 }
 0x293   : > { %v5003_v9 = vshll.u32 %v6433_v33, %v4919_v42  ;;  %v1620_v46 = vshll.u32 %v4980_v56, 30  ;;  %v1881_v3 = vsel %vm1880_vm14, %v1879_v17, 0  ;;  %v1977_v18 = vshrl.u32 %v1976_v50, 23 }
 0x294   : > { %v5007_v6 = vshrl.u32 %v4910_v36, 5  ;;  %v1804_v7 = vsel %vm1798_vm13, %v1801_v1, %v1803_v14  ;;  %v1883_v21 = vand.u32 31, %v1881_v3  ;;  %v5012_v23 = vand.u32 8388607, %v6378_v12 }
 0x295   : > { %v5017_v51 = vor.u32 %v4946_v15, %v4942_v2  ;;  %v1484_v17 = vor.u32 %v4950_v48, %v5003_v9  ;;  %v5022_v54 = vand.u32 31, %v4955_v19  ;;  %vm1822_vm15 = vc.u32 %v4995_v16, %v4997_v55 }
 0x296   : > { %v1823_v36 = vadd.s32 1, %v4998_v4  ;;  %v1877_v60 = vor.u32 8388608, %v1876_v63  ;;  %v1884_v5 = vsub.s32 32, %v1883_v21  ;;  %v5028_v10 = vsub.s32 %v4952_v57, %v1620_v46 }
 0x297   : > { %v1820_v50 = vmul.u32 %v1813_v49, %v1804_v7  ;;  %v1886_v2 = vshll.u32 %v6431_v26, %v1883_v21  ;;  %v3365_v15 = vadd.s32 4294967169, %v1977_v18  ;;  %v1889_v32 = vshll.u32 %v6438_v45, %v1883_v21 }
 0x298   : > { %6482 = vst [vmem:[#allocation14_spill] sm:$0xff] %v5028_v10  ;;  %v1824_v34 = vsel %vm1822_vm15, %v1823_v36, %v4998_v4  ;;  %v1887_v48 = vshrl.u32 %v6438_v45, %v1884_v5  ;;  %v1890_v1 = vshrl.u32 %v6435_v47, %v1884_v5  ;;  %v1882_v41 = vshrl.u32 %v1881_v3, 5 }
 0x299   : > { %v1825_v14 = vadd.s32 %v1824_v34, %v1820_v50  ;;  %v1892_v63 = vshll.u32 %v6435_v47, %v1883_v21  ;;  %v1893_v25 = vshrl.u32 %v6432_v53, %v1884_v5  ;;  %v1895_v49 = vshll.u32 %v6432_v53, %v1883_v21 }
 0x29a   : > { %v1888_v57 = vor.u32 %v1887_v48, %v1886_v2  ;;  %v1891_v9 = vor.u32 %v1890_v1, %v1889_v32  ;;  %v1896_v46 = vshrl.u32 %v6433_v33, %v1884_v5  ;;  %v1917_v7 = vshll.u32 %v1877_v60, 8 }
 0x29b   : > { %v1826_v18 = vadd.s32 536870912, %v1825_v14  ;;  %v1894_v4 = vor.u32 %v1893_v25, %v1892_v63  ;;  %v6382_v36 = vand.u32 2147483647, %v4978_v29  ;;  %v1623_v38 = vsub.s32 0, %v5028_v10 }
 0x29c   : > { %v1897_v59 = vor.u32 %v1896_v46, %v1895_v49  ;;  %v1898_v3 = vshll.u32 %v6433_v33, %v1883_v21  ;;  %v1899_v50 = vshrl.u32 %v6434_v8, %v1884_v5  ;;  %vm1901_vm0 = vcmp.lt.s32.totalorder %v1882_v41, 1 }
 0x29d   : > { %v5043_v34 = vshrl.u32 %v1826_v18, 30  ;;  %vm1904_vm2 = vcmp.lt.s32.totalorder %v1882_v41, 4  ;;  %v1983_v2 = vadd.s32 1, %v3365_v15  ;;  %v1885_v48 = vshrl.u32 %v6431_v26, %v1884_v5 }
 0x29e   : > { %v1900_v32 = vor.u32 %v1899_v50, %v1898_v3  ;;  %v1906_v1 = vsel %vm1904_vm2, %v1894_v4, 2102212464  ;;  %v1909_v63 = vsel %vm1901_vm0, %v1888_v57, %v1891_v9  ;;  %vm1902_vm4 = vcmp.lt.s32.totalorder %v1882_v41, 2 }
 0x29f   : > { %6483 = vst [vmem:[#allocation13_spill] sm:$0xff] %v5043_v34  ;;  %v1828_v60 = vshll.u32 %v5043_v34, 30  ;;  %vm1903_vm3 = vcmp.lt.s32.totalorder %v1882_v41, 3  ;;  %v1910_v25 = vsel %vm1904_vm2, %v1897_v59, 920167782  ;;  %v1905_v49 = vsel %vm1901_vm0, %v1885_v48, %v1888_v57 }
 0x2a0   : > { %v1911_v46 = vsel %vm1903_vm3, %v1894_v4, %v1910_v25  ;;  %v1913_v21 = vsel %vm1901_vm0, %v1891_v9, %v1894_v4  ;;  %v1914_v12 = vsel %vm1904_vm2, %v1900_v32, 1326507024  ;;  %v1907_v18 = vsel %vm1903_vm3, %v1891_v9, %v1906_v1 }
 0x2a1   : > { %v5047_v40 = vsub.s32 %v1825_v14, %v1828_v60  ;;  %v1912_v31 = vsel %vm1902_vm4, %v1909_v63, %v1911_v46  ;;  %v1915_v15 = vsel %vm1903_vm3, %v1897_v59, %v1914_v12  ;;  %vm1984_vm5 = vcmp.gt.s32.totalorder %v1983_v2, 0 }
 0x2a2   : > { %v1916_v5 = vsel %vm1902_vm4, %v1913_v21, %v1915_v15  ;;  %v5051_v3 = vmul.u32.u64.low %v1917_v7, %v1912_v31  ;;  %v5052_v50 = vmul.u32.u64.high %v1917_v7, %v1912_v31, %v5051_v3  ;;  %v3350_v43 = vmin.u32 %v1623_v38, %v5028_v10 }
 0x2a3   : > { %v5056_v0 = vmul.u32.u64.low %v1917_v7, %v1916_v5  ;;  %v5057_v57 = vmul.u32.u64.high %v1917_v7, %v1916_v5, %v5056_v0  ;;  %v1985_v4 = vsel %vm1984_vm5, %v1983_v2, 0  ;;  %vm1488_vm8 = vcmp.lt.s32.totalorder %v5007_v6, 4 }
 0x2a4   : > { %v1908_v14 = vsel %vm1902_vm4, %v1905_v49, %v1907_v18  ;;  %v1980_v59 = vand.u32 8388607, %v6382_v36  ;;  %v1987_v12 = vand.u32 31, %v1985_v4  ;;  %v5066_v31 = vsel %vm1488_vm8, %v5017_v51, 920167782 }
 0x2a5   : > { %v5070_v38 = vsel %vm1488_vm8, %v1484_v17, 1326507024  ;;  %v1831_v0 = vsub.s32 0, %v5047_v40  ;;  %v6484_v41 = vclz %v4973_v37  ;;  %v5079_v48 = vsub.s32 32, %v5022_v54 }
 0x2a6   : > { %v1927_v32 = vadd.s32 1, %v5052_v50  ;;  %v1988_v1 = vsub.s32 32, %v1987_v12  ;;  %v1625_v63 = vclz %v3350_v43  ;;  %v1924_v60 = vmul.u32 %v1917_v7, %v1908_v14 }
 0x2a7   : > { %v5076_v2 = vadd.s32 4294967294, %v6484_v41  ;;  %vm1926_vm12 = vc.u32 %v5057_v57, %v5051_v3  ;;  %v5086_v17 = vadd.f32 %v4823_v11, %v4969_v39  ;;  %v1981_v37 = vor.u32 8388608, %v1980_v59 }
 0x2a8   : > { %v1928_v25 = vsel %vm1926_vm12, %v1927_v32, %v5052_v50  ;;  %v1991_v49 = vshrl.u32 %v6438_v45, %v1988_v1  ;;  %v1994_v46 = vshrl.u32 %v6435_v47, %v1988_v1  ;;  %v3358_v21 = vmin.u32 %v1831_v0, %v5047_v40 }
 0x2a9   : > { %6485 = vst [vmem:[#allocation16_spill] sm:$0xff] %v5086_v17  ;;  %v1929_v18 = vadd.s32 %v1928_v25, %v1924_v60  ;;  %v1990_v43 = vshll.u32 %v6431_v26, %v1987_v12  ;;  %v1997_v7 = vshrl.u32 %v6432_v53, %v1988_v1  ;;  %v1993_v15 = vshll.u32 %v6438_v45, %v1987_v12 }
 0x2aa   : > { %v1996_v5 = vshll.u32 %v6435_v47, %v1987_v12  ;;  %v1999_v11 = vshll.u32 %v6432_v53, %v1987_v12  ;;  %v2000_v39 = vshrl.u32 %v6433_v33, %v1988_v1  ;;  %v1986_v14 = vshrl.u32 %v1985_v4, 5 }
 0x2ab   : > { %v1930_v50 = vadd.s32 536870912, %v1929_v18  ;;  %v1992_v59 = vor.u32 %v1991_v49, %v1990_v43  ;;  %v2003_v41 = vshrl.u32 %v6434_v8, %v1988_v1  ;;  %v1995_v32 = vor.u32 %v1994_v46, %v1993_v15 }
 0x2ac   : > { %v1998_v0 = vor.u32 %v1997_v7, %v1996_v5  ;;  %v2001_v60 = vor.u32 %v2000_v39, %v1999_v11  ;;  %v2002_v25 = vshll.u32 %v6433_v33, %v1987_v12  ;;  %v5102_v36 = vadd.s32 %v4848_v20, %v4846_v13 }
 0x2ad   : > { %v5105_v9 = vshrl.u32 %v4955_v19, 5  ;;  %v1688_v34 = vshrl.u32 %v6433_v33, %v5079_v48  ;;  %v1833_v56 = vclz %v3358_v21  ;;  %vm3344_vm1 = vcmp.lt.s32.totalorder %v5076_v2, 0 }
 0x2ae   : > { %v1691_v4 = vshrl.u32 %v6434_v8, %v5079_v48  ;;  %v2004_v49 = vor.u32 %v2003_v41, %v2002_v25  ;;  %v2080_v46 = vand.u32 2139095040, %v5086_v17  ;;  %v3351_v12 = vadd.s32 4294967294, %v1625_v63 }
 0x2af   : > { %v5113_v43 = vshrl.u32 %v1930_v50, 30  ;;  %vm2005_vm6 = vcmp.lt.s32.totalorder %v1986_v14, 1  ;;  %vm2008_vm9 = vcmp.lt.s32.totalorder %v1986_v14, 4  ;;  %v2021_v7 = vshll.u32 %v1981_v37, 8 }
 0x2b0   : > { %v2010_v13 = vsel %vm2008_vm9, %v1998_v0, 2102212464  ;;  %v2013_v20 = vsel %vm2005_vm6, %v1992_v59, %v1995_v32  ;;  %v2014_v19 = vsel %vm2008_vm9, %v2001_v60, 920167782  ;;  %v3359_v15 = vadd.s32 4294967294, %v1833_v56 }
 0x2b1   : > { %6486 = vst [vmem:[#allocation17_spill] sm:$0xff] %v5113_v43  ;;  %v1989_v21 = vshrl.u32 %v6431_v26, %v1988_v1  ;;  %vm2006_vm10 = vcmp.lt.s32.totalorder %v1986_v14, 2  ;;  %vm2007_vm11 = vcmp.lt.s32.totalorder %v1986_v14, 3  ;;  %v2017_v11 = vsel %vm2005_vm6, %v1995_v32, %v1998_v0 }
 0x2b2   : > { %v2015_v5 = vsel %vm2007_vm11, %v1998_v0, %v2014_v19  ;;  %v2018_v39 = vsel %vm2008_vm9, %v2004_v49, 1326507024  ;;  %v2081_v41 = vshrl.u32 %v2080_v46, 23  ;;  %v1932_v25 = vshll.u32 %v5113_v43, 30 }
 0x2b3   : > { %v2009_v63 = vsel %vm2005_vm6, %v1989_v21, %v1992_v59  ;;  %v2011_v50 = vsel %vm2007_vm11, %v1995_v32, %v2010_v13  ;;  %v2016_v24 = vsel %vm2006_vm10, %v2013_v20, %v2015_v5  ;;  %v2019_v29 = vsel %vm2007_vm11, %v2001_v60, %v2018_v39 }
 0x2b4   : > { %v5118_v52 = vmul.u32.u64.low %v2021_v7, %v2016_v24  ;;  %v5119_v62 = vmul.u32.u64.high %v2021_v7, %v2016_v24, %v5118_v52  ;;  %v3369_v56 = vadd.s32 4294967169, %v2081_v41  ;;  %v1687_v1 = vshll.u32 %v6432_v53, %v5022_v54 }
 0x2b5   : > { %v1690_v37 = vshll.u32 %v6433_v33, %v5022_v54  ;;  %vm1696_vm13 = vcmp.lt.s32.totalorder %v5105_v9, 4  ;;  %v2020_v0 = vsel %vm2006_vm10, %v2017_v11, %v2019_v29  ;;  %v5131_v59 = vsel %vm3344_vm1, 0, %v5076_v2 }
 0x2b6   : > { %6487 = vst [vmem:[#allocation18_spill] sm:$0xff] %v5118_v52  ;;  %6488 = vst [vmem:[#allocation19_spill] sm:$0xff] %v5131_v59  ;;  %v5133_v32 = vmul.u32.u64.low %v2021_v7, %v2020_v0  ;;  %v5134_v24 = vmul.u32.u64.high %v2021_v7, %v2020_v0, %v5133_v32  ;;  %v2087_v60 = vadd.s32 1, %v3369_v56  ;;  %v5136_v49 = vor.u32 %v1688_v34, %v1687_v1 }
 0x2b7   : > { %v1692_v46 = vor.u32 %v1691_v4, %v1690_v37  ;;  %v5138_v13 = vsub.s32 %v1929_v18, %v1932_v25  ;;  %v2012_v20 = vsel %vm2006_vm10, %v2009_v63, %v2011_v50  ;;  %vm3352_vm14 = vcmp.lt.s32.totalorder %v3351_v12, 0 }
 0x2b8   : > { %6489 = vst [vmem:[#allocation20_spill] sm:$0xff] %v5134_v24  ;;  %vm3360_vm15 = vcmp.lt.s32.totalorder %v3359_v15, 0  ;;  %v2031_v29 = vadd.s32 1, %v5119_v62  ;;  %vm2088_vm0 = vcmp.gt.s32.totalorder %v2087_v60, 0  ;;  %v1421_v19 = vsub.s32 32, %v5131_v59 }
 0x2b9   : > { %v5145_v2 = vadd.s32 %v4900_v28, %v4905_v27  ;;  %v6395_v21 = vand.u32 2147483647, %v5086_v17  ;;  %v2089_v34 = vsel %vm2088_vm0, %v2087_v60, 0  ;;  %v1425_v4 = vsub.s32 4294967266, %v5131_v59 }
 0x2ba   : > { %v2028_v18 = vmul.u32 %v2021_v7, %v2012_v20  ;;  %vm2030_vm2 = vc.u32 %v5134_v24, %v5118_v52  ;;  %v2091_v14 = vand.u32 31, %v2089_v34  ;;  %v5151_v5 = vsel %vm3352_vm14, 0, %v3351_v12 }
 0x2bb   : > { %v5153_v11 = vsel %vm3360_vm15, 0, %v3359_v15  ;;  %v1935_v39 = vsub.s32 0, %v5138_v13  ;;  %v2032_v41 = vsel %vm2030_vm2, %v2031_v29, %v5119_v62  ;;  %v5160_v28 = vsel %vm1696_vm13, %v5136_v49, 920167782 }
 0x2bc   : > { %v5164_v27 = vsel %vm1696_vm13, %v1692_v46, 1326507024  ;;  %v2033_v7 = vadd.s32 %v2032_v41, %v2028_v18  ;;  %v2092_v25 = vsub.s32 32, %v2091_v14  ;;  %v5169_v15 = vshrl.u32 %v5102_v36, %v1421_v19 }
 0x2bd   : > { %v2084_v62 = vand.u32 8388607, %v6395_v21  ;;  %v5175_v63 = vshrl.u32 %v6431_v26, %v4933_v35  ;;  %v5177_v50 = vadd.s32 127, %v1425_v4  ;;  %v1633_v56 = vsub.s32 4294967266, %v5151_v5 }
 0x2be   : > { %6490 = vst [vmem:[#allocation21_spill] sm:$0xff] %v5169_v15  ;;  %v5182_v1 = vadd.s32 %v4997_v55, %v4995_v16  ;;  %v1841_v37 = vsub.s32 4294967266, %v5153_v11  ;;  %v3362_v36 = vmin.u32 %v1935_v39, %v5138_v13  ;;  %v2034_v0 = vadd.s32 536870912, %v2033_v7 }
 0x2bf   : > { %v2094_v32 = vshll.u32 %v6431_v26, %v2091_v14  ;;  %v2095_v60 = vshrl.u32 %v6438_v45, %v2092_v25  ;;  %v2097_v46 = vshll.u32 %v6438_v45, %v2091_v14  ;;  %v2098_v20 = vshrl.u32 %v6435_v47, %v2092_v25 }
 0x2c0   : > { %v2100_v29 = vshll.u32 %v6435_v47, %v2091_v14  ;;  %v2101_v19 = vshrl.u32 %v6432_v53, %v2092_v25  ;;  %v2085_v4 = vor.u32 8388608, %v2084_v62  ;;  %v2090_v16 = vshrl.u32 %v2089_v34, 5 }
 0x2c1   : > { %v2096_v55 = vor.u32 %v2095_v60, %v2094_v32  ;;  %v1470_v18 = vshll.u32 %v6431_v26, %v4919_v42  ;;  %v2099_v39 = vor.u32 %v2098_v20, %v2097_v46  ;;  %v2103_v21 = vshll.u32 %v6432_v53, %v2091_v14 }
 0x2c2   : > { %v2102_v41 = vor.u32 %v2101_v19, %v2100_v29  ;;  %v2104_v12 = vshrl.u32 %v6433_v33, %v2092_v25  ;;  %v1837_v43 = vsub.s32 32, %v5153_v11  ;;  %v1842_v17 = vadd.s32 127, %v1841_v37 }
 0x2c3   : > { %v2106_v58 = vshll.u32 %v6433_v33, %v2091_v14  ;;  %v2107_v52 = vshrl.u32 %v6434_v8, %v2092_v25  ;;  %v1937_v24 = vclz %v3362_v36  ;;  %v5199_v62 = vshrl.u32 %v2034_v0, 30 }
 0x2c4   : > { %v2105_v34 = vor.u32 %v2104_v12, %v2103_v21  ;;  %v1471_v32 = vshrl.u32 %v6438_v45, %v4933_v35  ;;  %vm2109_vm4 = vcmp.lt.s32.totalorder %v2090_v16, 1  ;;  %vm2112_vm3 = vcmp.lt.s32.totalorder %v2090_v16, 4 }
 0x2c5   : > { %v2108_v60 = vor.u32 %v2107_v52, %v2106_v58  ;;  %v2125_v46 = vshll.u32 %v2085_v4, 8  ;;  %v2114_v20 = vsel %vm2112_vm3, %v2102_v41, 2102212464  ;;  %v2117_v29 = vsel %vm2109_vm4, %v2096_v55, %v2099_v39 }
 0x2c6   : > { %v1473_v37 = vshll.u32 %v6438_v45, %v4919_v42  ;;  %v1474_v14 = vshrl.u32 %v6435_v47, %v4933_v35  ;;  %v2093_v36 = vshrl.u32 %v6431_v26, %v2092_v25  ;;  %vm2111_vm5 = vcmp.lt.s32.totalorder %v2090_v16, 3 }
 0x2c7   : > { %v2118_v0 = vsel %vm2112_vm3, %v2105_v34, 920167782  ;;  %v2121_v21 = vsel %vm2109_vm4, %v2099_v39, %v2102_v41  ;;  %v2036_v12 = vshll.u32 %v5199_v62, 30  ;;  %vm2110_vm12 = vcmp.lt.s32.totalorder %v2090_v16, 2 }
 0x2c8   : > { %v2119_v58 = vsel %vm2111_vm5, %v2102_v41, %v2118_v0  ;;  %v2122_v52 = vsel %vm2112_vm3, %v2108_v60, 1326507024  ;;  %v2113_v19 = vsel %vm2109_vm4, %v2093_v36, %v2096_v55  ;;  %v2115_v4 = vsel %vm2111_vm5, %v2099_v39, %v2114_v20 }
 0x2c9   : > { %v2120_v8 = vsel %vm2110_vm12, %v2117_v29, %v2119_v58  ;;  %v2123_v33 = vsel %vm2111_vm5, %v2105_v34, %v2122_v52  ;;  %v3363_v61 = vadd.s32 4294967294, %v1937_v24  ;;  %v1476_v30 = vshll.u32 %v6435_v47, %v4919_v42 }
 0x2ca   : > { %v2124_v44 = vsel %vm2110_vm12, %v2121_v21, %v2123_v33  ;;  %v5209_v10 = vmul.u32.u64.low %v2125_v46, %v2120_v8  ;;  %v5210_v15 = vmul.u32.u64.high %v2125_v46, %v2120_v8, %v5209_v10  ;;  %v1477_v16 = vshrl.u32 %v6432_v53, %v4933_v35 }
 0x2cb   : > { %v5213_v59 = vmul.u32.u64.low %v2125_v46, %v2124_v44  ;;  %v5214_v25 = vmul.u32.u64.high %v2125_v46, %v2124_v44, %v5213_v59  ;;  %v5220_v41 = vsub.s32 %v2033_v7, %v2036_v12  ;;  %v2116_v55 = vsel %vm2110_vm12, %v2113_v19, %v2115_v4 }
 0x2cc   : > { %v1472_v39 = vor.u32 %v1471_v32, %v1470_v18  ;;  %v1475_v34 = vor.u32 %v1474_v14, %v1473_v37  ;;  %v1427_v33 = vshll.u32 %v5177_v50, 23  ;;  %v1629_v8 = vsub.s32 32, %v5151_v5 }
 0x2cd   : > { %v5224_v24 = vadd.s32 127, %v1633_v56  ;;  %v1478_v60 = vor.u32 %v1477_v16, %v1476_v30  ;;  %v1838_v44 = vshll.u32 %v5047_v40, %v5153_v11  ;;  %v1839_v42 = vshrl.u32 %v5182_v1, %v1837_v43 }
 0x2ce   : > { %v1843_v59 = vshll.u32 %v1842_v17, 23  ;;  %v2135_v35 = vadd.s32 1, %v5210_v15  ;;  %vm3364_vm1 = vcmp.lt.s32.totalorder %v3363_v61, 0  ;;  %v2132_v7 = vmul.u32 %v2125_v46, %v2116_v55 }
 0x2cf   : > { %vm2134_vm6 = vc.u32 %v5214_v25, %v5209_v10  ;;  %vm1485_vm9 = vcmp.lt.s32.totalorder %v5007_v6, 1  ;;  %v2039_v50 = vsub.s32 0, %v5220_v41  ;;  %vm1487_vm10 = vcmp.lt.s32.totalorder %v5007_v6, 3 }
 0x2d0   : > { %v2136_v56 = vsel %vm2134_vm6, %v2135_v35, %v5210_v15  ;;  %v1493_v40 = vsel %vm1485_vm9, %v1472_v39, %v1475_v34  ;;  %v1490_v17 = vsel %vm1488_vm8, %v1478_v60, 2102212464  ;;  %v1495_v43 = vsel %vm1487_vm10, %v1478_v60, %v5066_v31 }
 0x2d1   : > { %v2137_v30 = vadd.s32 %v2136_v56, %v2132_v7  ;;  %v1497_v11 = vsel %vm1485_vm9, %v1475_v34, %v1478_v60  ;;  %v5245_v1 = vor.u32 %v1839_v42, %v1838_v44  ;;  %v5247_v18 = vor.u32 4788187, %v1843_v59 }
 0x2d2   : > { %v5249_v15 = vsel %vm3364_vm1, 0, %v3363_v61  ;;  %vm1486_vm11 = vcmp.lt.s32.totalorder %v5007_v6, 2  ;;  %v1499_v31 = vsel %vm1487_vm10, %v5017_v51, %v5070_v38  ;;  %v6491_v20 = vor.u32 8388608, %v5012_v23 }
 0x2d3   : > { %v2138_v32 = vadd.s32 536870912, %v2137_v30  ;;  %v1496_v46 = vsel %vm1486_vm11, %v1493_v40, %v1495_v43  ;;  %v3366_v37 = vmin.u32 %v2039_v50, %v5220_v41  ;;  %v1489_v61 = vsel %vm1485_vm9, %v5175_v63, %v1472_v39 }
 0x2d4   : > { %v1501_v29 = vshll.u32 %v6491_v20, 8  ;;  %v1491_v14 = vsel %vm1487_vm10, %v1475_v34, %v1490_v17  ;;  %v1500_v36 = vsel %vm1486_vm11, %v1497_v11, %v1499_v31  ;;  %v1661_v23 = vand.u32 2147483647, %v4853_v22 }
 0x2d5   : > { %v5268_v0 = vshrl.u32 %v2138_v32, 30  ;;  %v5274_v51 = vor.u32 4788187, %v1427_v33  ;;  %v5277_v38 = vshrl.u32 %v5145_v2, %v1629_v8  ;;  %v1635_v52 = vshll.u32 %v5224_v24, 23 }
 0x2d6   : > { %v5270_v21 = vmul.u32.u64.low %v1501_v29, %v1500_v36  ;;  %v5271_v12 = vmul.u32.u64.high %v1501_v29, %v1500_v36, %v5270_v21  ;;  %v5279_v58 = vmul.u32.u64.low %v1501_v29, %v1496_v46  ;;  %v5280_v63 = vmul.u32.u64.high %v1501_v29, %v1496_v46, %v5279_v58 }
 0x2d7   : > { %v1847_v19 = vcvt.s32.f32 %v5245_v1  ;;  %v1925_v4 = vadd.s32 %v5051_v3, %v5057_v57  ;;  %v2140_v16 = vshll.u32 %v5268_v0, 30  ;;  %v1845_v55 = vand.u32 2147483647, %v5247_v18 }
 0x2d8   : > { %v1945_v39 = vsub.s32 4294967266, %v5249_v15  ;;  %v1492_v2 = vsel %vm1486_vm11, %v1489_v61, %v1491_v14  ;;  %v1679_v34 = vshrl.u32 %v6438_v45, %v5079_v48  ;;  %v2041_v33 = vclz %v3366_v37 }
 0x2d9   : > { %v5294_v8 = vsub.s32 %v2137_v30, %v2140_v16  ;;  %vm1510_vm8 = vc.u32 %v5271_v12, %v5279_v58  ;;  %v1668_v3 = vand.u32 8388607, %v1661_v23  ;;  %v1511_v57 = vadd.s32 1, %v5280_v63 }
 0x2da   : > { %v1678_v60 = vshll.u32 %v6431_v26, %v5022_v54  ;;  %v1681_v6 = vshll.u32 %v6438_v45, %v5022_v54  ;;  %v1682_v44 = vshrl.u32 %v6435_v47, %v5079_v48  ;;  %v1508_v59 = vmul.u32 %v1501_v29, %v1492_v2 }
 0x2db   : > { %v2143_v42 = vsub.s32 0, %v5294_v8  ;;  %v1684_v35 = vshll.u32 %v6435_v47, %v5022_v54  ;;  %v1685_v7 = vshrl.u32 %v6432_v53, %v5079_v48  ;;  %v1946_v50 = vadd.s32 127, %v1945_v39 }
 0x2dc   : > { %v1512_v56 = vsel %vm1510_vm8, %v1511_v57, %v5280_v63  ;;  %v1680_v40 = vor.u32 %v1679_v34, %v1678_v60  ;;  %v1683_v30 = vor.u32 %v1682_v44, %v1681_v6  ;;  %v1941_v17 = vsub.s32 32, %v5249_v15 }
 0x2dd   : > { %v3370_v43 = vmin.u32 %v2143_v42, %v5294_v8  ;;  %v1513_v11 = vadd.s32 %v1512_v56, %v1508_v59  ;;  %v1686_v18 = vor.u32 %v1685_v7, %v1684_v35  ;;  %v1942_v32 = vshll.u32 %v5138_v13, %v5249_v15  ;;  %v6492_v35 = vld [vmem:[#allocation5_spill] sm:$0xff]  ;;  %v6493_v7 = vld [vmem:[#allocation19_spill] sm:$0xff] }
 0x2de   : > { %v3367_v46 = vadd.s32 4294967294, %v2041_v33  ;;  %v1669_v31 = vor.u32 8388608, %v1668_v3  ;;  %vm1695_vm14 = vcmp.lt.s32.totalorder %v5105_v9, 3  ;;  %vm1693_vm15 = vcmp.lt.s32.totalorder %v5105_v9, 1  ;;  %v6495_v56 = vld [vmem:[#allocation21_spill] sm:$0xff] }
 0x2df   : > { %v2145_v54 = vclz %v3370_v43  ;;  %v1514_v20 = vadd.s32 536870912, %v1513_v11  ;;  %v1707_v29 = vsel %vm1695_vm14, %v5136_v49, %v5164_v27  ;;  %v1947_v37 = vshll.u32 %v1946_v50, 23  ;;  %v6496_v43 = vld [vmem:[#allocation14_spill] sm:$0xff] }
 0x2e0   : > { %v1701_v61 = vsel %vm1693_vm15, %v1680_v40, %v1683_v30  ;;  %v1703_v13 = vsel %vm1695_vm14, %v1686_v18, %v5160_v28  ;;  %v1705_v15 = vsel %vm1693_vm15, %v1683_v30, %v1686_v18  ;;  %v1943_v14 = vshrl.u32 %v1925_v4, %v1941_v17 }
 0x2e1   : > { %v3371_v36 = vadd.s32 4294967294, %v2145_v54  ;;  %v5330_v21 = vshrl.u32 %v1514_v20, 30  ;;  %vm1694_vm0 = vcmp.lt.s32.totalorder %v5105_v9, 2  ;;  %vm3368_vm2 = vcmp.lt.s32.totalorder %v3367_v46, 0 }
 0x2e2   : > { %v1698_v49 = vsel %vm1696_vm13, %v1686_v18, 2102212464  ;;  %v1708_v27 = vsel %vm1694_vm0, %v1705_v15, %v1707_v29  ;;  %v1709_v63 = vshll.u32 %v1669_v31, 8  ;;  %v1677_v16 = vshrl.u32 %v6431_v26, %v5079_v48  ;;  %v6497_v18 = vld [vmem:[#allocation11_spill] sm:$0xff]  ;;  %v6501_v15 = vld [vmem:[#allocation8_spill] sm:$0xff] }
 0x2e3   : > { %vm3372_vm4 = vcmp.lt.s32.totalorder %v3371_v36, 0  ;;  %v1516_v28 = vshll.u32 %v5330_v21, 30  ;;  %v1704_v4 = vsel %vm1694_vm0, %v1701_v61, %v1703_v13  ;;  %v1948_v39 = vor.u32 4788187, %v1947_v37 }
 0x2e4   : > { %v5342_v2 = vsel %vm3372_vm4, 0, %v3371_v36  ;;  %v5344_v34 = vmul.u32.u64.low %v1709_v63, %v1708_v27  ;;  %v5345_v33 = vmul.u32.u64.high %v1709_v63, %v1708_v27, %v5344_v34  ;;  %v5347_v3 = vsel %vm3368_vm2, 0, %v3367_v46 }
 0x2e5   : > { %v5349_v57 = vsub.s32 %v1513_v11, %v1516_v28  ;;  %v1697_v60 = vsel %vm1693_vm15, %v1677_v16, %v1680_v40  ;;  %v1699_v6 = vsel %vm1695_vm14, %v1683_v30, %v1698_v49  ;;  %v1944_v48 = vor.u32 %v1943_v14, %v1942_v32 }
 0x2e6   : > { %v2153_v44 = vsub.s32 4294967266, %v5342_v2  ;;  %v5356_v42 = vmul.u32.u64.low %v1709_v63, %v1704_v4  ;;  %v5357_v59 = vmul.u32.u64.high %v1709_v63, %v1704_v4, %v5356_v42  ;;  %v6494_v50 = vshll.u32 %v6492_v35, %v6493_v7 }
 0x2e7   : > { %v1630_v11 = vshll.u32 %v6496_v43, %v5151_v5  ;;  %v1848_v40 = vmul.f32 %v1847_v19, %v1845_v55  ;;  %v1519_v30 = vsub.s32 0, %v5349_v57  ;;  %vm1767_vm13 = vcmp.lt.s32.totalorder %v6497_v18, 0 }
 0x2e8   : > { %v1424_v17 = vor.u32 %v6495_v56, %v6494_v50  ;;  %v1949_v32 = vand.u32 2147483647, %v1948_v39  ;;  %v2049_v46 = vsub.s32 4294967266, %v5347_v3  ;;  %v1700_v31 = vsel %vm1694_vm0, %v1697_v60, %v1699_v6  ;;  %v6502_v6 = vld [vmem:[#allocation20_spill] sm:$0xff] }
 0x2e9   : > { %v1429_v54 = vand.u32 2147483647, %v5274_v51  ;;  %v1632_v20 = vor.u32 %v5277_v38, %v1630_v11  ;;  %v3346_v29 = vmin.u32 %v1519_v30, %v5349_v57  ;;  %vm1718_vm3 = vc.u32 %v5345_v33, %v5356_v42 }
 0x2ea   : > { %v1636_v5 = vor.u32 4788187, %v1635_v52  ;;  %v6498_v1 = vand.u32 2147483647, %v6497_v18  ;;  %v1951_v9 = vcvt.s32.f32 %v1944_v48  ;;  %v2154_v55 = vadd.s32 127, %v2153_v44  ;;  %v6503_v48 = vld [vmem:[#allocation18_spill] sm:$0xff] }
 0x2eb   : > { %v1719_v51 = vadd.s32 1, %v5357_v59  ;;  %v1431_v37 = vcvt.s32.f32 %v1424_v17  ;;  %v1849_v38 = vxor.u32 2147483648, %v1848_v40  ;;  %v1521_v61 = vclz %v3346_v29 }
 0x2ec   : > { %vm5382_vm5 = vcmp.le.f32.partialorder %v6498_v1, 0.7853982  ;;  %v1716_v13 = vmul.u32 %v1709_v63, %v1700_v31  ;;  %vm1871_vm12 = vcmp.lt.s32.totalorder %v6501_v15, 0  ;;  %v1952_v14 = vmul.f32 %v1951_v9, %v1949_v32 }
 0x2ed   : > { %v2050_v36 = vadd.s32 127, %v2049_v46  ;;  %v2149_v24 = vsub.s32 32, %v5342_v2  ;;  %v1720_v52 = vsel %vm1718_vm3, %v1719_v51, %v5357_v59  ;;  %v1432_v49 = vmul.f32 %v1431_v37, %v1429_v54  ;;  %v6504_v59 = vld [vmem:[#allocation7_spill] sm:$0xff] }
 0x2ee   : > { %v2045_v27 = vsub.s32 32, %v5347_v3  ;;  %v3347_v28 = vadd.s32 4294967294, %v1521_v61  ;;  %v1721_v16 = vadd.s32 %v1720_v52, %v1716_v13  ;;  %v1637_v4 = vand.u32 2147483647, %v1636_v5  ;;  %v6505_v51 = vld [vmem:[#allocation15_spill] sm:$0xff] }
 0x2ef   : > { %v1639_v39 = vcvt.s32.f32 %v1632_v20  ;;  %v2133_v34 = vadd.s32 %v5209_v10, %v5214_v25  ;;  %v2155_v60 = vshll.u32 %v2154_v55, 23  ;;  %v1850_v63 = vsel %vm1767_vm13, %v1849_v38, %v1848_v40 }
 0x2f0   : > { %v2029_v44 = vadd.s32 %v6503_v48, %v6502_v6  ;;  %vm3348_vm1 = vcmp.lt.s32.totalorder %v3347_v28, 0  ;;  %v1722_v35 = vadd.s32 536870912, %v1721_v16  ;;  %vm1351_vm6 = vcmp.lt.s32.totalorder %v6504_v59, 0 }
 0x2f1   : > { %v1953_v7 = vxor.u32 2147483648, %v1952_v14  ;;  %v2051_v50 = vshll.u32 %v2050_v36, 23  ;;  %v2151_v56 = vshrl.u32 %v2133_v34, %v2149_v24  ;;  %v1524_v17 = vsel %vm3348_vm1, 0, %v3347_v28 }
 0x2f2   : > { %v2047_v43 = vshrl.u32 %v2029_v44, %v2045_v27  ;;  %v1509_v11 = vadd.s32 %v5279_v58, %v5271_v12  ;;  %v1525_v10 = vsub.s32 32, %v1524_v17  ;;  %v1529_v25 = vsub.s32 4294967266, %v1524_v17 }
 0x2f3   : > { %v1640_v30 = vmul.f32 %v1639_v39, %v1637_v4  ;;  %v2150_v40 = vshll.u32 %v5294_v8, %v5342_v2  ;;  %v2156_v32 = vor.u32 4788187, %v2155_v60  ;;  %v5402_v46 = vshrl.u32 %v1722_v35, 30  ;;  %v6509_v60 = vld [vmem:[#allocation12_spill] sm:$0xff] }
 0x2f4   : > { %v1853_v31 = vsel %vm5382_vm5, %v6497_v18, %v1850_v63  ;;  %v2046_v54 = vshll.u32 %v5220_v41, %v5347_v3  ;;  %v1527_v20 = vshrl.u32 %v1509_v11, %v1525_v10  ;;  %v1530_v29 = vadd.s32 127, %v1529_v25 }
 0x2f5   : > { %v2052_v5 = vor.u32 4788187, %v2051_v50  ;;  %v2152_v12 = vor.u32 %v2151_v56, %v2150_v40  ;;  %v1526_v58 = vshll.u32 %v5349_v57, %v1524_v17  ;;  %v1724_v1 = vshll.u32 %v5402_v46, 30  ;;  %v6513_v56 = vld [vmem:[#allocation9_spill] sm:$0xff]  ;;  %v6514_v17 = vld [vmem:[#allocation6_spill] sm:$0xff] }
 0x2f6   : > { %v1433_v9 = vxor.u32 2147483648, %v1432_v49  ;;  %v1954_v8 = vsel %vm1871_vm12, %v1953_v7, %v1952_v14  ;;  %v2048_v2 = vor.u32 %v2047_v43, %v2046_v54  ;;  %v1531_v55 = vshll.u32 %v1530_v29, 23 }
 0x2f7   : > { %vm1559_vm9 = vcmp.lt.s32.totalorder %v6505_v51, 0  ;;  %v2157_v37 = vand.u32 2147483647, %v2156_v32  ;;  %v1528_v38 = vor.u32 %v1527_v20, %v1526_v58  ;;  %v5414_v61 = vsub.s32 %v1721_v16, %v1724_v1 }
 0x2f8   : > { %v1641_v41 = vxor.u32 2147483648, %v1640_v30  ;;  %3630 = vcosq.f32 %v1853_v31  ;;  %v6506_v3 = vand.u32 2147483647, %v6501_v15  ;;  %v1532_v13 = vor.u32 4788187, %v1531_v55  ;;  %v6525_v55 = vld [vmem:[#allocation10_spill] sm:$0xff] }
 0x2f9   : > { %v2053_v36 = vand.u32 2147483647, %v2052_v5  ;;  %v2159_v24 = vcvt.s32.f32 %v2152_v12  ;;  %v1727_v52 = vsub.s32 0, %v5414_v61  ;;  %v1434_v27 = vsel %vm1351_vm6, %v1433_v9, %v1432_v49 }
 0x2fa   : > { %vm5418_vm10 = vcmp.le.f32.partialorder %v6506_v3, 0.7853982  ;;  %3632 = vsinq.f32 %v1853_v31  ;;  %v2055_v28 = vcvt.s32.f32 %v2048_v2  ;;  %v1533_v16 = vand.u32 2147483647, %v1532_v13  ;;  %v6521_v31 = vld [vmem:[#allocation16_spill] sm:$0xff] }
 0x2fb   : > { %v1957_v14 = vsel %vm5418_vm10, %v6501_v15, %v1954_v8  ;;  %v2160_v4 = vmul.f32 %v2159_v24, %v2157_v37  ;;  %v1535_v39 = vcvt.s32.f32 %v1528_v38  ;;  %v3354_v34 = vmin.u32 %v1727_v52, %v5414_v61 }
 0x2fc   : > { %v1435_v63 = vsub.s32 4, %v6509_v60  ;;  %v1642_v6 = vsel %vm1559_vm9, %v1641_v41, %v1640_v30  ;;  %3634 = vcosq.f32 %v1957_v14  ;;  %v6510_v48 = vand.u32 2147483647, %v6504_v59 }
 0x2fd   : > { %v2056_v49 = vmul.f32 %v2055_v28, %v2053_v36  ;;  %v1536_v35 = vmul.f32 %v1535_v39, %v1533_v16  ;;  %v1729_v7 = vclz %v3354_v34  ;;  %3636 = vsinq.f32 %v1957_v14 }
 0x2fe   : > { %vm5434_vm11 = vcmp.le.f32.partialorder %v6510_v48, 0.7853982  ;;  %vm1975_vm8 = vcmp.lt.s32.totalorder %v6513_v56, 0  ;;  %v6515_v43 = vand.u32 2147483647, %v6514_v17  ;;  %vm1455_vm15 = vcmp.lt.s32.totalorder %v6514_v17, 0 }
 0x2ff   : > { %v1437_v50 = vsel %vm5434_vm11, %v6504_v59, %v1434_v27  ;;  %v2161_v10 = vxor.u32 2147483648, %v2160_v4  ;;  %v3355_v25 = vadd.s32 4294967294, %v1729_v7  ;;  %v1436_v30 = vsel %vm1351_vm6, %v1435_v63, %v6509_v60 }
 0x300   : > { %vm5444_vm14 = vcmp.le.f32.partialorder %v6515_v43, 0.7853982  ;;  %v6518_v40 = vand.u32 2147483647, %v6505_v51  ;;  %vm2079_vm2 = vcmp.lt.s32.totalorder %v6521_v31, 0  ;;  %v1539_v54 = vsub.s32 4, %v5330_v21 }
 0x301   : > { %3638 = vcosq.f32 %v1437_v50  ;;  %v6522_v29 = vand.u32 2147483647, %v6513_v56  ;;  %v2057_v12 = vxor.u32 2147483648, %v2056_v49  ;;  %v1537_v58 = vxor.u32 2147483648, %v1536_v35 }
 0x302   : > { %vm5454_vm0 = vcmp.le.f32.partialorder %v6518_v40, 0.7853982  ;;  %vm3356_vm3 = vcmp.lt.s32.totalorder %v3355_v25, 0  ;;  %3640 = vsinq.f32 %v1437_v50  ;;  %v5469_v1 = vpop.eup %3630  ;;  %v1717_v9 = vadd.s32 %v5356_v42, %v5345_v33 }
 0x303   : > { %v1645_v20 = vsel %vm5454_vm0, %v6505_v51, %v1642_v6  ;;  %vm5465_vm4 = vcmp.le.f32.partialorder %v6522_v29, 0.7853982  ;;  %v1732_v8 = vsel %vm3356_vm3, 0, %v3355_v25  ;;  %v1438_v2 = vsel %vm5434_vm11, 0, %v1436_v30  ;;  %v6529_v6 = vld [vmem:[#allocation17_spill] sm:$0xff] }
 0x304   : > { %v1643_v37 = vsub.s32 4, %v6525_v55  ;;  %v2162_v38 = vsel %vm2079_vm2, %v2161_v10, %v2160_v4  ;;  %v1733_v41 = vsub.s32 32, %v1732_v8  ;;  %v1737_v3 = vsub.s32 4294967266, %v1732_v8  ;;  %v5478_v13 = vpop.eup %3632 }
 0x305   : > { %3642 = vcosq.f32 %v1645_v20  ;;  %v6526_v14 = vand.u32 2147483647, %v6521_v31  ;;  %v1540_v33 = vsel %vm1455_vm15, %v1539_v54, %v5330_v21  ;;  %v1747_v42 = vsub.s32 4, %v5402_v46 }
 0x306   : > { %3644 = vsinq.f32 %v1645_v20  ;;  %v1538_v24 = vsel %vm1455_vm15, %v1537_v58, %v1536_v35  ;;  %v1734_v52 = vshll.u32 %v5414_v61, %v1732_v8  ;;  %v1735_v27 = vshrl.u32 %v1717_v9, %v1733_v41  ;;  %v5493_v16 = vpop.eup %3634 }
 0x307   : > { %vm5482_vm1 = vcmp.le.f32.partialorder %v6526_v14, 0.7853982  ;;  %v1738_v28 = vadd.s32 127, %v1737_v3  ;;  %v2058_v4 = vsel %vm1975_vm8, %v2057_v12, %v2056_v49  ;;  %v1442_v21 = vadd.s32 3, %v1438_v2  ;;  %v5506_v44 = vpop.eup %3636 }
 0x308   : > { %v2165_v39 = vsel %vm5482_vm1, %v6521_v31, %v2162_v38  ;;  %v1644_v34 = vsel %vm1559_vm9, %v1643_v37, %v6525_v55  ;;  %v1542_v60 = vsel %vm5444_vm14, 0, %v1540_v33  ;;  %v1736_v61 = vor.u32 %v1735_v27, %v1734_v52  ;;  %v6532_v33 = vld [vmem:[#allocation13_spill] sm:$0xff] }
 0x309   : > { %v1739_v63 = vshll.u32 %v1738_v28, 23  ;;  %v1955_v48 = vsub.s32 4, %v6529_v6  ;;  %v1541_v49 = vsel %vm5444_vm14, %v6514_v17, %v1538_v24  ;;  %vm5513_vm6 = vcmp.le.f32.partialorder %v1661_v23, 0.7853982 }
 0x30a   : > { %vm1663_vm9 = vcmp.lt.s32.totalorder %v4853_v22, 0  ;;  %v2163_v7 = vsub.s32 4, %v5268_v0  ;;  %3646 = vcosq.f32 %v2165_v39  ;;  %v1646_v11 = vsel %vm5454_vm0, 0, %v1644_v34 }
 0x30b   : > { %v1740_v50 = vor.u32 4788187, %v1739_v63  ;;  %v1748_v43 = vsel %vm1663_vm9, %v1747_v42, %v5402_v46  ;;  %v3639_v10 = vpop.eup %3638  ;;  %v2061_v23 = vsel %vm5465_vm4, %v6513_v56, %v2058_v4  ;;  %3648 = vsinq.f32 %v2165_v39 }
 0x30c   : > { %v1546_v25 = vadd.s32 3, %v1542_v60  ;;  %v1443_v30 = vand.u32 3, %v1442_v21  ;;  %v3641_v40 = vpop.eup %3640  ;;  %3650 = vcosq.f32 %v1541_v49  ;;  %v1743_v20 = vcvt.s32.f32 %v1736_v61 }
 0x30d   : > { %v1741_v54 = vand.u32 2147483647, %v1740_v50  ;;  %v1956_v29 = vsel %vm1871_vm12, %v1955_v48, %v6529_v6  ;;  %3652 = vsinq.f32 %v1541_v49  ;;  %v1750_v46 = vsel %vm5513_vm6, 0, %v1748_v43 }
 0x30e   : > { %v1650_v32 = vadd.s32 3, %v1646_v11  ;;  %v2164_v12 = vsel %vm2079_vm2, %v2163_v7, %v5268_v0  ;;  %3654 = vcosq.f32 %v2061_v23  ;;  %v2059_v8 = vsub.s32 4, %v5199_v62 }
 0x30f   : > { %v3643_v58 = vpop.eup %3642  ;;  %v1744_v9 = vmul.f32 %v1743_v20, %v1741_v54  ;;  %3656 = vsinq.f32 %v2061_v23  ;;  %v1446_v55 = vxor.u32 2147483648, %v3641_v40  ;;  %v1449_v37 = vxor.u32 2147483648, %v3639_v10 }
 0x310   : > { %v3645_v2 = vpop.eup %3644  ;;  %v1958_v38 = vsel %vm5418_vm10, 0, %v1956_v29  ;;  %v1754_v3 = vadd.s32 3, %v1750_v46  ;;  %v2166_v14 = vsel %vm5482_vm1, 0, %v2164_v12  ;;  %v1851_v42 = vsub.s32 4, %v6532_v33 }
 0x311   : > { %v1745_v41 = vxor.u32 2147483648, %v1744_v9  ;;  %v5541_v0 = vand.u32 3, %v1546_v25  ;;  %vm1448_vm12 = vcmp.eq.s32.totalorder %v1443_v30, 2  ;;  %v1651_v24 = vand.u32 3, %v1650_v32 }
 0x312   : > { %v1657_v52 = vxor.u32 2147483648, %v3643_v58  ;;  %v1654_v28 = vxor.u32 2147483648, %v3645_v2  ;;  %v1962_v4 = vadd.s32 3, %v1958_v38  ;;  %v2060_v57 = vsel %vm1975_vm8, %v2059_v8, %v5199_v62 }
 0x313   : > { %v1746_v27 = vsel %vm1663_vm9, %v1745_v41, %v1744_v9  ;;  %vm1445_vm10 = vcmp.eq.s32.totalorder %v1443_v30, 0  ;;  %v1450_v39 = vsel %vm1448_vm12, %v1449_v37, %v3641_v40  ;;  %vm1649_vm11 = vweird.f32 %v6505_v51 }
 0x314   : > { %v1749_v36 = vsel %vm5513_vm6, %v4853_v22, %v1746_v27  ;;  %v2170_v21 = vadd.s32 3, %v2166_v14  ;;  %v3647_v34 = vpop.eup %3646  ;;  %v5552_v60 = vand.u32 3, %v1754_v3  ;;  %v1447_v61 = vsel %vm1445_vm10, %v3639_v10, %v1446_v55 }
 0x315   : > { %3658 = vcosq.f32 %v1749_v36  ;;  %v1852_v63 = vsel %vm1767_vm13, %v1851_v42, %v6532_v33  ;;  %v3649_v6 = vpop.eup %3648  ;;  %vm1549_vm8 = vcmp.eq.s32.totalorder %v5541_v0, 0  ;;  %vm1552_vm14 = vcmp.eq.s32.totalorder %v5541_v0, 2 }
 0x316   : > { %3660 = vsinq.f32 %v1749_v36  ;;  %vm1653_vm15 = vcmp.eq.s32.totalorder %v1651_v24, 0  ;;  %vm1656_vm0 = vcmp.eq.s32.totalorder %v1651_v24, 2  ;;  %v2062_v62 = vsel %vm5465_vm4, 0, %v2060_v57  ;;  %v3651_v48 = vpop.eup %3650 }
 0x317   : > { %vm1444_vm2 = vcmp.lt.s32.totalorder %v1443_v30, 2  ;;  %v1655_v49 = vsel %vm1653_vm15, %v3643_v58, %v1654_v28  ;;  %v1658_v35 = vsel %vm1656_vm0, %v1657_v52, %v3645_v2  ;;  %v1963_v7 = vand.u32 3, %v1962_v4  ;;  %v3653_v50 = vpop.eup %3652 }
 0x318   : > { %v5561_v43 = vsel %vm1444_vm2, %v1447_v61, %v1450_v39  ;;  %v1966_v11 = vxor.u32 2147483648, %v5506_v44  ;;  %v2171_v10 = vand.u32 3, %v2170_v21  ;;  %v1854_v23 = vsel %vm5382_vm5, 0, %v1852_v63  ;;  %v3655_v25 = vpop.eup %3654 }
 0x319   : > { %vm1548_vm13 = vcmp.lt.s32.totalorder %v5541_v0, 2  ;;  %vm1652_vm3 = vcmp.lt.s32.totalorder %v1651_v24, 2  ;;  %v2174_v5 = vxor.u32 2147483648, %v3649_v6  ;;  %v2177_v40 = vxor.u32 2147483648, %v3647_v34  ;;  %v3657_v30 = vpop.eup %3656 }
 0x31a   : > { %v2066_v54 = vadd.s32 3, %v2062_v62  ;;  %vm1760_vm1 = vcmp.eq.s32.totalorder %v5552_v60, 2  ;;  %v1659_v20 = vsel %vm1652_vm3, %v1655_v49, %v1658_v35  ;;  %v1969_v29 = vxor.u32 2147483648, %v5493_v16 }
 0x31b   : > { %vm2169_vm6 = vweird.f32 %v6521_v31  ;;  %v1550_v46 = vxor.u32 2147483648, %v3653_v50  ;;  %v1553_v19 = vxor.u32 2147483648, %v3651_v48  ;;  %vm1756_vm5 = vcmp.lt.s32.totalorder %v5552_v60, 2 }
 0x31c   : > { %vm1964_vm9 = vcmp.lt.s32.totalorder %v1963_v7, 2  ;;  %v1858_v32 = vadd.s32 3, %v1854_v23  ;;  %vm1545_vm12 = vweird.f32 %v6514_v17  ;;  %vm1753_vm10 = vweird.f32 %v4853_v22 }
 0x31d   : > { %vm1961_vm15 = vweird.f32 %v6501_v15  ;;  %vm1965_vm0 = vcmp.eq.s32.totalorder %v1963_v7, 0  ;;  %vm1968_vm2 = vcmp.eq.s32.totalorder %v1963_v7, 2  ;;  %vm2173_vm7 = vcmp.eq.s32.totalorder %v2171_v10, 0  ;;  %v3376_v7 = vld [vmem:[%s6333_s3 + $0x38] sm:$0xff] }
 0x31e   : > { %vm2176_vm3 = vcmp.eq.s32.totalorder %v2171_v10, 2  ;;  %v1660_v12 = vsel %vm1649_vm11, nan, %v1659_v20  ;;  %v2175_v58 = vsel %vm2173_vm7, %v3647_v34, %v2174_v5  ;;  %v2067_v8 = vand.u32 3, %v2066_v54 }
 0x31f   : > { %v2178_v9 = vsel %vm2176_vm3, %v2177_v40, %v3649_v6  ;;  %v1967_v2 = vsel %vm1965_vm0, %v5493_v16, %v1966_v11  ;;  %v1970_v55 = vsel %vm1968_vm2, %v1969_v29, %v5506_v44  ;;  %v2070_v37 = vxor.u32 2147483648, %v3657_v30  ;;  %v3659_v41 = vpop.eup %3658  ;;  %v2199_v40 = vpop.permute.xlu1 %2198 }
 0x320   : > { %v2073_v38 = vxor.u32 2147483648, %v3655_v25  ;;  %v1551_v3 = vsel %vm1549_vm8, %v3651_v48, %v1550_v46  ;;  %v1554_v14 = vsel %vm1552_vm14, %v1553_v19, %v3653_v50  ;;  %vm2172_vm4 = vcmp.lt.s32.totalorder %v2171_v10, 2  ;;  %v3661_v51 = vpop.eup %3660  ;;  %v2194_v50 = vpop.permute.xlu0 %2193 }
 0x321   : > { %v1859_v33 = vand.u32 3, %v1858_v32  ;;  %v1761_v42 = vxor.u32 2147483648, %v3659_v41  ;;  %v2179_v24 = vsel %vm2172_vm4, %v2175_v58, %v2178_v9  ;;  %v1862_v52 = vxor.u32 2147483648, %v5478_v13 }
 0x322   : > { %v1865_v16 = vxor.u32 2147483648, %v5469_v1  ;;  %v1758_v27 = vxor.u32 2147483648, %v3661_v51  ;;  %v1971_v44 = vsel %vm1964_vm9, %v1967_v2, %v1970_v55  ;;  %vm2069_vm7 = vcmp.eq.s32.totalorder %v2067_v8, 0 }
 0x323   : > { %vm2072_vm11 = vcmp.eq.s32.totalorder %v2067_v8, 2  ;;  %v1555_v28 = vsel %vm1548_vm13, %v1551_v3, %v1554_v14  ;;  %v1762_v4 = vsel %vm1760_vm1, %v1761_v42, %v3661_v51  ;;  %v2071_v57 = vsel %vm2069_vm7, %v3655_v25, %v2070_v37 }
 0x324   : > { %v2074_v36 = vsel %vm2072_vm11, %v2073_v38, %v3657_v30  ;;  %vm6533_vm8 = vcmp.eq.s32.totalorder %v5552_v60, 0  ;;  %v2180_v21 = vsel %vm2169_vm6, nan, %v2179_v24  ;;  %vm1861_vm14 = vcmp.eq.s32.totalorder %v1859_v33, 0 }
 0x325   : > { %v1759_v39 = vsel %vm6533_vm8, %v3659_v41, %v1758_v27  ;;  %vm1864_vm4 = vcmp.eq.s32.totalorder %v1859_v33, 2  ;;  %v1863_v61 = vsel %vm1861_vm14, %v5469_v1, %v1862_v52  ;;  %vm2068_vm13 = vcmp.lt.s32.totalorder %v2067_v8, 2 }
 0x326   : > { %v1763_v34 = vsel %vm1756_vm5, %v1759_v39, %v1762_v4  ;;  %v1866_v0 = vsel %vm1864_vm4, %v1865_v16, %v5478_v13  ;;  %v1556_v63 = vsel %vm1545_vm12, nan, %v1555_v28  ;;  %v1972_v31 = vsel %vm1961_vm15, nan, %v1971_v44 }
 0x327   : > { %v1764_v6 = vsel %vm1753_vm10, nan, %v1763_v34  ;;  %v2075_v62 = vsel %vm2068_vm13, %v2071_v57, %v2074_v36  ;;  %vm6534_vm1 = vweird.f32 %v6504_v59  ;;  %v3436_v49 = vpack.c.bf16 %v2180_v21, %v1972_v31  ;;  %v3373_v59 = vld [vmem:[%s6333_s3 + $0x20] sm:$0xff] }
 0x328   : > { %v3432_v48 = vpack.c.bf16 %v1764_v6, %v1556_v63  ;;  %v1452_v60 = vsel %vm6534_vm1, nan, %v5561_v43  ;;  %vm1860_vm6 = vcmp.lt.s32.totalorder %v1859_v33, 2  ;;  %vm2065_vm5 = vweird.f32 %v6513_v56  ;;  %v3374_v56 = vld [vmem:[%s6333_s3 + $0x28] sm:$0xff] }
 0x329   : > { %v3434_v1 = vpack.c.bf16 %v1660_v12, %v1452_v60  ;;  %v1867_v13 = vsel %vm1860_vm6, %v1863_v61, %v1866_v0  ;;  %v2076_v17 = vsel %vm2065_vm5, nan, %v2075_v62  ;;  %vm1857_vm9 = vweird.f32 %v6497_v18  ;;  %v3375_v18 = vld [vmem:[%s6333_s3 + $0x30] sm:$0xff] }
 0x32a   : > { %3433 = vmatprep.subr.bf16.mxu1 %v3432_v48  ;;  %v1868_v22 = vsel %vm1857_vm9, nan, %v1867_v13  ;;  %vm6535_vm12 = vcmask 261120   ;;  %v6536_v35 = vmov 0.0   ;;  %v6540_v62 = vmov 920167782  }
 0x32b   : > { %3435 = vmatpush1.bf16.msra.mxu1 %v3434_v1  ;;  %v3438_v15 = vpack.c.bf16 %v2076_v17, %v1868_v22  ;;  %vm6537_vm10 = vmmov %vm6535_vm12  ;;  %v6541_v22 = vmov 1326507024  }
 0x32c   : > { %3437 = vmatprep.subr.bf16.mxu1 %v3436_v49  ;;  %vm6538_vm15 = vmmov %vm6537_vm10 }
 0x32d   : > { %vm6539_vm0 = vmmov %vm6537_vm10 }
 0x32f   : > { %3439 = vmatpush1.bf16.msra.mxu1 %v3438_v15 }
 0x332   : > { %3381 = vmatmul.mubr.msk.f32.vlgmr.msra.gmra.mrb[0].mxu1 %vm6535_vm12, %v3373_v59 }
 0x333   : > { %2293 = vmatprep.mubr.f32.mxu1 %v6536_v35 }
 0x336   : > { %3382 = vmatmul.mubr.msk.f32.gmra.mrb[2].mxu1 %vm6537_vm10, %v3374_v56 }
 0x337   : > { %2299 = vmatprep.mubr.f32.mxu1 %v6536_v35 }
 0x33a   : > { %3383 = vmatmul.mubr.msk.f32.gmra.mrb[4].mxu1 %vm6538_vm15, %v3375_v18 }
 0x33b   : > { %2305 = vmatprep.mubr.f32.mxu1 %v6536_v35 }
 0x33e   : > { %3384 = vmatmul.mubr.msk.f32.gmra.mrb[6].mxu1 %vm6539_vm0, %v3376_v7 }
 0x405   : > { %v2289_v43 = vpop.f32.mrb[0].mxu1 }
 0x406   : > { %v5629_v11 = vadd.f32 %v2289_v43, %v2194_v50  ;;  %v2291_v10 = vpop.f32.mrb[1].mxu1 }
 0x407   : > { %v5631_v23 = vadd.f32 %v2291_v10, %v2194_v50 }
 0x408   : > { %v2312_v25 = vand.u32 2147483647, %v5629_v11  ;;  %v2315_v5 = vand.u32 2139095040, %v5629_v11 }
 0x409   : > { %v2416_v54 = vand.u32 2147483647, %v5631_v23  ;;  %v2419_v30 = vand.u32 2139095040, %v5631_v23  ;;  %v2295_v20 = vpop.f32.mrb[2].mxu1 }
 0x40a   : > { %v2316_v29 = vshrl.u32 %v2315_v5, 23  ;;  %v5637_v46 = vadd.f32 %v2295_v20, %v2199_v40  ;;  %v2297_v19 = vpop.f32.mrb[3].mxu1  ;;  %v2319_v32 = vand.u32 8388607, %v2312_v25 }
 0x40b   : > { %v2420_v12 = vshrl.u32 %v2419_v30, 23  ;;  %v2423_v58 = vand.u32 8388607, %v2416_v54  ;;  %v5650_v44 = vadd.f32 %v2297_v19, %v2199_v40 }
 0x40c   : > { %v3385_v9 = vadd.s32 4294967169, %v2316_v29  ;;  %v2523_v2 = vand.u32 2139095040, %v5637_v46  ;;  %v2320_v38 = vor.u32 8388608, %v2319_v32  ;;  %v6417_v39 = vand.u32 2147483647, %v5637_v46 }
 0x40d   : > { %v3389_v8 = vadd.s32 4294967169, %v2420_v12  ;;  %v5644_v55 = vpop.f32.mrb[4].mxu1  ;;  %v2424_v41 = vor.u32 8388608, %v2423_v58 }
 0x40e   : > { %v2322_v37 = vadd.s32 1, %v3385_v9  ;;  %v2524_v14 = vshrl.u32 %v2523_v2, 23  ;;  %v5646_v33 = vpop.f32.mrb[5].mxu1  ;;  %v5654_v4 = vshll.u32 %v2320_v38, 8 }
 0x40f   : > { %v2426_v3 = vadd.s32 1, %v3389_v8  ;;  %v5658_v36 = vshll.u32 %v2424_v41, 8 }
 0x410   : > { %vm2323_vm2 = vcmp.gt.s32.totalorder %v2322_v37, 0  ;;  %v3393_v42 = vadd.s32 4294967169, %v2524_v14 }
 0x411   : > { %v2324_v51 = vsel %vm2323_vm2, %v2322_v37, 0  ;;  %vm2427_vm3 = vcmp.gt.s32.totalorder %v2426_v3, 0  ;;  %v5648_v24 = vpop.f32.mrb[6].mxu1 }
 0x412   : > { %v2325_v52 = vshrl.u32 %v2324_v51, 5  ;;  %v2326_v16 = vand.u32 31, %v2324_v51  ;;  %v2428_v27 = vsel %vm2427_vm3, %v2426_v3, 0  ;;  %v5652_v28 = vpop.f32.mrb[7].mxu1  ;;  %v5662_v0 = vadd.s32 1, %v3393_v42 }
 0x413   : > { %v5656_v57 = vshrl.u32 %v2428_v27, 5  ;;  %v2430_v61 = vand.u32 31, %v2428_v27 }
 0x414   : > { %v2327_v21 = vsub.s32 32, %v2326_v16  ;;  %v2329_v34 = vshll.u32 %v6431_v26, %v2326_v16  ;;  %v2332_v63 = vshll.u32 %v6438_v45, %v2326_v16  ;;  %v2335_v6 = vshll.u32 %v6435_v47, %v2326_v16 }
 0x415   : > { %v2338_v31 = vshll.u32 %v6432_v53, %v2326_v16  ;;  %v2341_v48 = vshll.u32 %v6540_v62, %v2326_v16  ;;  %vm2344_vm7 = vcmp.lt.s32.totalorder %v2325_v52, 1  ;;  %vm2345_vm11 = vcmp.lt.s32.totalorder %v2325_v52, 2 }
 0x416   : > { %v2330_v60 = vshrl.u32 %v6438_v45, %v2327_v21  ;;  %v2333_v49 = vshrl.u32 %v6435_v47, %v2327_v21  ;;  %v2336_v1 = vshrl.u32 %v6432_v53, %v2327_v21  ;;  %v2328_v13 = vshrl.u32 %v6431_v26, %v2327_v21 }
 0x417   : > { %v2339_v17 = vshrl.u32 %v6540_v62, %v2327_v21  ;;  %v2342_v15 = vshrl.u32 %v6541_v22, %v2327_v21  ;;  %v2431_v18 = vsub.s32 32, %v2430_v61  ;;  %vm2346_vm8 = vcmp.lt.s32.totalorder %v2325_v52, 3 }
 0x418   : > { %v2331_v59 = vor.u32 %v2330_v60, %v2329_v34  ;;  %v2334_v35 = vor.u32 %v2333_v49, %v2332_v63  ;;  %v2337_v56 = vor.u32 %v2336_v1, %v2335_v6  ;;  %vm2347_vm14 = vcmp.lt.s32.totalorder %v2325_v52, 4 }
 0x419   : > { %v2340_v7 = vor.u32 %v2339_v17, %v2338_v31  ;;  %v2343_v50 = vor.u32 %v2342_v15, %v2341_v48  ;;  %v2433_v19 = vshll.u32 %v6431_v26, %v2430_v61  ;;  %v2434_v58 = vshrl.u32 %v6438_v45, %v2431_v18 }
 0x41a   : > { %v2348_v43 = vsel %vm2344_vm7, %v2328_v13, %v2331_v59  ;;  %v2349_v10 = vsel %vm2347_vm14, %v2337_v56, 2102212464  ;;  %v2352_v5 = vsel %vm2344_vm7, %v2331_v59, %v2334_v35  ;;  %v2356_v40 = vsel %vm2344_vm7, %v2334_v35, %v2337_v56 }
 0x41b   : > { %v2350_v30 = vsel %vm2346_vm8, %v2334_v35, %v2349_v10  ;;  %v2353_v20 = vsel %vm2347_vm14, %v2340_v7, 920167782  ;;  %v2357_v29 = vsel %vm2347_vm14, %v2343_v50, 1326507024  ;;  %v2436_v9 = vshll.u32 %v6438_v45, %v2430_v61 }
 0x41c   : > { %v2354_v32 = vsel %vm2346_vm8, %v2337_v56, %v2353_v20  ;;  %v2358_v12 = vsel %vm2346_vm8, %v2340_v7, %v2357_v29  ;;  %v2351_v8 = vsel %vm2345_vm11, %v2348_v43, %v2350_v30  ;;  %v2437_v38 = vshrl.u32 %v6435_v47, %v2431_v18 }
 0x41d   : > { %v2355_v2 = vsel %vm2345_vm11, %v2352_v5, %v2354_v32  ;;  %v2359_v37 = vsel %vm2345_vm11, %v2356_v40, %v2358_v12  ;;  %v2435_v42 = vor.u32 %v2434_v58, %v2433_v19  ;;  %v2439_v27 = vshll.u32 %v6435_v47, %v2430_v61 }
 0x41e   : > { %v5685_v41 = vmul.u32.u64.low %v5654_v4, %v2359_v37  ;;  %v5686_v3 = vmul.u32.u64.high %v5654_v4, %v2359_v37, %v5685_v41  ;;  %v5689_v14 = vmul.u32.u64.low %v5654_v4, %v2355_v2  ;;  %v5690_v51 = vmul.u32.u64.high %v5654_v4, %v2355_v2, %v5689_v14 }
 0x41f   : > { %v2438_v16 = vor.u32 %v2437_v38, %v2436_v9  ;;  %v2440_v21 = vshrl.u32 %v6432_v53, %v2431_v18  ;;  %v2432_v52 = vshrl.u32 %v6431_v26, %v2431_v18  ;;  %v2442_v34 = vshll.u32 %v6432_v53, %v2430_v61 }
 0x420   : > { %v2443_v63 = vshrl.u32 %v6540_v62, %v2431_v18  ;;  %v2446_v6 = vshrl.u32 %v6541_v22, %v2431_v18  ;;  %v2367_v31 = vmul.u32 %v5654_v4, %v2351_v8  ;;  %v2445_v60 = vshll.u32 %v6540_v62, %v2430_v61 }
 0x421   : > { %v2441_v48 = vor.u32 %v2440_v21, %v2439_v27  ;;  %vm2448_vm4 = vcmp.lt.s32.totalorder %v5656_v57, 1  ;;  %vm2369_vm13 = vc.u32 %v5686_v3, %v5689_v14  ;;  %v2370_v49 = vadd.s32 1, %v5690_v51 }
 0x422   : > { %v2444_v1 = vor.u32 %v2443_v63, %v2442_v34  ;;  %vm2449_vm1 = vcmp.lt.s32.totalorder %v5656_v57, 2  ;;  %v2447_v13 = vor.u32 %v2446_v6, %v2445_v60  ;;  %vm2450_vm6 = vcmp.lt.s32.totalorder %v5656_v57, 3 }
 0x423   : > { %vm2451_vm5 = vcmp.lt.s32.totalorder %v5656_v57, 4  ;;  %v2456_v17 = vsel %vm2448_vm4, %v2435_v42, %v2438_v16  ;;  %v2371_v4 = vsel %vm2369_vm13, %v2370_v49, %v5690_v51  ;;  %v2460_v59 = vsel %vm2448_vm4, %v2438_v16, %v2441_v48 }
 0x424   : > { %v2453_v15 = vsel %vm2451_vm5, %v2441_v48, 2102212464  ;;  %v2457_v61 = vsel %vm2451_vm5, %v2444_v1, 920167782  ;;  %v2372_v35 = vadd.s32 %v2371_v4, %v2367_v31  ;;  %v2452_v56 = vsel %vm2448_vm4, %v2432_v52, %v2435_v42 }
 0x425   : > { %v2458_v18 = vsel %vm2450_vm6, %v2441_v48, %v2457_v61  ;;  %v2461_v7 = vsel %vm2451_vm5, %v2447_v13, 1326507024  ;;  %v2454_v50 = vsel %vm2450_vm6, %v2438_v16, %v2453_v15  ;;  %vm2531_vm9 = vcmp.gt.s32.totalorder %v5662_v0, 0 }
 0x426   : > { %v2459_v43 = vsel %vm2449_vm1, %v2456_v17, %v2458_v18  ;;  %v2462_v10 = vsel %vm2450_vm6, %v2444_v1, %v2461_v7  ;;  %v2373_v5 = vadd.s32 536870912, %v2372_v35  ;;  %v2527_v32 = vand.u32 8388607, %v6417_v39 }
 0x427   : > { %v2463_v40 = vsel %vm2449_vm1, %v2460_v59, %v2462_v10  ;;  %v5715_v30 = vmul.u32.u64.low %v5658_v36, %v2459_v43  ;;  %v5716_v20 = vmul.u32.u64.high %v5658_v36, %v2459_v43, %v5715_v30  ;;  %v2532_v12 = vsel %vm2531_vm9, %v5662_v0, 0 }
 0x428   : > { %v5720_v29 = vmul.u32.u64.low %v5658_v36, %v2463_v40  ;;  %v5721_v19 = vmul.u32.u64.high %v5658_v36, %v2463_v40, %v5720_v29  ;;  %v5726_v58 = vshrl.u32 %v2373_v5, 30  ;;  %v2455_v9 = vsel %vm2449_vm1, %v2452_v56, %v2454_v50 }
 0x429   : > { %v2534_v8 = vand.u32 31, %v2532_v12  ;;  %v2627_v2 = vand.u32 2139095040, %v5650_v44  ;;  %v2474_v38 = vadd.s32 1, %v5716_v20  ;;  %v2471_v51 = vmul.u32 %v5658_v36, %v2455_v9 }
 0x42a   : > { %v2375_v37 = vshll.u32 %v5726_v58, 30  ;;  %vm2473_vm12 = vc.u32 %v5721_v19, %v5715_v30  ;;  %v2528_v42 = vor.u32 8388608, %v2527_v32  ;;  %v2533_v6 = vshrl.u32 %v2532_v12, 5 }
 0x42b   : > { %v2535_v41 = vsub.s32 32, %v2534_v8  ;;  %v2475_v16 = vsel %vm2473_vm12, %v2474_v38, %v5716_v20  ;;  %v2628_v57 = vshrl.u32 %v2627_v2, 23  ;;  %v2537_v21 = vshll.u32 %v6431_v26, %v2534_v8 }
 0x42c   : > { %v5736_v0 = vsub.s32 %v2372_v35, %v2375_v37  ;;  %v2476_v27 = vadd.s32 %v2475_v16, %v2471_v51  ;;  %v2540_v36 = vshll.u32 %v6438_v45, %v2534_v8  ;;  %v2543_v49 = vshll.u32 %v6435_v47, %v2534_v8 }
 0x42d   : > { %v2538_v52 = vshrl.u32 %v6438_v45, %v2535_v41  ;;  %v2541_v34 = vshrl.u32 %v6435_v47, %v2535_v41  ;;  %v2544_v31 = vshrl.u32 %v6432_v53, %v2535_v41  ;;  %v2568_v1 = vshll.u32 %v2528_v42, 8 }
 0x42e   : > { %v2378_v63 = vsub.s32 0, %v5736_v0  ;;  %v2477_v48 = vadd.s32 536870912, %v2476_v27  ;;  %v2546_v4 = vshll.u32 %v6432_v53, %v2534_v8  ;;  %v2547_v15 = vshrl.u32 %v6540_v62, %v2535_v41 }
 0x42f   : > { %v2539_v60 = vor.u32 %v2538_v52, %v2537_v21  ;;  %v2542_v17 = vor.u32 %v2541_v34, %v2540_v36  ;;  %v2545_v59 = vor.u32 %v2544_v31, %v2543_v49  ;;  %v2549_v35 = vshll.u32 %v6540_v62, %v2534_v8 }
 0x430   : > { %v3386_v13 = vmin.u32 %v2378_v63, %v5736_v0  ;;  %v5749_v61 = vshrl.u32 %v2477_v48, 30  ;;  %v2550_v56 = vshrl.u32 %v6541_v22, %v2535_v41  ;;  %v2548_v7 = vor.u32 %v2547_v15, %v2546_v4 }
 0x431   : > { %vm2552_vm10 = vcmp.lt.s32.totalorder %v2533_v6, 1  ;;  %v3397_v50 = vadd.s32 4294967169, %v2628_v57  ;;  %vm2553_vm15 = vcmp.lt.s32.totalorder %v2533_v6, 2  ;;  %vm2555_vm0 = vcmp.lt.s32.totalorder %v2533_v6, 4 }
 0x432   : > { %v2380_v18 = vclz %v3386_v13  ;;  %v2479_v43 = vshll.u32 %v5749_v61, 30  ;;  %v2551_v10 = vor.u32 %v2550_v56, %v2549_v35  ;;  %vm2554_vm2 = vcmp.lt.s32.totalorder %v2533_v6, 3 }
 0x433   : > { %v2560_v40 = vsel %vm2552_vm10, %v2539_v60, %v2542_v17  ;;  %v2561_v20 = vsel %vm2555_vm0, %v2548_v7, 920167782  ;;  %v2557_v32 = vsel %vm2555_vm0, %v2545_v59, 2102212464  ;;  %v2564_v9 = vsel %vm2552_vm10, %v2542_v17, %v2545_v59 }
 0x434   : > { %v3387_v5 = vadd.s32 4294967294, %v2380_v18  ;;  %v5755_v29 = vsub.s32 %v2476_v27, %v2479_v43  ;;  %v2562_v12 = vsel %vm2554_vm2, %v2545_v59, %v2561_v20  ;;  %v2536_v8 = vshrl.u32 %v6431_v26, %v2535_v41 }
 0x435   : > { %v2563_v2 = vsel %vm2553_vm15, %v2560_v40, %v2562_v12  ;;  %v2565_v37 = vsel %vm2555_vm0, %v2551_v10, 1326507024  ;;  %v2634_v16 = vadd.s32 1, %v3397_v50  ;;  %v2558_v21 = vsel %vm2554_vm2, %v2542_v17, %v2557_v32  ;;  %v2204_v40 = vpop.permute.xlu0 %2203 }
 0x436   : > { %vm3388_vm3 = vcmp.lt.s32.totalorder %v3387_v5, 0  ;;  %v2482_v51 = vsub.s32 0, %v5755_v29  ;;  %v2566_v42 = vsel %vm2554_vm2, %v2548_v7, %v2565_v37  ;;  %v2556_v27 = vsel %vm2552_vm10, %v2536_v8, %v2539_v60 }
 0x437   : > { %v2383_v38 = vsel %vm3388_vm3, 0, %v3387_v5  ;;  %v2567_v52 = vsel %vm2553_vm15, %v2564_v9, %v2566_v42  ;;  %vm2635_vm7 = vcmp.gt.s32.totalorder %v2634_v16, 0  ;;  %v6416_v49 = vand.u32 2147483647, %v5650_v44 }
 0x438   : > { %v2388_v57 = vsub.s32 4294967266, %v2383_v38  ;;  %v3390_v34 = vmin.u32 %v2482_v51, %v5755_v29  ;;  %v5767_v63 = vmul.u32.u64.low %v2568_v1, %v2567_v52  ;;  %v5768_v41 = vmul.u32.u64.high %v2568_v1, %v2567_v52, %v5767_v63 }
 0x439   : > { %v5770_v36 = vmul.u32.u64.low %v2568_v1, %v2563_v2  ;;  %v5771_v31 = vmul.u32.u64.high %v2568_v1, %v2563_v2, %v5770_v36  ;;  %v2636_v13 = vsel %vm2635_vm7, %v2634_v16, 0  ;;  %v2384_v4 = vsub.s32 32, %v2383_v38 }
 0x43a   : > { %v2484_v48 = vclz %v3390_v34  ;;  %v2389_v60 = vadd.s32 127, %v2388_v57  ;;  %v2559_v17 = vsel %vm2553_vm15, %v2556_v27, %v2558_v21  ;;  %v2638_v15 = vand.u32 31, %v2636_v13 }
 0x43b   : > { %vm2577_vm11 = vc.u32 %v5768_v41, %v5770_v36  ;;  %v2368_v35 = vadd.s32 %v5689_v14, %v5686_v3  ;;  %v2578_v56 = vadd.s32 1, %v5771_v31  ;;  %v2575_v18 = vmul.u32 %v2568_v1, %v2559_v17 }
 0x43c   : > { %v3391_v59 = vadd.s32 4294967294, %v2484_v48  ;;  %v2631_v7 = vand.u32 8388607, %v6416_v49  ;;  %v2390_v43 = vshll.u32 %v2389_v60, 23  ;;  %v2639_v10 = vsub.s32 32, %v2638_v15 }
 0x43d   : > { %v2386_v50 = vshrl.u32 %v2368_v35, %v2384_v4  ;;  %v2579_v6 = vsel %vm2577_vm11, %v2578_v56, %v5771_v31  ;;  %v2385_v20 = vshll.u32 %v5736_v0, %v2383_v38  ;;  %v5786_v3 = vadd.f32 %v5644_v55, %v2204_v40 }
 0x43e   : > { %vm3392_vm8 = vcmp.lt.s32.totalorder %v3391_v59, 0  ;;  %v2580_v5 = vadd.s32 %v2579_v6, %v2575_v18  ;;  %v2632_v9 = vor.u32 8388608, %v2631_v7  ;;  %v2391_v1 = vor.u32 4788187, %v2390_v43 }
 0x43f   : > { %v2487_v32 = vsel %vm3392_vm8, 0, %v3391_v59  ;;  %v2387_v14 = vor.u32 %v2386_v50, %v2385_v20  ;;  %v2642_v8 = vshrl.u32 %v6438_v45, %v2639_v10  ;;  %v2645_v2 = vshrl.u32 %v6435_v47, %v2639_v10 }
 0x440   : > { %v2581_v12 = vadd.s32 536870912, %v2580_v5  ;;  %v2492_v37 = vsub.s32 4294967266, %v2487_v32  ;;  %v2648_v42 = vshrl.u32 %v6432_v53, %v2639_v10  ;;  %v2651_v16 = vshrl.u32 %v6540_v62, %v2639_v10 }
 0x441   : > { %v2641_v0 = vshll.u32 %v6431_v26, %v2638_v15  ;;  %v2644_v38 = vshll.u32 %v6438_v45, %v2638_v15  ;;  %v2650_v55 = vshll.u32 %v6432_v53, %v2638_v15  ;;  %v2654_v57 = vshrl.u32 %v6541_v22, %v2639_v10 }
 0x442   : > { %v5790_v51 = vshrl.u32 %v2581_v12, 30  ;;  %v2637_v21 = vshrl.u32 %v2636_v13, 5  ;;  %v2647_v52 = vshll.u32 %v6435_v47, %v2638_v15  ;;  %v5801_v34 = vadd.f32 %v5646_v33, %v2204_v40 }
 0x443   : > { %v2643_v63 = vor.u32 %v2642_v8, %v2641_v0  ;;  %v2646_v31 = vor.u32 %v2645_v2, %v2644_v38  ;;  %v2652_v48 = vor.u32 %v2651_v16, %v2650_v55  ;;  %v2653_v4 = vshll.u32 %v6540_v62, %v2638_v15 }
 0x444   : > { %v2583_v27 = vshll.u32 %v5790_v51, 30  ;;  %v2472_v60 = vadd.s32 %v5715_v30, %v5721_v19  ;;  %v2493_v17 = vadd.s32 127, %v2492_v37  ;;  %v2649_v35 = vor.u32 %v2648_v42, %v2647_v52 }
 0x445   : > { %v2392_v56 = vand.u32 2147483647, %v2391_v1  ;;  %v2394_v18 = vcvt.s32.f32 %v2387_v14  ;;  %v2655_v13 = vor.u32 %v2654_v57, %v2653_v4  ;;  %v2672_v7 = vshll.u32 %v2632_v9, 8 }
 0x446   : > { %v5806_v59 = vsub.s32 %v2580_v5, %v2583_v27  ;;  %v2488_v50 = vsub.s32 32, %v2487_v32  ;;  %vm2656_vm14 = vcmp.lt.s32.totalorder %v2637_v21, 1  ;;  %vm2659_vm4 = vcmp.lt.s32.totalorder %v2637_v21, 4 }
 0x447   : > { %v2640_v43 = vshrl.u32 %v6431_v26, %v2639_v10  ;;  %vm2658_vm13 = vcmp.lt.s32.totalorder %v2637_v21, 3  ;;  %v2664_v15 = vsel %vm2656_vm14, %v2643_v63, %v2646_v31  ;;  %v2665_v6 = vsel %vm2659_vm4, %v2652_v48, 920167782 }
 0x448   : > { %v2586_v33 = vsub.s32 0, %v5806_v59  ;;  %v2494_v30 = vshll.u32 %v2493_v17, 23  ;;  %vm2657_vm1 = vcmp.lt.s32.totalorder %v2637_v21, 2  ;;  %v2661_v19 = vsel %vm2659_vm4, %v2649_v35, 2102212464 }
 0x449   : > { %v2666_v5 = vsel %vm2658_vm13, %v2649_v35, %v2665_v6  ;;  %v2668_v12 = vsel %vm2656_vm14, %v2646_v31, %v2649_v35  ;;  %v2669_v9 = vsel %vm2659_vm4, %v2655_v13, 1326507024  ;;  %v2489_v14 = vshll.u32 %v5755_v29, %v2487_v32 }
 0x44a   : > { %v3394_v40 = vmin.u32 %v2586_v33, %v5806_v59  ;;  %v2667_v20 = vsel %vm2657_vm1, %v2664_v15, %v2666_v5  ;;  %v2490_v1 = vshrl.u32 %v2472_v60, %v2488_v50  ;;  %v2660_v10 = vsel %vm2656_vm14, %v2640_v43, %v2643_v63  ;;  %v5841_v5 = vpop.permute.xlu1 %2208 }
 0x44b   : > { %v2670_v8 = vsel %vm2658_vm13, %v2652_v48, %v2669_v9  ;;  %v2662_v2 = vsel %vm2658_vm13, %v2646_v31, %v2661_v19  ;;  %v5817_v42 = vmul.u32.u64.low %v2672_v7, %v2667_v20  ;;  %v5818_v16 = vmul.u32.u64.high %v2672_v7, %v2667_v20, %v5817_v42 }
 0x44c   : > { %v2671_v37 = vsel %vm2657_vm1, %v2668_v12, %v2670_v8  ;;  %v2395_v0 = vmul.f32 %v2394_v18, %v2392_v56  ;;  %v2495_v38 = vor.u32 4788187, %v2494_v30  ;;  %v2588_v27 = vclz %v3394_v40 }
 0x44d   : > { %v5821_v55 = vmul.u32.u64.low %v2672_v7, %v2671_v37  ;;  %v5822_v57 = vmul.u32.u64.high %v2672_v7, %v2671_v37, %v5821_v55  ;;  %v2731_v52 = vand.u32 2139095040, %v5786_v3  ;;  %v2491_v29 = vor.u32 %v2490_v1, %v2489_v14 }
 0x44e   : > { %v2663_v32 = vsel %vm2657_vm1, %v2660_v10, %v2662_v2  ;;  %v2835_v63 = vand.u32 2139095040, %v5801_v34  ;;  %v2682_v31 = vadd.s32 1, %v5818_v16  ;;  %v2396_v4 = vxor.u32 2147483648, %v2395_v0 }
 0x44f   : > { %v2732_v48 = vshrl.u32 %v2731_v52, 23  ;;  %v2398_v60 = vsub.s32 4, %v5726_v58  ;;  %v2496_v17 = vand.u32 2147483647, %v2495_v38  ;;  %v6415_v35 = vand.u32 2147483647, %v5786_v3 }
 0x450   : > { %v3395_v56 = vadd.s32 4294967294, %v2588_v27  ;;  %v2679_v18 = vmul.u32 %v2672_v7, %v2663_v32  ;;  %vm2681_vm6 = vc.u32 %v5822_v57, %v5817_v42  ;;  %v2498_v50 = vcvt.s32.f32 %v2491_v29 }
 0x451   : > { %v3401_v13 = vadd.s32 4294967169, %v2732_v48  ;;  %v2683_v21 = vsel %vm2681_vm6, %v2682_v31, %v5818_v16  ;;  %v2836_v33 = vshrl.u32 %v2835_v63, 23  ;;  %vm2314_vm5 = vcmp.lt.s32.totalorder %v5629_v11, 0 }
 0x452   : > { %v2684_v43 = vadd.s32 %v2683_v21, %v2679_v18  ;;  %v2397_v6 = vsel %vm2314_vm5, %v2396_v4, %v2395_v0  ;;  %v5835_v30 = vsel %vm2314_vm5, %v2398_v60, %v5726_v58  ;;  %v5837_v19 = vmul.f32 %v2498_v50, %v2496_v17 }
 0x453   : > { %v2738_v15 = vadd.s32 1, %v3401_v13  ;;  %v2735_v7 = vand.u32 8388607, %v6415_v35  ;;  %vm3396_vm9 = vcmp.lt.s32.totalorder %v3395_v56, 0  ;;  %v3405_v20 = vadd.s32 4294967169, %v2836_v33 }
 0x454   : > { %v2685_v40 = vadd.s32 536870912, %v2684_v43  ;;  %vm5845_vm10 = vcmp.le.f32.partialorder %v2312_v25, 0.7853982  ;;  %v5851_v58 = vadd.f32 %v5648_v24, %v5841_v5  ;;  %v5858_v1 = vadd.s32 %v5770_v36, %v5768_v41 }
 0x455   : > { %vm2739_vm12 = vcmp.gt.s32.totalorder %v2738_v15, 0  ;;  %v5865_v25 = vsel %vm5845_vm10, %v5629_v11, %v2397_v6  ;;  %v2500_v2 = vxor.u32 2147483648, %v5837_v19  ;;  %v5868_v24 = vsel %vm3396_vm9, 0, %v3395_v56 }
 0x456   : > { %v2740_v9 = vsel %vm2739_vm12, %v2738_v15, 0  ;;  %v5860_v10 = vshrl.u32 %v2685_v40, 30  ;;  %v2736_v0 = vor.u32 8388608, %v2735_v7  ;;  %v2842_v41 = vadd.s32 1, %v3405_v20 }
 0x457   : > { %v2742_v8 = vand.u32 31, %v2740_v9  ;;  %v2741_v36 = vshrl.u32 %v2740_v9, 5  ;;  %v6414_v50 = vand.u32 2147483647, %v5801_v34  ;;  %vm2418_vm15 = vcmp.lt.s32.totalorder %v5631_v23, 0 }
 0x458   : > { %v2687_v16 = vshll.u32 %v5860_v10, 30  ;;  %v2596_v21 = vsub.s32 4294967266, %v5868_v24  ;;  %v2776_v7 = vshll.u32 %v2736_v0, 8  ;;  %vm2843_vm2 = vcmp.gt.s32.totalorder %v2842_v41, 0 }
 0x459   : > { %v2743_v38 = vsub.s32 32, %v2742_v8  ;;  %v2745_v55 = vshll.u32 %v6431_v26, %v2742_v8  ;;  %v2748_v27 = vshll.u32 %v6438_v45, %v2742_v8  ;;  %v2751_v52 = vshll.u32 %v6435_v47, %v2742_v8 }
 0x45a   : > { %v5875_v29 = vsub.s32 %v2684_v43, %v2687_v16  ;;  %v2754_v31 = vshll.u32 %v6432_v53, %v2742_v8  ;;  %v2757_v60 = vshll.u32 %v6540_v62, %v2742_v8  ;;  %vm2760_vm0 = vcmp.lt.s32.totalorder %v2741_v36, 1 }
 0x45b   : > { %v2746_v32 = vshrl.u32 %v6438_v45, %v2743_v38  ;;  %v2749_v63 = vshrl.u32 %v6435_v47, %v2743_v38  ;;  %v2752_v48 = vshrl.u32 %v6432_v53, %v2743_v38  ;;  %v2755_v4 = vshrl.u32 %v6540_v62, %v2743_v38 }
 0x45c   : > { %v2758_v17 = vshrl.u32 %v6541_v22, %v2743_v38  ;;  %v2690_v56 = vsub.s32 0, %v5875_v29  ;;  %v2744_v40 = vshrl.u32 %v6431_v26, %v2743_v38  ;;  %vm2761_vm3 = vcmp.lt.s32.totalorder %v2741_v36, 2 }
 0x45d   : > { %v2747_v18 = vor.u32 %v2746_v32, %v2745_v55  ;;  %v2750_v13 = vor.u32 %v2749_v63, %v2748_v27  ;;  %v2753_v33 = vor.u32 %v2752_v48, %v2751_v52  ;;  %v2756_v43 = vor.u32 %v2755_v4, %v2754_v31 }
 0x45e   : > { %v2759_v15 = vor.u32 %v2758_v17, %v2757_v60  ;;  %v3398_v6 = vmin.u32 %v2690_v56, %v5875_v29  ;;  %vm2763_vm7 = vcmp.lt.s32.totalorder %v2741_v36, 4  ;;  %vm2762_vm11 = vcmp.lt.s32.totalorder %v2741_v36, 3 }
 0x45f   : > { %v2768_v20 = vsel %vm2760_vm0, %v2747_v18, %v2750_v13  ;;  %v2765_v8 = vsel %vm2763_vm7, %v2753_v33, 2102212464  ;;  %v2769_v16 = vsel %vm2763_vm7, %v2756_v43, 920167782  ;;  %v2764_v55 = vsel %vm2760_vm0, %v2744_v40, %v2747_v18 }
 0x460   : > { %v2692_v9 = vclz %v3398_v6  ;;  %v2770_v27 = vsel %vm2762_vm11, %v2753_v33, %v2769_v16  ;;  %v2772_v32 = vsel %vm2760_vm0, %v2750_v13, %v2753_v33  ;;  %v2773_v52 = vsel %vm2763_vm7, %v2759_v15, 1326507024 }
 0x461   : > { %v2766_v31 = vsel %vm2762_vm11, %v2750_v13, %v2765_v8  ;;  %v2771_v48 = vsel %vm2761_vm3, %v2768_v20, %v2770_v27  ;;  %v2774_v4 = vsel %vm2762_vm11, %v2756_v43, %v2773_v52  ;;  %v2597_v0 = vadd.s32 127, %v2596_v21 }
 0x462   : > { %v3399_v63 = vadd.s32 4294967294, %v2692_v9  ;;  %v2775_v60 = vsel %vm2761_vm3, %v2772_v32, %v2774_v4  ;;  %v5892_v38 = vmul.u32.u64.low %v2776_v7, %v2771_v48  ;;  %v5893_v17 = vmul.u32.u64.high %v2776_v7, %v2771_v48, %v5892_v38 }
 0x463   : > { %v5896_v56 = vmul.u32.u64.low %v2776_v7, %v2775_v60  ;;  %v5897_v6 = vmul.u32.u64.high %v2776_v7, %v2775_v60, %v5896_v56  ;;  %v2844_v18 = vsel %vm2843_vm2, %v2842_v41, 0  ;;  %v2767_v13 = vsel %vm2761_vm3, %v2764_v55, %v2766_v31 }
 0x464   : > { %vm3400_vm8 = vcmp.lt.s32.totalorder %v3399_v63, 0  ;;  %v2839_v43 = vand.u32 8388607, %v6414_v50  ;;  %v2846_v21 = vand.u32 31, %v2844_v18  ;;  %v5908_v15 = vsel %vm2418_vm15, %v2500_v2, %v5837_v19 }
 0x465   : > { %v5900_v33 = vsel %vm3400_vm8, 0, %v3399_v63  ;;  %v2592_v40 = vsub.s32 32, %v5868_v24  ;;  %v2939_v9 = vand.u32 2139095040, %v5851_v58  ;;  %v2786_v8 = vadd.s32 1, %v5893_v17 }
 0x466   : > { %v2700_v36 = vsub.s32 4294967266, %v5900_v33  ;;  %v2847_v16 = vsub.s32 32, %v2846_v21  ;;  %v2598_v55 = vshll.u32 %v2597_v0, 23  ;;  %v2680_v27 = vadd.s32 %v5817_v42, %v5822_v57 }
 0x467   : > { %v2783_v19 = vmul.u32 %v2776_v7, %v2767_v13  ;;  %vm2785_vm14 = vc.u32 %v5897_v6, %v5892_v38  ;;  %v2840_v32 = vor.u32 8388608, %v2839_v43  ;;  %v2696_v31 = vsub.s32 32, %v5900_v33 }
 0x468   : > { %v2787_v2 = vsel %vm2785_vm14, %v2786_v8, %v5893_v17  ;;  %v2850_v52 = vshrl.u32 %v6438_v45, %v2847_v16  ;;  %v2853_v63 = vshrl.u32 %v6435_v47, %v2847_v16  ;;  %v2845_v4 = vshrl.u32 %v2844_v18, 5 }
 0x469   : > { %v2788_v48 = vadd.s32 %v2787_v2, %v2783_v19  ;;  %v2940_v60 = vshrl.u32 %v2939_v9, 23  ;;  %v2701_v0 = vadd.s32 127, %v2700_v36  ;;  %v2849_v56 = vshll.u32 %v6431_v26, %v2846_v21 }
 0x46a   : > { %v2852_v42 = vshll.u32 %v6438_v45, %v2846_v21  ;;  %v2856_v57 = vshrl.u32 %v6432_v53, %v2847_v16  ;;  %v2855_v17 = vshll.u32 %v6435_v47, %v2846_v21  ;;  %v2858_v13 = vshll.u32 %v6432_v53, %v2846_v21 }
 0x46b   : > { %v2789_v7 = vadd.s32 536870912, %v2788_v48  ;;  %v2859_v43 = vshrl.u32 %v6540_v62, %v2847_v16  ;;  %vm5933_vm4 = vcmp.le.f32.partialorder %v2416_v54, 0.7853982  ;;  %v2851_v18 = vor.u32 %v2850_v52, %v2849_v56 }
 0x46c   : > { %v2854_v9 = vor.u32 %v2853_v63, %v2852_v42  ;;  %v2861_v36 = vshll.u32 %v6540_v62, %v2846_v21  ;;  %v2862_v19 = vshrl.u32 %v6541_v22, %v2847_v16  ;;  %v2594_v2 = vshrl.u32 %v5858_v1, %v2592_v40 }
 0x46d   : > { %v5940_v50 = vshrl.u32 %v2789_v7, 30  ;;  %v2857_v35 = vor.u32 %v2856_v57, %v2855_v17  ;;  %v2860_v14 = vor.u32 %v2859_v43, %v2858_v13  ;;  %v2599_v49 = vor.u32 4788187, %v2598_v55 }
 0x46e   : > { %v2863_v39 = vor.u32 %v2862_v19, %v2861_v36  ;;  %v2880_v37 = vshll.u32 %v2840_v32, 8  ;;  %v3409_v20 = vadd.s32 4294967169, %v2940_v60  ;;  %v2702_v54 = vshll.u32 %v2701_v0, 23 }
 0x46f   : > { %v2791_v41 = vshll.u32 %v5940_v50, 30  ;;  %vm2864_vm13 = vcmp.lt.s32.totalorder %v2845_v4, 1  ;;  %vm2867_vm1 = vcmp.lt.s32.totalorder %v2845_v4, 4  ;;  %vm2522_vm6 = vcmp.lt.s32.totalorder %v5637_v46, 0 }
 0x470   : > { %v2697_v21 = vshll.u32 %v5875_v29, %v5900_v33  ;;  %v2698_v52 = vshrl.u32 %v2680_v27, %v2696_v31  ;;  %v2872_v1 = vsel %vm2864_vm13, %v2851_v18, %v2854_v9  ;;  %v2873_v40 = vsel %vm2867_vm1, %v2860_v14, 920167782 }
 0x471   : > { %v5947_v63 = vsub.s32 %v2788_v48, %v2791_v41  ;;  %v2848_v55 = vshrl.u32 %v6431_v26, %v2847_v16  ;;  %vm2866_vm5 = vcmp.lt.s32.totalorder %v2845_v4, 3  ;;  %v2869_v32 = vsel %vm2867_vm1, %v2857_v35, 2102212464 }
 0x472   : > { %vm2865_vm9 = vcmp.lt.s32.totalorder %v2845_v4, 2  ;;  %v2874_v60 = vsel %vm2866_vm5, %v2857_v35, %v2873_v40  ;;  %v2876_v0 = vsel %vm2864_vm13, %v2854_v9, %v2857_v35  ;;  %v2877_v56 = vsel %vm2867_vm1, %v2863_v39, 1326507024 }
 0x473   : > { %v2703_v42 = vor.u32 4788187, %v2702_v54  ;;  %v2794_v57 = vsub.s32 0, %v5947_v63  ;;  %v2868_v29 = vsel %vm2864_vm13, %v2848_v55, %v2851_v18  ;;  %v2875_v33 = vsel %vm2865_vm9, %v2872_v1, %v2874_v60 }
 0x474   : > { %v2870_v27 = vsel %vm2866_vm5, %v2854_v9, %v2869_v32  ;;  %v2878_v31 = vsel %vm2866_vm5, %v2860_v14, %v2877_v56  ;;  %v5954_v41 = vmul.u32.u64.low %v2880_v37, %v2875_v33  ;;  %v5955_v48 = vmul.u32.u64.high %v2880_v37, %v2875_v33, %v5954_v41 }
 0x475   : > { %v2504_v16 = vsel %vm5933_vm4, %v5631_v23, %v5908_v15  ;;  %v3402_v39 = vmin.u32 %v2794_v57, %v5947_v63  ;;  %v2879_v35 = vsel %vm2865_vm9, %v2876_v0, %v2878_v31  ;;  %v2946_v7 = vadd.s32 1, %v3409_v20 }
 0x476   : > { %v6546_v17 = vshll.u32 %v5806_v59, %v5868_v24  ;;  %v2699_v43 = vor.u32 %v2698_v52, %v2697_v21  ;;  %v5967_v14 = vmul.u32.u64.low %v2880_v37, %v2879_v35  ;;  %v5968_v18 = vmul.u32.u64.high %v2880_v37, %v2879_v35, %v5967_v14 }
 0x477   : > { %v2600_v9 = vand.u32 2147483647, %v2599_v49  ;;  %v2796_v36 = vclz %v3402_v39  ;;  %v2871_v19 = vsel %vm2865_vm9, %v2868_v29, %v2870_v27  ;;  %vm2947_vm12 = vcmp.gt.s32.totalorder %v2946_v7, 0 }
 0x478   : > { %v2595_v13 = vor.u32 %v2594_v2, %v6546_v17  ;;  %v2704_v54 = vand.u32 2147483647, %v2703_v42  ;;  %v2890_v15 = vadd.s32 1, %v5955_v48  ;;  %v6547_v1 = vand.u32 2147483647, %v5851_v58 }
 0x479   : > { %v2948_v20 = vsel %vm2947_vm12, %v2946_v7, 0  ;;  %3662 = vcosq.f32 %v2504_v16  ;;  %v6548_v59 = vsub.s32 4, %v5790_v51  ;;  %v3403_v49 = vadd.s32 4294967294, %v2796_v36 }
 0x47a   : > { %v2943_v40 = vand.u32 8388607, %v6547_v1  ;;  %v2950_v2 = vand.u32 31, %v2948_v20  ;;  %v2602_v4 = vcvt.s32.f32 %v2595_v13  ;;  %v2706_v21 = vcvt.s32.f32 %v2699_v43 }
 0x47b   : > { %v5979_v24 = vsel %vm2522_vm6, %v6548_v59, %v5790_v51  ;;  %v2887_v52 = vmul.u32 %v2880_v37, %v2871_v19  ;;  %vm2889_vm0 = vc.u32 %v5968_v18, %v5954_v41  ;;  %3664 = vsinq.f32 %v2504_v16 }
 0x47c   : > { %vm3404_vm2 = vcmp.lt.s32.totalorder %v3403_v49, 0  ;;  %v2891_v55 = vsel %vm2889_vm0, %v2890_v15, %v5955_v48  ;;  %v2951_v32 = vsub.s32 32, %v2950_v2  ;;  %v2603_v60 = vmul.f32 %v2602_v4, %v2600_v9 }
 0x47d   : > { %v5984_v0 = vmul.f32 %v2706_v21, %v2704_v54  ;;  %v2892_v56 = vadd.s32 %v2891_v55, %v2887_v52  ;;  %v2944_v42 = vor.u32 8388608, %v2943_v40  ;;  %v5986_v51 = vsel %vm3404_vm2, 0, %v3403_v49 }
 0x47e   : > { %v5988_v57 = vshrl.u32 %v2948_v20, 5  ;;  %v2959_v29 = vshll.u32 %v6435_v47, %v2950_v2  ;;  %v5993_v37 = vadd.f32 %v5652_v28, %v5841_v5  ;;  %v2954_v27 = vshrl.u32 %v6438_v45, %v2951_v32 }
 0x47f   : > { %v2893_v33 = vadd.s32 536870912, %v2892_v56  ;;  %v2957_v31 = vshrl.u32 %v6435_v47, %v2951_v32  ;;  %v2960_v48 = vshrl.u32 %v6432_v53, %v2951_v32  ;;  %v2953_v16 = vshll.u32 %v6431_v26, %v2950_v2 }
 0x480   : > { %v2956_v39 = vshll.u32 %v6438_v45, %v2950_v2  ;;  %v2962_v35 = vshll.u32 %v6432_v53, %v2950_v2  ;;  %v2963_v7 = vshrl.u32 %v6540_v62, %v2951_v32  ;;  %v2604_v17 = vxor.u32 2147483648, %v2603_v60 }
 0x481   : > { %v2708_v13 = vxor.u32 2147483648, %v5984_v0  ;;  %v6003_v28 = vshrl.u32 %v2893_v33, 30  ;;  %v2961_v5 = vor.u32 %v2960_v48, %v2959_v29  ;;  %v2804_v43 = vsub.s32 4294967266, %v5986_v51 }
 0x482   : > { %v2955_v14 = vor.u32 %v2954_v27, %v2953_v16  ;;  %v2958_v9 = vor.u32 %v2957_v31, %v2956_v39  ;;  %v2964_v36 = vor.u32 %v2963_v7, %v2962_v35  ;;  %v6549_v19 = vand.u32 2147483647, %v5637_v46 }
 0x483   : > { %v2895_v15 = vshll.u32 %v6003_v28, 30  ;;  %v2965_v1 = vshll.u32 %v6540_v62, %v2950_v2  ;;  %v2966_v40 = vshrl.u32 %v6541_v22, %v2951_v32  ;;  %v2984_v20 = vshll.u32 %v2944_v42, 8  ;;  %v6015_v59 = vpop.eup %3662 }
 0x484   : > { %vm6008_vm3 = vcmp.le.f32.partialorder %v6549_v19, 0.7853982  ;;  %vm2626_vm7 = vcmp.lt.s32.totalorder %v5650_v44, 0  ;;  %v2800_v49 = vsub.s32 32, %v5986_v51  ;;  %v2952_v4 = vshrl.u32 %v6431_v26, %v2951_v32 }
 0x485   : > { %vm2971_vm11 = vcmp.lt.s32.totalorder %v5988_v57, 4  ;;  %v3043_v21 = vand.u32 2139095040, %v5993_v37  ;;  %v6022_v52 = vsub.s32 %v2892_v56, %v2895_v15  ;;  %v2967_v55 = vor.u32 %v2966_v40, %v2965_v1  ;;  %v6027_v42 = vpop.eup %3664 }
 0x486   : > { %vm2968_vm8 = vcmp.lt.s32.totalorder %v5988_v57, 1  ;;  %v2973_v2 = vsel %vm2971_vm11, %v2961_v5, 2102212464  ;;  %v2805_v29 = vadd.s32 127, %v2804_v43  ;;  %vm2970_vm14 = vcmp.lt.s32.totalorder %v5988_v57, 3 }
 0x487   : > { %v2976_v33 = vsel %vm2968_vm8, %v2955_v14, %v2958_v9  ;;  %v2977_v32 = vsel %vm2971_vm11, %v2964_v36, 920167782  ;;  %v6552_v27 = vand.u32 2147483647, %v5650_v44  ;;  %v2898_v31 = vsub.s32 0, %v6022_v52 }
 0x488   : > { %vm2969_vm1 = vcmp.lt.s32.totalorder %v5988_v57, 2  ;;  %v2978_v48 = vsel %vm2970_vm14, %v2961_v5, %v2977_v32  ;;  %v2980_v16 = vsel %vm2968_vm8, %v2958_v9, %v2961_v5  ;;  %v2972_v39 = vsel %vm2968_vm8, %v2952_v4, %v2955_v14 }
 0x489   : > { %vm6034_vm13 = vcmp.le.f32.partialorder %v6552_v27, 0.7853982  ;;  %v2974_v35 = vsel %vm2970_vm14, %v2958_v9, %v2973_v2  ;;  %v2979_v7 = vsel %vm2969_vm1, %v2976_v33, %v2978_v48  ;;  %v2981_v43 = vsel %vm2971_vm11, %v2967_v55, 1326507024 }
 0x48a   : > { %v3406_v19 = vmin.u32 %v2898_v31, %v6022_v52  ;;  %v2982_v15 = vsel %vm2970_vm14, %v2964_v36, %v2981_v43  ;;  %v6045_v1 = vmul.u32.u64.low %v2984_v20, %v2979_v7  ;;  %v6046_v40 = vmul.u32.u64.high %v2984_v20, %v2979_v7, %v6045_v1 }
 0x48b   : > { %v6555_v27 = vsel %vm5845_vm10, 0, %v5835_v30  ;;  %v2605_v5 = vsel %vm2522_vm6, %v2604_v17, %v2603_v60  ;;  %v2983_v14 = vsel %vm2969_vm1, %v2980_v16, %v2982_v15  ;;  %v3044_v9 = vshrl.u32 %v3043_v21, 23 }
 0x48c   : > { %v6052_v32 = vadd.s32 3, %v6555_v27  ;;  %v2784_v4 = vadd.s32 %v5892_v38, %v5897_v6  ;;  %v2900_v36 = vclz %v3406_v19  ;;  %3666 = vcosq.f32 %v5865_v25 }
 0x48d   : > { %v6060_v55 = vmul.u32.u64.low %v2984_v20, %v2983_v14  ;;  %v6061_v2 = vmul.u32.u64.high %v2984_v20, %v2983_v14, %v6060_v55  ;;  %v2609_v30 = vsel %vm6008_vm3, 0, %v5979_v24  ;;  %v2975_v12 = vsel %vm2969_vm1, %v2972_v39, %v2974_v35 }
 0x48e   : > { %v3413_v60 = vadd.s32 4294967169, %v3044_v9  ;;  %v2709_v17 = vsel %vm2626_vm7, %v2708_v13, %v5984_v0  ;;  %v2802_v21 = vshrl.u32 %v2784_v4, %v2800_v49  ;;  %v2806_v38 = vshll.u32 %v2805_v29, 23 }
 0x48f   : > { %v2994_v6 = vadd.s32 1, %v6046_v40  ;;  %v2608_v33 = vsel %vm6008_vm3, %v5637_v46, %v2605_v5  ;;  %v3040_v31 = vand.u32 2147483647, %v5993_v37  ;;  %v2502_v24 = vsub.s32 4, %v5749_v61 }
 0x490   : > { %v3050_v48 = vadd.s32 1, %v3413_v60  ;;  %v2801_v57 = vshll.u32 %v5947_v63, %v5986_v51  ;;  %v3407_v16 = vadd.s32 4294967294, %v2900_v36  ;;  %v2991_v39 = vmul.u32 %v2984_v20, %v2975_v12 }
 0x491   : > { %vm2993_vm10 = vc.u32 %v6061_v2, %v6045_v1  ;;  %3668 = vsinq.f32 %v5865_v25  ;;  %v2712_v0 = vsel %vm6034_vm13, %v5650_v44, %v2709_v17  ;;  %v6088_v49 = vor.u32 4788187, %v2806_v38 }
 0x492   : > { %v2995_v13 = vsel %vm2993_vm10, %v2994_v6, %v6046_v40  ;;  %vm3051_vm6 = vcmp.gt.s32.totalorder %v3050_v48, 0  ;;  %3670 = vcosq.f32 %v2608_v33  ;;  %v6086_v54 = vor.u32 %v2802_v21, %v2801_v57 }
 0x493   : > { %v2996_v29 = vadd.s32 %v2995_v13, %v2991_v39  ;;  %3672 = vsinq.f32 %v2608_v33  ;;  %v6090_v63 = vadd.s32 3, %v2609_v30  ;;  %v3047_v51 = vand.u32 8388607, %v3040_v31 }
 0x494   : > { %v3052_v25 = vsel %vm3051_vm6, %v3050_v48, 0  ;;  %3674 = vcosq.f32 %v2712_v0  ;;  %vm3408_vm5 = vcmp.lt.s32.totalorder %v3407_v16, 0  ;;  %v2503_v35 = vsel %vm2418_vm15, %v2502_v24, %v5749_v61 }
 0x495   : > { %v2997_v20 = vadd.s32 536870912, %v2996_v29  ;;  %3676 = vsinq.f32 %v2712_v0  ;;  %v6099_v7 = vadd.s32 %v5954_v41, %v5968_v18  ;;  %v3054_v43 = vand.u32 31, %v3052_v25 }
 0x496   : > { %v2513_v19 = vxor.u32 2147483648, %v6027_v42  ;;  %v2808_v15 = vand.u32 2147483647, %v6088_v49  ;;  %v2810_v40 = vcvt.s32.f32 %v6086_v54  ;;  %v2516_v5 = vxor.u32 2147483648, %v6015_v59  ;;  %v6107_v14 = vpop.eup %3666 }
 0x497   : > { %v6104_v27 = vshrl.u32 %v2997_v20, 30  ;;  %v6109_v9 = vsel %vm3408_vm5, 0, %v3407_v16  ;;  %v3048_v61 = vor.u32 8388608, %v3047_v51  ;;  %v3055_v4 = vsub.s32 32, %v3054_v43 }
 0x498   : > { %v2505_v41 = vsel %vm5933_vm4, 0, %v2503_v35  ;;  %v6114_v18 = vadd.s32 %v6045_v1, %v6061_v2  ;;  %v3057_v55 = vshll.u32 %v6431_v26, %v3054_v43  ;;  %v2710_v30 = vsub.s32 4, %v5860_v10 }
 0x499   : > { %v2999_v36 = vshll.u32 %v6104_v27, 30  ;;  %v3058_v12 = vshrl.u32 %v6438_v45, %v3055_v4  ;;  %v3060_v60 = vshll.u32 %v6438_v45, %v3054_v43  ;;  %v3061_v17 = vshrl.u32 %v6435_v47, %v3055_v4 }
 0x49a   : > { %v3064_v21 = vshrl.u32 %v6432_v53, %v3055_v4  ;;  %v2908_v8 = vsub.s32 4294967266, %v6109_v9  ;;  %v3053_v1 = vshrl.u32 %v3052_v25, 5  ;;  %v3063_v2 = vshll.u32 %v6435_v47, %v3054_v43 }
 0x49b   : > { %v6124_v38 = vsub.s32 %v2996_v29, %v2999_v36  ;;  %v6127_v6 = vpop.eup %3668  ;;  %v2904_v33 = vsub.s32 32, %v6109_v9  ;;  %v3059_v48 = vor.u32 %v3058_v12, %v3057_v55  ;;  %v3062_v24 = vor.u32 %v3061_v17, %v3060_v60 }
 0x49c   : > { %v6130_v57 = vshll.u32 %v3048_v61, 8  ;;  %v6132_v45 = vpop.eup %3670  ;;  %v3065_v39 = vor.u32 %v3064_v21, %v3063_v2  ;;  %v3066_v0 = vshll.u32 %v6432_v53, %v3054_v43  ;;  %v3067_v13 = vshrl.u32 %v6540_v62, %v3055_v4 }
 0x49d   : > { %v3002_v16 = vsub.s32 0, %v6124_v38  ;;  %v6137_v29 = vpop.eup %3672  ;;  %v3069_v47 = vshll.u32 %v6540_v62, %v3054_v43  ;;  %v3070_v51 = vshrl.u32 %v6541_v22, %v3055_v4  ;;  %v2509_v25 = vadd.s32 3, %v2505_v41 }
 0x49e   : > { %v2711_v20 = vsel %vm2626_vm7, %v2710_v30, %v5860_v10  ;;  %v6144_v35 = vpop.eup %3674  ;;  %v2909_v61 = vadd.s32 127, %v2908_v8  ;;  %v3068_v55 = vor.u32 %v3067_v13, %v3066_v0  ;;  %vm3072_vm15 = vcmp.lt.s32.totalorder %v3053_v1, 1 }
 0x49f   : > { %v3410_v36 = vmin.u32 %v3002_v16, %v6124_v38  ;;  %v3677_v53 = vpop.eup %3676  ;;  %v3056_v12 = vshrl.u32 %v6431_v26, %v3055_v4  ;;  %v3071_v60 = vor.u32 %v3070_v51, %v3069_v47  ;;  %vm3075_vm4 = vcmp.lt.s32.totalorder %v3053_v1, 4 }
 0x4a0   : > { %v3080_v62 = vsel %vm3072_vm15, %v3059_v48, %v3062_v24  ;;  %vm3074_vm9 = vcmp.lt.s32.totalorder %v3053_v1, 3  ;;  %v3077_v22 = vsel %vm3075_vm4, %v3065_v39, 2102212464  ;;  %v3081_v41 = vsel %vm3075_vm4, %v3068_v55, 920167782 }
 0x4a1   : > { %v3004_v43 = vclz %v3410_v36  ;;  %vm3073_vm12 = vcmp.lt.s32.totalorder %v3053_v1, 2  ;;  %v3082_v17 = vsel %vm3074_vm9, %v3065_v39, %v3081_v41  ;;  %v3084_v10 = vsel %vm3072_vm15, %v3062_v24, %v3065_v39 }
 0x4a2   : > { %v2510_v30 = vand.u32 3, %v2509_v25  ;;  %v3076_v8 = vsel %vm3072_vm15, %v3056_v12, %v3059_v48  ;;  %v3083_v2 = vsel %vm3073_vm12, %v3080_v62, %v3082_v17  ;;  %v3085_v16 = vsel %vm3075_vm4, %v3071_v60, 1326507024 }
 0x4a3   : > { %v3411_v21 = vadd.s32 4294967294, %v3004_v43  ;;  %v3078_v0 = vsel %vm3074_vm9, %v3062_v24, %v3077_v22  ;;  %v3086_v13 = vsel %vm3074_vm9, %v3068_v55, %v3085_v16  ;;  %v2905_v47 = vshll.u32 %v6022_v52, %v6109_v9 }
 0x4a4   : > { %v6150_v26 = vmul.u32.u64.low %v6130_v57, %v3083_v2  ;;  %v6151_v4 = vmul.u32.u64.high %v6130_v57, %v3083_v2, %v6150_v26  ;;  %v3087_v51 = vsel %vm3073_vm12, %v3084_v10, %v3086_v13  ;;  %v2713_v39 = vsel %vm6034_vm13, 0, %v2711_v20 }
 0x4a5   : > { %vm3412_vm0 = vcmp.lt.s32.totalorder %v3411_v21, 0  ;;  %v2906_v48 = vshrl.u32 %v6099_v7, %v2904_v33  ;;  %v6161_v24 = vmul.u32.u64.low %v6130_v57, %v3087_v51  ;;  %v6162_v36 = vmul.u32.u64.high %v6130_v57, %v3087_v51, %v6161_v24 }
 0x4a6   : > { %v3007_v25 = vsel %vm3412_vm0, 0, %v3411_v21  ;;  %vm2508_vm2 = vweird.f32 %v5631_v23  ;;  %vm2716_vm3 = vweird.f32 %v5650_v44  ;;  %v2910_v55 = vshll.u32 %v2909_v61, 23 }
 0x4a7   : > { %v3012_v12 = vsub.s32 4294967266, %v3007_v25  ;;  %v3079_v52 = vsel %vm3073_vm12, %v3076_v8, %v3078_v0  ;;  %v2721_v9 = vxor.u32 2147483648, %v3677_v53  ;;  %v3098_v60 = vadd.s32 1, %v6151_v4 }
 0x4a8   : > { %vm2512_vm7 = vcmp.eq.s32.totalorder %v2510_v30, 0  ;;  %vm2515_vm11 = vcmp.eq.s32.totalorder %v2510_v30, 2  ;;  %v2717_v56 = vadd.s32 3, %v2713_v39  ;;  %v2724_v61 = vxor.u32 2147483648, %v6144_v35 }
 0x4a9   : > { %v3013_v7 = vadd.s32 127, %v3012_v12  ;;  %v2514_v33 = vsel %vm2512_vm7, %v6015_v59, %v2513_v19  ;;  %v2517_v20 = vsel %vm2515_vm11, %v2516_v5, %v6027_v42  ;;  %v2907_v62 = vor.u32 %v2906_v48, %v2905_v47 }
 0x4aa   : > { %v3095_v1 = vmul.u32 %v6130_v57, %v3079_v52  ;;  %vm3097_vm8 = vc.u32 %v6162_v36, %v6150_v26  ;;  %v2718_v43 = vand.u32 3, %v2717_v56  ;;  %v2911_v22 = vor.u32 4788187, %v2910_v55 }
 0x4ab   : > { %v3008_v41 = vsub.s32 32, %v3007_v25  ;;  %v3099_v17 = vsel %vm3097_vm8, %v3098_v60, %v6151_v4  ;;  %vm2511_vm14 = vcmp.lt.s32.totalorder %v2510_v30, 2  ;;  %v3014_v59 = vshll.u32 %v3013_v7, 23 }
 0x4ac   : > { %v3100_v10 = vadd.s32 %v3099_v17, %v3095_v1  ;;  %v2518_v19 = vsel %vm2511_vm14, %v2514_v33, %v2517_v20  ;;  %vm2720_vm13 = vcmp.eq.s32.totalorder %v2718_v43, 0  ;;  %vm2723_vm1 = vcmp.eq.s32.totalorder %v2718_v43, 2 }
 0x4ad   : > { %vm2719_vm10 = vcmp.lt.s32.totalorder %v2718_v43, 2  ;;  %v2722_v42 = vsel %vm2720_vm13, %v6144_v35, %v2721_v9  ;;  %v2725_v5 = vsel %vm2723_vm1, %v2724_v61, %v3677_v53  ;;  %v2406_v8 = vand.u32 3, %v6052_v32 }
 0x4ae   : > { %v3101_v21 = vadd.s32 536870912, %v3100_v10  ;;  %v2726_v57 = vsel %vm2719_vm10, %v2722_v42, %v2725_v5  ;;  %v2409_v2 = vxor.u32 2147483648, %v6127_v6  ;;  %v3010_v16 = vshrl.u32 %v6114_v18, %v3008_v41 }
 0x4af   : > { %v2519_v30 = vsel %vm2508_vm2, nan, %v2518_v19  ;;  %v2727_v0 = vsel %vm2716_vm3, nan, %v2726_v57  ;;  %v2412_v13 = vxor.u32 2147483648, %v6107_v14  ;;  %v3009_v4 = vshll.u32 %v6124_v38, %v3007_v25 }
 0x4b0   : > { %v6189_v35 = vshrl.u32 %v3101_v21, 30  ;;  %v3440_v53 = vpack.c.bf16 %v2727_v0, %v2519_v30  ;;  %vm2408_vm6 = vcmp.eq.s32.totalorder %v2406_v8, 0  ;;  %v3015_v47 = vor.u32 4788187, %v3014_v59 }
 0x4b1   : > { %v2410_v32 = vsel %vm2408_vm6, %v6107_v14, %v2409_v2  ;;  %vm2411_vm5 = vcmp.eq.s32.totalorder %v2406_v8, 2  ;;  %v2614_v18 = vand.u32 3, %v6090_v63  ;;  %v2617_v51 = vxor.u32 2147483648, %v6137_v29 }
 0x4b2   : > { %v3103_v23 = vshll.u32 %v6189_v35, 30  ;;  %3441 = vmatprep.subr.bf16.mxu0 %v3440_v53  ;;  %v2413_v44 = vsel %vm2411_vm5, %v2412_v13, %v6127_v6  ;;  %v2620_v39 = vxor.u32 2147483648, %v6132_v45  ;;  %v2912_v38 = vand.u32 2147483647, %v2911_v22 }
 0x4b3   : > { %v3011_v48 = vor.u32 %v3010_v16, %v3009_v4  ;;  %vm2407_vm15 = vcmp.lt.s32.totalorder %v2406_v8, 2  ;;  %vm2616_vm4 = vcmp.eq.s32.totalorder %v2614_v18, 0  ;;  %vm2619_vm9 = vcmp.eq.s32.totalorder %v2614_v18, 2 }
 0x4b4   : > { %v3104_v25 = vsub.s32 %v3100_v10, %v3103_v23  ;;  %v2414_v24 = vsel %vm2407_vm15, %v2410_v32, %v2413_v44  ;;  %v2618_v14 = vsel %vm2616_vm4, %v6132_v45, %v2617_v51  ;;  %v2914_v55 = vcvt.s32.f32 %v2907_v62 }
 0x4b5   : > { %v3016_v63 = vand.u32 2147483647, %v3015_v47  ;;  %vm2615_vm12 = vcmp.lt.s32.totalorder %v2614_v18, 2  ;;  %v2621_v12 = vsel %vm2619_vm9, %v2620_v39, %v6137_v29  ;;  %vm2404_vm0 = vweird.f32 %v5629_v11 }
 0x4b6   : > { %v3106_v52 = vsub.s32 0, %v3104_v25  ;;  %vm2612_vm2 = vweird.f32 %v5637_v46  ;;  %v2622_v6 = vsel %vm2615_vm12, %v2618_v14, %v2621_v12  ;;  %v2811_v9 = vmul.f32 %v2810_v40, %v2808_v15 }
 0x4b7   : > { %v3018_v60 = vcvt.s32.f32 %v3011_v48  ;;  %v2415_v56 = vsel %vm2404_vm0, nan, %v2414_v24  ;;  %v2623_v45 = vsel %vm2612_vm2, nan, %v2622_v6  ;;  %v2915_v7 = vmul.f32 %v2914_v55, %v2912_v38 }
 0x4b8   : > { %v3414_v33 = vmin.u32 %v3106_v52, %v3104_v25  ;;  %v3442_v20 = vpack.c.bf16 %v2623_v45, %v2415_v56  ;;  %v2812_v29 = vxor.u32 2147483648, %v2811_v9  ;;  %vm2730_vm3 = vcmp.lt.s32.totalorder %v5786_v3, 0 }
 0x4b9   : > { %v3019_v61 = vmul.f32 %v3018_v60, %v3016_v63  ;;  %v2916_v1 = vxor.u32 2147483648, %v2915_v7  ;;  %vm2834_vm11 = vcmp.lt.s32.totalorder %v5801_v34, 0  ;;  %vm2938_vm8 = vcmp.lt.s32.totalorder %v5851_v58, 0 }
 0x4ba   : > { %v3108_v62 = vclz %v3414_v33  ;;  %3443 = vmatpush1.bf16.msra.mxu0 %v3442_v20  ;;  %v2813_v46 = vsel %vm2730_vm3, %v2812_v29, %v2811_v9  ;;  %v3096_v15 = vadd.s32 %v6150_v26, %v6162_v36  ;;  %v6556_v41 = vand.u32 2147483647, %v5786_v3 }
 0x4bb   : > { %v3020_v43 = vxor.u32 2147483648, %v3019_v61  ;;  %v2917_v49 = vsel %vm2834_vm11, %v2916_v1, %v2915_v7  ;;  %v6559_v10 = vand.u32 2147483647, %v5801_v34  ;;  %v6562_v57 = vand.u32 2147483647, %v5851_v58 }
 0x4bc   : > { %v3415_v11 = vadd.s32 4294967294, %v3108_v62  ;;  %vm6216_vm14 = vcmp.le.f32.partialorder %v6556_v41, 0.7853982  ;;  %v3022_v0 = vsub.s32 4, %v6104_v27  ;;  %v2918_v4 = vsub.s32 4, %v6003_v28 }
 0x4bd   : > { %vm6222_vm13 = vcmp.le.f32.partialorder %v6559_v10, 0.7853982  ;;  %v3021_v59 = vsel %vm2938_vm8, %v3020_v43, %v3019_v61  ;;  %v2816_v26 = vsel %vm6216_vm14, %v5786_v3, %v2813_v46  ;;  %vm6236_vm1 = vcmp.le.f32.partialorder %v6562_v57, 0.7853982 }
 0x4be   : > { %vm3416_vm7 = vcmp.lt.s32.totalorder %v3415_v11, 0  ;;  %v2920_v21 = vsel %vm6222_vm13, %v5801_v34, %v2917_v49  ;;  %v3024_v2 = vsel %vm6236_vm1, %v5851_v58, %v3021_v59  ;;  %3678 = vcosq.f32 %v2816_v26 }
 0x4bf   : > { %v3111_v54 = vsel %vm3416_vm7, 0, %v3415_v11  ;;  %3680 = vcosq.f32 %v2920_v21  ;;  %v2814_v53 = vsub.s32 4, %v5940_v50  ;;  %v3023_v18 = vsel %vm2938_vm8, %v3022_v0, %v6104_v27 }
 0x4c0   : > { %v3112_v40 = vsub.s32 32, %v3111_v54  ;;  %v3116_v22 = vsub.s32 4294967266, %v3111_v54  ;;  %v3113_v36 = vshll.u32 %v3104_v25, %v3111_v54  ;;  %3682 = vcosq.f32 %v3024_v2 }
 0x4c1   : > { %3684 = vsinq.f32 %v3024_v2  ;;  %v3126_v44 = vsub.s32 4, %v6189_v35  ;;  %v2919_v51 = vsel %vm2834_vm11, %v2918_v4, %v6003_v28  ;;  %v2815_v39 = vsel %vm2730_vm3, %v2814_v53, %v5940_v50 }
 0x4c2   : > { %v3114_v42 = vshrl.u32 %v3096_v15, %v3112_v40  ;;  %v3117_v5 = vadd.s32 127, %v3116_v22  ;;  %3686 = vsinq.f32 %v2920_v21  ;;  %v3025_v48 = vsel %vm6236_vm1, 0, %v3023_v18 }
 0x4c3   : > { %3688 = vsinq.f32 %v2816_v26  ;;  %vm3042_vm10 = vcmp.lt.s32.totalorder %v5993_v37, 0  ;;  %vm6261_vm6 = vcmp.le.f32.partialorder %v3040_v31, 0.7853982  ;;  %v2921_v28 = vsel %vm6222_vm13, 0, %v2919_v51 }
 0x4c4   : > { %v3115_v16 = vor.u32 %v3114_v42, %v3113_v36  ;;  %v3118_v30 = vshll.u32 %v3117_v5, 23  ;;  %v3127_v24 = vsel %vm3042_vm10, %v3126_v44, %v6189_v35  ;;  %v2817_v50 = vsel %vm6216_vm14, 0, %v2815_v39 }
 0x4c5   : > { %v3029_v12 = vadd.s32 3, %v3025_v48  ;;  %v2925_v52 = vadd.s32 3, %v2921_v28  ;;  %v3129_v6 = vsel %vm6261_vm6, 0, %v3127_v24  ;;  %v2821_v60 = vadd.s32 3, %v2817_v50 }
 0x4c6   : > { %v3119_v13 = vor.u32 4788187, %v3118_v30  ;;  %v3122_v32 = vcvt.s32.f32 %v3115_v16  ;;  %v3133_v45 = vadd.s32 3, %v3129_v6  ;;  %vm3028_vm13 = vweird.f32 %v5851_v58  ;;  %v3144_v58 = vld [vmem:[%s6335_s5] sm:$0x7] }
 0x4c7   : > { %v3030_v7 = vand.u32 3, %v3029_v12  ;;  %v2926_v33 = vand.u32 3, %v2925_v52  ;;  %v2822_v1 = vand.u32 3, %v2821_v60  ;;  %vm2924_vm1 = vweird.f32 %v5801_v34 }
 0x4c8   : > { %v3120_v47 = vand.u32 2147483647, %v3119_v13  ;;  %v3679_v14 = vpop.eup %3678  ;;  %v3134_v46 = vand.u32 3, %v3133_v45 }
 0x4c9   : > { %v3681_v63 = vpop.eup %3680  ;;  %v2828_v43 = vxor.u32 2147483648, %v3679_v14  ;;  %vm3032_vm5 = vcmp.eq.s32.totalorder %v3030_v7, 0  ;;  %vm3035_vm15 = vcmp.eq.s32.totalorder %v3030_v7, 2  ;;  %vm2928_vm4 = vcmp.eq.s32.totalorder %v2926_v33, 0 }
 0x4ca   : > { %v3123_v23 = vmul.f32 %v3122_v32, %v3120_v47  ;;  %v3683_v31 = vpop.eup %3682  ;;  %v2932_v29 = vxor.u32 2147483648, %v3681_v63  ;;  %vm2931_vm9 = vcmp.eq.s32.totalorder %v2926_v33, 2  ;;  %vm2824_vm12 = vcmp.eq.s32.totalorder %v2822_v1, 0 }
 0x4cb   : > { %v3685_v9 = vpop.eup %3684  ;;  %v3036_v61 = vxor.u32 2147483648, %v3683_v31  ;;  %vm2827_vm0 = vcmp.eq.s32.totalorder %v2822_v1, 2  ;;  %vm3031_vm2 = vcmp.lt.s32.totalorder %v3030_v7, 2  ;;  %vm2927_vm3 = vcmp.lt.s32.totalorder %v2926_v33, 2 }
 0x4cc   : > { %v3124_v38 = vxor.u32 2147483648, %v3123_v23  ;;  %v3687_v35 = vpop.eup %3686  ;;  %v3033_v20 = vxor.u32 2147483648, %v3685_v9  ;;  %vm3139_vm7 = vcmp.eq.s32.totalorder %v3134_v46, 2  ;;  %vm3136_vm11 = vcmp.eq.s32.totalorder %v3134_v46, 0 }
 0x4cd   : > { %v3689_v56 = vpop.eup %3688  ;;  %v2929_v62 = vxor.u32 2147483648, %v3687_v35  ;;  %v3037_v49 = vsel %vm3035_vm15, %v3036_v61, %v3685_v9  ;;  %v2933_v22 = vsel %vm2931_vm9, %v2932_v29, %v3687_v35  ;;  %vm2823_vm8 = vcmp.lt.s32.totalorder %v2822_v1, 2 }
 0x4ce   : > { %v3125_v25 = vsel %vm3042_vm10, %v3124_v38, %v3123_v23  ;;  %v2825_v11 = vxor.u32 2147483648, %v3689_v56  ;;  %v3034_v54 = vsel %vm3032_vm5, %v3683_v31, %v3033_v20  ;;  %v2829_v19 = vsel %vm2827_vm0, %v2828_v43, %v3689_v56 }
 0x4cf   : > { %v3128_v55 = vsel %vm6261_vm6, %v5993_v37, %v3125_v25  ;;  %v2930_v40 = vsel %vm2928_vm4, %v3681_v63, %v2929_v62  ;;  %v3038_v26 = vsel %vm3031_vm2, %v3034_v54, %v3037_v49  ;;  %vm3135_vm14 = vcmp.lt.s32.totalorder %v3134_v46, 2 }
 0x4d0   : > { %3690 = vcosq.f32 %v3128_v55  ;;  %v2826_v10 = vsel %vm2824_vm12, %v3679_v14, %v2825_v11  ;;  %v2934_v36 = vsel %vm2927_vm3, %v2930_v40, %v2933_v22  ;;  %vm3132_vm10 = vweird.f32 %v5993_v37 }
 0x4d1   : > { %3692 = vsinq.f32 %v3128_v55  ;;  %v2830_v21 = vsel %vm2823_vm8, %v2826_v10, %v2829_v19  ;;  %v3039_v8 = vsel %vm3028_vm13, nan, %v3038_v26  ;;  %v2935_v2 = vsel %vm2924_vm1, nan, %v2934_v36 }
 0x4d2   : > { %vm2820_vm6 = vweird.f32 %v5786_v3  ;;  %vm6567_vm5 = vcmask 261120  }
 0x4d3   : > { %v2831_v0 = vsel %vm2820_vm6, nan, %v2830_v21 }
 0x4d4   : > { %v3446_v13 = vpack.c.bf16 %v3039_v8, %v2831_v0 }
 0x4da   : > { %v3691_v15 = vpop.eup %3690 }
 0x4db   : > { %v3693_v41 = vpop.eup %3692  ;;  %v3140_v17 = vxor.u32 2147483648, %v3691_v15 }
 0x4dc   : > { %v3137_v59 = vxor.u32 2147483648, %v3693_v41 }
 0x4dd   : > { %v3141_v42 = vsel %vm3139_vm7, %v3140_v17, %v3693_v41 }
 0x4de   : > { %v3138_v5 = vsel %vm3136_vm11, %v3691_v15, %v3137_v59 }
 0x4df   : > { %v3142_v57 = vsel %vm3135_vm14, %v3138_v5, %v3141_v42 }
 0x4e0   : > { %v3143_v16 = vsel %vm3132_vm10, nan, %v3142_v57 }
 0x4e1   : > { %v3444_v30 = vpack.c.bf16 %v3143_v16, %v2935_v2 }
 0x4e3   : > { %3445 = vmatprep.subr.bf16.mxu0 %v3444_v30 }
 0x4e4   : > { %3447 = vmatpush1.bf16.msra.mxu0 %v3446_v13 }
 0x4e7   : > { %3417 = vmatmul.mubr.msk.f32.vlgmr.msra.gmra.mrb[8].mxu0 %vm6567_vm5, %v3144_v58 }
 0x5ba   : > { %v3214_v34 = vpop.f32.mrb[8].mxu0 }
 0x5bb   : > { %v3216_v37 = vpop.f32.mrb[9].mxu0 }
 0x5bc   : > { %v3221_v3 = vcombine.low %v3214_v34, %v3216_v37 }
 0x5be   : > { %3223 = vst [vmem:[%s245_s28] sm:$0x77] %v3221_v3 }
 0x5bf   : > { %3707 = shalt.err (!%p3704_p3)
}
 0x5c0   : > { %s3708_s16 = scalar_lea.hbm %s6288_s11, 128  ;;  %s3712_s19 = scalar_lea.hbm %s6336_s6, 256 }
 0x5c1   : > { %p3709_p4 = scmp.ne.s32.totalorder %s6288_s11, %s3708_s16  ;;  %p3713_p9 = scmp.lt.u32.totalorder %s6288_s11, %s6336_s6 }
 0x5c2   : > { %p3714_p10 = scmp.lt.u32.totalorder %s3712_s19, %s3708_s16  ;;  %p3716_p12 = scmp.lt.u32.totalorder %s3708_s16, %s6288_s11 }
 0x5c3   : > { %p3710_p7 = pnand %p3709_p4, %p3841_p5 }
 0x5c4   : > { %p3715_p11 = por %p3714_p10, %p3713_p9 }
 0x5c5   : > { %p3711_p8 = pneg %p3710_p7 }
 0x5c6   : > { %p3717_p13 = por %p3716_p12, %p3715_p11 }
 0x5c8   : > { %p3718_p0 = pnand %p3717_p13, %p3711_p8 }
 0x5ca   : > { %3721 = shalt.err (!%p3718_p0)
}
 0x5cb   : > { %3544 = dma.vmem_to_hbm [thread:$0]  (%p3841_p5), %s6290_s29, 128, %s6288_s11, %s3225_s12  }
 0x5cc PF: > { %p3550_p1 = scmp.ge.s32.totalorder %s3756_s24, 2  ;;  %s3251_s28 = sand.u32 1, %s3744_s21  }
 0x5cd   : > { %s3252_s9 = scalar_lea.sflag [#allocation3], %s3251_s28 }
 0x5ce   : > { %p3547_p2 = pnand %p3550_p1, %p3845_p6 }
 0x5d0   : > { %3739 = dma.done.wait (!%p3547_p2), %s3252_s9, 128  }
 0x5d1   : > { %3741 = vsyncadd (!%p3547_p2), %s3252_s9, 4294967168  ;;  %p16_p3 = scmp.ge.s32.totalorder %s3828_s27, 4   ;;  %s6568_s21 = smov %s3748_s22 }
 0x5d2   : > { %s6569_s22 = smov %s3752_s23  ;;  %s6570_s23 = smov %s3839_s30 }
 0x5d3   : > { %s6571_s24 = smov %s3828_s27  ;;  %18 = sbr.rel (!%p16_p3) target bundleno = 3 (0x3), region = 81 }
 0x5da   :  { %3257 = vsyncpa [#allocation3], 1 }
 0x5db   :  { %3259 = vsyncpa [#allocation3 + $0x1], 1 }

</bundles_post_ra>
